<compile_context>
chip_gen: v7x
topology: tpu7x:2x2x1
jax: 0.10.0
libtpu: 0.0.40
codegen_flags: <defaults>
</compile_context>

<pallas_src>
import functools
import numpy as np
import jax
import jax.numpy as jnp
from jax.experimental import pallas as pl
from jax.experimental.pallas import tpu as pltpu

LN_EPS = 1e-5
BF16 = jnp.bfloat16
NEG_INF = -1e30
VMEM_LIMIT = 64 * 1024 * 1024


# ----------------------------- in-kernel helpers -----------------------------

def _layer_norm(z, g, b, eps):
    mean = jnp.mean(z, axis=-1, keepdims=True)
    zc = z - mean
    var = jnp.mean(zc * zc, axis=-1, keepdims=True)
    return zc * jax.lax.rsqrt(var + eps) * g + b


def _sigmoid(x):
    return 1.0 / (1.0 + jnp.exp(-x))


def _attn_heads(q, k, v, mask, n_heads, scale):
    """q: (Sq,D) f32, k/v: (Sk,D) f32, mask: (Mq,Sk) f32 (1.0 => masked).

    Returns lane-dense (Sq, D) f32. Static per-head loop (H small)."""
    Sq, D = q.shape
    Sk = k.shape[0]
    Dk = D // n_heads
    if mask.shape[0] == 1:
        mask = jnp.broadcast_to(mask, (Sq, Sk))
    outs = []
    for h in range(n_heads):
        sl = slice(h * Dk, (h + 1) * Dk)
        qh = q[:, sl].astype(BF16)
        kh = k[:, sl].astype(BF16)
        vh = v[:, sl].astype(BF16)
        s = jax.lax.dot_general(qh, kh, (((1,), (1,)), ((), ())),
                                preferred_element_type=jnp.float32) * scale
        # masked_fill(mask, -inf): large finite negative keeps softmax exact
        # for non-degenerate rows and avoids NaN propagation.
        s = jnp.where(mask > 0.5, NEG_INF, s)
        s = s - jnp.max(s, axis=-1, keepdims=True)
        p = jnp.exp(s)
        p = p / jnp.sum(p, axis=-1, keepdims=True)
        outs.append(jnp.dot(p.astype(BF16), vh,
                            preferred_element_type=jnp.float32))
    return jnp.concatenate(outs, axis=-1)


# ----------------------------- Pallas kernels -----------------------------

def _self_mha_kernel(x_ref, mask_ref, pad_ref,
                     wqkv_ref, bqkv_ref, wo_ref, bo_ref, g_ref, b_ref,
                     o_ref, *, n_heads, scale, eps):
    x = x_ref[0]                                          # (S, D) f32
    D = x.shape[-1]
    qkv = jnp.dot(x.astype(BF16), wqkv_ref[...],
                  preferred_element_type=jnp.float32) + bqkv_ref[...]
    q, k, v = qkv[:, :D], qkv[:, D:2 * D], qkv[:, 2 * D:]
    att = _attn_heads(q, k, v, mask_ref[0], n_heads, scale)
    out = jnp.dot(att.astype(BF16), wo_ref[...],
                  preferred_element_type=jnp.float32) + bo_ref[...]
    out = _layer_norm(x + out, g_ref[...], b_ref[...], eps)
    o_ref[0] = out * pad_ref[0]                           # fused * mask_pad


def _cross_gate_ffn_kernel(sa_ref, y1_ref, y2_ref, m1_ref, m2_ref, pad_ref,
                           wq1_ref, bq1_ref, wkv1_ref, bkv1_ref, wo1_ref,
                           bo1_ref, g1_ref, bln1_ref,
                           wq2_ref, bq2_ref, wkv2_ref, bkv2_ref, wo2_ref,
                           bo2_ref, g2_ref, bln2_ref,
                           wa_top_ref, wa_bot_ref, ba_ref,
                           w1_ref, b1_ref, w2_ref, b2_ref, gf_ref, bf_ref,
                           o_ref, *, n_heads, scale, eps):
    sa = sa_ref[0]                                        # (S, D) f32 (pad-masked)
    pad = pad_ref[0]                                      # (S, 1)
    D = sa.shape[-1]
    sa_bf = sa.astype(BF16)

    def cross(y, mask, wq, bq, wkv, bkv, wo, bo, g, b):
        q = jnp.dot(sa_bf, wq, preferred_element_type=jnp.float32) + bq
        kv = jnp.dot(y.astype(BF16), wkv,
                     preferred_element_type=jnp.float32) + bkv
        k, v = kv[:, :D], kv[:, D:]
        att = _attn_heads(q, k, v, mask, n_heads, scale)
        out = jnp.dot(att.astype(BF16), wo,
                      preferred_element_type=jnp.float32) + bo
        return _layer_norm(sa + out, g, b, eps) * pad

    e1 = cross(y1_ref[0], m1_ref[0], wq1_ref[...], bq1_ref[...], wkv1_ref[...],
               bkv1_ref[...], wo1_ref[...], bo1_ref[...], g1_ref[...],
               bln1_ref[...])
    e2 = cross(y2_ref[0], m2_ref[0], wq2_ref[...], bq2_ref[...], wkv2_ref[...],
               bkv2_ref[...], wo2_ref[...], bo2_ref[...], g2_ref[...],
               bln2_ref[...])

    # fc_alpha1(cat([sa, e])) == sa @ Wtop + e @ Wbot + b   (concat removed)
    base = jnp.dot(sa_bf, wa_top_ref[...],
                   preferred_element_type=jnp.float32) + ba_ref[...]
    a1 = _sigmoid(base + jnp.dot(e1.astype(BF16), wa_bot_ref[...],
                                 preferred_element_type=jnp.float32))
    # NOTE: reference forward uses fc_alpha1 for BOTH gates (bug preserved).
    a2 = _sigmoid(base + jnp.dot(e2.astype(BF16), wa_bot_ref[...],
                                 preferred_element_type=jnp.float32))
    enc = (e1 * a1 + e2 * a2) * (1.0 / np.sqrt(2.0)) * pad

    # PositionWiseFeedForward: LN(enc + fc2(relu(fc1(enc)))), then * mask_pad.
    h = jnp.dot(enc.astype(BF16), w1_ref[...],
                preferred_element_type=jnp.float32) + b1_ref[...]
    h = jnp.maximum(h, 0.0)
    yy = jnp.dot(h.astype(BF16), w2_ref[...],
                 preferred_element_type=jnp.float32) + b2_ref[...]
    out = _layer_norm(enc + yy, gf_ref[...], bf_ref[...], eps)
    o_ref[0] = out * pad


def _vocab_logsoftmax_kernel(x_ref, w_ref, o_ref):
    logits = jnp.dot(x_ref[...].astype(BF16), w_ref[...],
                     preferred_element_type=jnp.float32)
    m = jnp.max(logits, axis=-1, keepdims=True)
    z = logits - m
    lse = jnp.log(jnp.sum(jnp.exp(z), axis=-1, keepdims=True))
    o_ref[...] = z - lse


# ----------------------------- wrappers -----------------------------

def _row_block(m):
    for tm in (512, 256, 128):
        if m % tm == 0:
            return tm
    return m   # small / irregular: single block


def self_mha(x, mask_x, mask_pad, p, n_heads):
    B, S, D = x.shape
    kern = functools.partial(_self_mha_kernel, n_heads=n_heads,
                             scale=1.0 / np.sqrt(D // n_heads), eps=LN_EPS)
    return pl.pallas_call(
        kern,
        out_shape=jax.ShapeDtypeStruct((B, S, D), jnp.float32),
        grid=(B,),
        in_specs=[
            pl.BlockSpec((1, S, D), lambda b: (b, 0, 0)),
            pl.BlockSpec((1, S, S), lambda b: (b, 0, 0)),
            pl.BlockSpec((1, S, 1), lambda b: (b, 0, 0)),
            pl.BlockSpec((D, 3 * D), lambda b: (0, 0)),
            pl.BlockSpec((1, 3 * D), lambda b: (0, 0)),
            pl.BlockSpec((D, D), lambda b: (0, 0)),
            pl.BlockSpec((1, D), lambda b: (0, 0)),
            pl.BlockSpec((1, D), lambda b: (0, 0)),
            pl.BlockSpec((1, D), lambda b: (0, 0)),
        ],
        out_specs=pl.BlockSpec((1, S, D), lambda b: (b, 0, 0)),
        compiler_params=pltpu.CompilerParams(
            dimension_semantics=("parallel",),
            vmem_limit_bytes=VMEM_LIMIT),
    )(x, mask_x, mask_pad, p["wqkv"], p["bqkv"], p["wo"], p["bo"],
      p["ln_g"], p["ln_b"])


def cross_gate_ffn(sa, y1, y2, mask_y1, mask_y2, mask_pad, p1, p2, pg, n_heads):
    B, S, D = sa.shape
    Sk1, Sk2 = y1.shape[1], y2.shape[1]
    Dff = pg["w1"].shape[1]
    kern = functools.partial(_cross_gate_ffn_kernel, n_heads=n_heads,
                             scale=1.0 / np.sqrt(D // n_heads), eps=LN_EPS)
    full = lambda b: (0, 0)
    return pl.pallas_call(
        kern,
        out_shape=jax.ShapeDtypeStruct((B, S, D), jnp.float32),
        grid=(B,),
        in_specs=[
            pl.BlockSpec((1, S, D), lambda b: (b, 0, 0)),       # sa
            pl.BlockSpec((1, Sk1, D), lambda b: (b, 0, 0)),     # y1
            pl.BlockSpec((1, Sk2, D), lambda b: (b, 0, 0)),     # y2
            pl.BlockSpec((1, 1, Sk1), lambda b: (b, 0, 0)),     # compact mask 1
            pl.BlockSpec((1, 1, Sk2), lambda b: (b, 0, 0)),     # compact mask 2
            pl.BlockSpec((1, S, 1), lambda b: (b, 0, 0)),       # mask_pad
            # cross-attn 1 weights
            pl.BlockSpec((D, D), full), pl.BlockSpec((1, D), full),
            pl.BlockSpec((D, 2 * D), full), pl.BlockSpec((1, 2 * D), full),
            pl.BlockSpec((D, D), full), pl.BlockSpec((1, D), full),
            pl.BlockSpec((1, D), full), pl.BlockSpec((1, D), full),
            # cross-attn 2 weights
            pl.BlockSpec((D, D), full), pl.BlockSpec((1, D), full),
            pl.BlockSpec((D, 2 * D), full), pl.BlockSpec((1, 2 * D), full),
            pl.BlockSpec((D, D), full), pl.BlockSpec((1, D), full),
            pl.BlockSpec((1, D), full), pl.BlockSpec((1, D), full),
            # gate
            pl.BlockSpec((D, D), full), pl.BlockSpec((D, D), full),
            pl.BlockSpec((1, D), full),
            # FFN
            pl.BlockSpec((D, Dff), full), pl.BlockSpec((1, Dff), full),
            pl.BlockSpec((Dff, D), full), pl.BlockSpec((1, D), full),
            pl.BlockSpec((1, D), full), pl.BlockSpec((1, D), full),
        ],
        out_specs=pl.BlockSpec((1, S, D), lambda b: (b, 0, 0)),
        compiler_params=pltpu.CompilerParams(
            dimension_semantics=("parallel",),
            vmem_limit_bytes=VMEM_LIMIT),
    )(sa, y1, y2, mask_y1, mask_y2, mask_pad,
      p1["wq"], p1["bq"], p1["wkv"], p1["bkv"], p1["wo"], p1["bo"],
      p1["ln_g"], p1["ln_b"],
      p2["wq"], p2["bq"], p2["wkv"], p2["bkv"], p2["wo"], p2["bo"],
      p2["ln_g"], p2["ln_b"],
      pg["wa_top"], pg["wa_bot"], pg["ba"],
      pg["w1"], pg["b1"], pg["w2"], pg["b2"], pg["ln_g"], pg["ln_b"])


def vocab_log_softmax(x, fc_w):
    # TODO(synk): for very large vocabularies, tile over V with an online
    # log-sum-exp pass instead of one full-V block.
    M, D = x.shape
    V = fc_w.shape[1]
    tm = _row_block(M)
    return pl.pallas_call(
        _vocab_logsoftmax_kernel,
        out_shape=jax.ShapeDtypeStruct((M, V), jnp.float32),
        grid=(M // tm,),
        in_specs=[
            pl.BlockSpec((tm, D), lambda i: (i, 0)),
            pl.BlockSpec((D, V), lambda i: (0, 0)),
        ],
        out_specs=pl.BlockSpec((tm, V), lambda i: (i, 0)),
        compiler_params=pltpu.CompilerParams(
            dimension_semantics=("parallel",),
            vmem_limit_bytes=VMEM_LIMIT),
    )(x, fc_w)


# ----------------------------- model forward -----------------------------

def sinusoid_encoding_table(n_position, d_hid, padding_idx=None):
    position = np.arange(n_position, dtype=np.float64)[:, None]
    hid = np.arange(d_hid)[None, :]
    angle = position / np.power(10000.0, 2 * (hid // 2) / d_hid)
    table = np.zeros((n_position, d_hid), np.float32)
    table[:, 0::2] = np.sin(angle[:, 0::2])
    table[:, 1::2] = np.cos(angle[:, 1::2])
    if padding_idx is not None:
        table[padding_idx] = 0.0
    return jnp.asarray(table)


def caption_generator_forward(input_tokens, vis_inputs, params, cfg):
    B, S = input_tokens.shape
    pad_idx, D, H = cfg["pad_idx"], cfg["d_model"], cfg["n_heads"]

    # mask_pad: (B, S, 1) float
    mask_pad = (input_tokens != pad_idx).astype(jnp.float32)[..., None]
    # mask_x: causal + pad-column, (B, S, S) float, 1.0 => masked
    triu = jnp.triu(jnp.ones((S, S), jnp.int32), k=1)
    pad_cols = (input_tokens == pad_idx).astype(jnp.int32)[:, None, :]
    mask_x = ((triu[None, :, :] + pad_cols) > 0).astype(jnp.float32)
    # positions + embeddings (XLA gathers — glue)
    seq = jnp.broadcast_to(jnp.arange(1, S + 1)[None, :], (B, S))
    seq = jnp.where(mask_pad[..., 0] == 0, 0, seq)
    x = params["word_emb"][input_tokens] + params["pos_emb"][seq]

    y1, y2 = vis_inputs["gri_feat"], vis_inputs["reg_feat"]
    # compact (B, 1, n) masks; broadcast over Sq happens inside the kernel.
    mask_y1 = vis_inputs["gri_mask"][:, 0, :, :].astype(jnp.float32)
    mask_y2 = vis_inputs["reg_mask"][:, 0, :, :].astype(jnp.float32)

    for lp in params["layers"]:
        sa = self_mha(x, mask_x, mask_pad, lp["self_att"], H)      # incl. *pad
        x = cross_gate_ffn(sa, y1, y2, mask_y1, mask_y2, mask_pad,
                           lp["vis_att1"], lp["vis_att2"],
                           lp["gate_ffn"], H)

    V = params["fc_w"].shape[1]
    out = vocab_log_softmax(x.reshape(B * S, D), params["fc_w"])
    return out.reshape(B, S, V)


# ----------------------------- parameter init -----------------------------

def _init_w(key, fan_in, fan_out):
    return jax.random.normal(key, (fan_in, fan_out), jnp.float32) / np.sqrt(fan_in)


def _xavier(key, fan_in, fan_out):
    bound = np.sqrt(6.0 / (fan_in + fan_out))
    return jax.random.uniform(key, (fan_in, fan_out), jnp.float32, -bound, bound)


def _init_self_mha(key, D):
    ks = jax.random.split(key, 4)
    wq, wk, wv, wo = (_init_w(k, D, D) for k in ks)
    return {
        "wqkv": jnp.concatenate([wq, wk, wv], axis=1).astype(BF16),
        "bqkv": jnp.zeros((1, 3 * D), jnp.float32),
        "wo": wo.astype(BF16), "bo": jnp.zeros((1, D), jnp.float32),
        "ln_g": jnp.ones((1, D), jnp.float32),
        "ln_b": jnp.zeros((1, D), jnp.float32),
    }


def _init_cross_mha(key, D):
    ks = jax.random.split(key, 4)
    wq, wk, wv, wo = (_init_w(k, D, D) for k in ks)
    return {
        "wq": wq.astype(BF16), "bq": jnp.zeros((1, D), jnp.float32),
        "wkv": jnp.concatenate([wk, wv], axis=1).astype(BF16),
        "bkv": jnp.zeros((1, 2 * D), jnp.float32),
        "wo": wo.astype(BF16), "bo": jnp.zeros((1, D), jnp.float32),
        "ln_g": jnp.ones((1, D), jnp.float32),
        "ln_b": jnp.zeros((1, D), jnp.float32),
    }


def _init_gate_ffn(key, D, Dff):
    ka, k1, k2 = jax.random.split(key, 3)
    wa = _xavier(ka, 2 * D, D)      # fc_alpha1 (fc_alpha2 unused in reference forward)
    w1 = _init_w(k1, D, Dff)
    w2 = _init_w(k2, Dff, D)
    return {
        "wa_top": wa[:D].astype(BF16), "wa_bot": wa[D:].astype(BF16),
        "ba": jnp.zeros((1, D), jnp.float32),
        "w1": w1.astype(BF16), "b1": jnp.zeros((1, Dff), jnp.float32),
        "w2": w2.astype(BF16), "b2": jnp.zeros((1, D), jnp.float32),
        "ln_g": jnp.ones((1, D), jnp.float32),
        "ln_b": jnp.zeros((1, D), jnp.float32),
    }


def _init_layer(key, D, Dff):
    k = jax.random.split(key, 4)
    return {
        "self_att": _init_self_mha(k[0], D),
        "vis_att1": _init_cross_mha(k[1], D),
        "vis_att2": _init_cross_mha(k[2], D),
        "gate_ffn": _init_gate_ffn(k[3], D, Dff),
    }


def init_caption_generator(key, vocab_size, max_len, n_layers, pad_idx,
                           d_model, d_ff):
    ks = jax.random.split(key, n_layers + 2)
    word_emb = jax.random.normal(ks[0], (vocab_size, d_model), jnp.float32) * 0.02
    word_emb = word_emb.at[pad_idx].set(0.0)            # padding_idx row
    fc_w = (_init_w(ks[1], d_model, vocab_size)).astype(BF16)
    layers = [_init_layer(ks[2 + i], d_model, d_ff) for i in range(n_layers)]
    return {
        "word_emb": word_emb,
        "pos_emb": sinusoid_encoding_table(max_len + 1, d_model, 0),
        "layers": layers,
        "fc_w": fc_w,
    }


# TODO(synk): stateful beam-search decoding (register_state running_mask_x /
# running_seq) and dropout are not modeled; this is the eval-mode forward.

# ----------------------------- main -----------------------------

if __name__ == "__main__":
    B, S = 2, 8
    d_model, n_heads, d_ff, n_layers = 128, 4, 256, 2
    vocab_size, max_len, pad_idx = 128, 20, 0
    n_gri, n_reg = 16, 8

    key = jax.random.PRNGKey(0)
    k_par, k_tok, k_gri, k_reg = jax.random.split(key, 4)

    params = init_caption_generator(k_par, vocab_size, max_len, n_layers,
                                    pad_idx, d_model, d_ff)
    cfg = {"pad_idx": pad_idx, "d_model": d_model, "n_heads": n_heads}

    input_tokens = jax.random.randint(k_tok, (B, S), 1, vocab_size,
                                      dtype=jnp.int32)
    vis_inputs = {
        "gri_feat": jax.random.normal(k_gri, (B, n_gri, d_model), jnp.float32),
        "reg_feat": jax.random.normal(k_reg, (B, n_reg, d_model), jnp.float32),
        "gri_mask": jnp.zeros((B, 1, 1, n_gri), jnp.bool_),
        "reg_mask": jnp.zeros((B, 1, 1, n_reg), jnp.bool_),
    }

    fwd = jax.jit(functools.partial(caption_generator_forward, cfg=cfg))
    out = fwd(input_tokens, vis_inputs, params)
    out = jax.block_until_ready(out)

    assert out.shape == (B, S, vocab_size), out.shape
    assert bool(jnp.all(jnp.isfinite(out)))
    # log_softmax rows must sum to ~1 in probability space
    assert bool(jnp.allclose(jnp.sum(jnp.exp(out), axis=-1), 1.0, atol=1e-3))
    print("KERNEL_OK")
</pallas_src>

<mosaic_0001>
module attributes {stable_mosaic.version = 11 : i64} {
  func.func @_vocab_logsoftmax_kernel(%arg0: i32, %arg1: memref<16x128xf32, #tpu.memory_space<vmem>>, %arg2: memref<128x128xbf16, #tpu.memory_space<vmem>>, %arg3: memref<16x128xf32, #tpu.memory_space<vmem>>) attributes {dimension_semantics = [#tpu.dimension_semantics<parallel>], iteration_bounds = array<i64: 1>, scalar_prefetch = 0 : i64, scratch_operands = 0 : i64, tpu.core_type = #tpu.core_type<tc>, window_params = [{transform_indices = @transform_0, window_bounds = array<i64: 16, 128>}, {pipeline_mode = #tpu.pipeline_mode<synchronous>, transform_indices = @transform_1, window_bounds = array<i64: 128, 128>}, {transform_indices = @transform_2, window_bounds = array<i64: 16, 128>}]} {
    %c0 = arith.constant 0 : index
    %c0_0 = arith.constant 0 : index
    %0 = vector.load %arg1[%c0, %c0_0] : memref<16x128xf32, #tpu.memory_space<vmem>>, vector<16x128xf32>
    %1 = arith.truncf %0 : vector<16x128xf32> to vector<16x128xbf16>
    %c0_1 = arith.constant 0 : index
    %c0_2 = arith.constant 0 : index
    %2 = vector.load %arg2[%c0_1, %c0_2] : memref<128x128xbf16, #tpu.memory_space<vmem>>, vector<128x128xbf16>
    %cst = arith.constant dense<0.000000e+00> : vector<16x128xf32>
    %3 = tpu.matmul %1, %2, %cst {dimension_numbers = #tpu.dot_dimension_numbers<[1], [0], [0], [1], [0, 0, 1, 1], [], []>} : vector<16x128xbf16>, vector<128x128xbf16>, vector<16x128xf32> -> vector<16x128xf32>
    %cst_3 = arith.constant dense<0xFF800000> : vector<16xf32>
    %4 = vector.multi_reduction <maximumf>, %3, %cst_3 [1] : vector<16x128xf32> to vector<16xf32>
    %5 = vector.shape_cast %4 : vector<16xf32> to vector<16x1xf32>
    %6 = vector.broadcast %5 : vector<16x1xf32> to vector<16x128xf32>
    %7 = arith.subf %3, %6 : vector<16x128xf32>
    %8 = math.exp %7 : vector<16x128xf32>
    %cst_4 = arith.constant dense<0.000000e+00> : vector<16xf32>
    %9 = vector.multi_reduction <add>, %8, %cst_4 [1] : vector<16x128xf32> to vector<16xf32>
    %10 = vector.shape_cast %9 : vector<16xf32> to vector<16x1xf32>
    %11 = math.log %10 : vector<16x1xf32>
    %12 = vector.broadcast %11 : vector<16x1xf32> to vector<16x128xf32>
    %13 = arith.subf %7, %12 : vector<16x128xf32>
    %c0_5 = arith.constant 0 : index
    %c0_6 = arith.constant 0 : index
    %14 = vector.load %arg3[%c0_5, %c0_6] : memref<16x128xf32, #tpu.memory_space<vmem>>, vector<16x128xf32>
    tpu.vector_store %arg3[%c0_5, %c0_6], %13 {strides = array<i32>} : memref<16x128xf32, #tpu.memory_space<vmem>>, vector<16x128xf32>,
    return
  }
  func.func @transform_0(%arg0: i32) -> (i32, i32) {
    %c0_i32 = arith.constant 0 : i32
    %c0_i32_0 = arith.constant 0 : i32
    return %arg0, %c0_i32 : i32, i32
  }
  func.func @transform_1(%arg0: i32) -> (i32, i32) {
    %c0_i32 = arith.constant 0 : i32
    %c0_i32_0 = arith.constant 0 : i32
    %c0_i32_1 = arith.constant 0 : i32
    return %c0_i32, %c0_i32_0 : i32, i32
  }
  func.func @transform_2(%arg0: i32) -> (i32, i32) {
    %c0_i32 = arith.constant 0 : i32
    %c0_i32_0 = arith.constant 0 : i32
    return %arg0, %c0_i32 : i32, i32
  }
}

module attributes {stable_mosaic.version = 11 : i64} {
  func.func @_self_mha_kernel(%arg0: i32, %arg1: memref<1x8x128xf32, #tpu.memory_space<vmem>>, %arg2: memref<1x8x8xf32, #tpu.memory_space<vmem>>, %arg3: memref<1x8x1xf32, #tpu.memory_space<vmem>>, %arg4: memref<128x384xbf16, #tpu.memory_space<vmem>>, %arg5: memref<1x384xf32, #tpu.memory_space<vmem>>, %arg6: memref<128x128xbf16, #tpu.memory_space<vmem>>, %arg7: memref<1x128xf32, #tpu.memory_space<vmem>>, %arg8: memref<1x128xf32, #tpu.memory_space<vmem>>, %arg9: memref<1x128xf32, #tpu.memory_space<vmem>>, %arg10: memref<1x8x128xf32, #tpu.memory_space<vmem>>) attributes {dimension_semantics = [#tpu.dimension_semantics<parallel>], iteration_bounds = array<i64: 2>, scalar_prefetch = 0 : i64, scratch_operands = 0 : i64, tpu.core_type = #tpu.core_type<tc>, window_params = [{transform_indices = @transform_0, window_bounds = array<i64: 1, 8, 128>}, {transform_indices = @transform_1, window_bounds = array<i64: 1, 8, 8>}, {transform_indices = @transform_2, window_bounds = array<i64: 1, 8, 1>}, {pipeline_mode = #tpu.pipeline_mode<synchronous>, transform_indices = @transform_3, window_bounds = array<i64: 128, 384>}, {pipeline_mode = #tpu.pipeline_mode<synchronous>, transform_indices = @transform_4, window_bounds = array<i64: 1, 384>}, {pipeline_mode = #tpu.pipeline_mode<synchronous>, transform_indices = @transform_5, window_bounds = array<i64: 128, 128>}, {pipeline_mode = #tpu.pipeline_mode<synchronous>, transform_indices = @transform_6, window_bounds = array<i64: 1, 128>}, {pipeline_mode = #tpu.pipeline_mode<synchronous>, transform_indices = @transform_7, window_bounds = array<i64: 1, 128>}, {pipeline_mode = #tpu.pipeline_mode<synchronous>, transform_indices = @transform_8, window_bounds = array<i64: 1, 128>}, {transform_indices = @transform_9, window_bounds = array<i64: 1, 8, 128>}]} {
    %c0 = arith.constant 0 : index
    %c0_0 = arith.constant 0 : index
    %c0_1 = arith.constant 0 : index
    %0 = vector.load %arg1[%c0, %c0_0, %c0_1] : memref<1x8x128xf32, #tpu.memory_space<vmem>>, vector<1x8x128xf32>
    %1 = vector.shape_cast %0 : vector<1x8x128xf32> to vector<8x128xf32>
    %2 = arith.truncf %1 : vector<8x128xf32> to vector<8x128xbf16>
    %c0_2 = arith.constant 0 : index
    %c0_3 = arith.constant 0 : index
    %3 = vector.load %arg4[%c0_2, %c0_3] : memref<128x384xbf16, #tpu.memory_space<vmem>>, vector<128x384xbf16>
    %cst = arith.constant dense<0.000000e+00> : vector<8x384xf32>
    %4 = tpu.matmul %2, %3, %cst {dimension_numbers = #tpu.dot_dimension_numbers<[1], [0], [0], [1], [0, 0, 1, 1], [], []>} : vector<8x128xbf16>, vector<128x384xbf16>, vector<8x384xf32> -> vector<8x384xf32>
    %c0_4 = arith.constant 0 : index
    %c0_5 = arith.constant 0 : index
    %5 = vector.load %arg5[%c0_4, %c0_5] : memref<1x384xf32, #tpu.memory_space<vmem>>, vector<1x384xf32>
    %6 = vector.broadcast %5 : vector<1x384xf32> to vector<8x384xf32>
    %7 = arith.addf %4, %6 : vector<8x384xf32>
    %8 = vector.extract_strided_slice %7 {offsets = [0, 0], sizes = [8, 128], strides = [1, 1]} : vector<8x384xf32> to vector<8x128xf32>
    %9 = vector.extract_strided_slice %7 {offsets = [0, 128], sizes = [8, 128], strides = [1, 1]} : vector<8x384xf32> to vector<8x128xf32>
    %10 = vector.extract_strided_slice %7 {offsets = [0, 256], sizes = [8, 128], strides = [1, 1]} : vector<8x384xf32> to vector<8x128xf32>
    %c0_6 = arith.constant 0 : index
    %c0_7 = arith.constant 0 : index
    %c0_8 = arith.constant 0 : index
    %11 = vector.load %arg2[%c0_6, %c0_7, %c0_8] : memref<1x8x8xf32, #tpu.memory_space<vmem>>, vector<1x8x8xf32>
    %12 = vector.shape_cast %11 : vector<1x8x8xf32> to vector<8x8xf32>
    %13 = vector.extract_strided_slice %8 {offsets = [0, 0], sizes = [8, 32], strides = [1, 1]} : vector<8x128xf32> to vector<8x32xf32>
    %14 = arith.truncf %13 : vector<8x32xf32> to vector<8x32xbf16>
    %15 = vector.extract_strided_slice %9 {offsets = [0, 0], sizes = [8, 32], strides = [1, 1]} : vector<8x128xf32> to vector<8x32xf32>
    %16 = arith.truncf %15 : vector<8x32xf32> to vector<8x32xbf16>
    %17 = vector.extract_strided_slice %10 {offsets = [0, 0], sizes = [8, 32], strides = [1, 1]} : vector<8x128xf32> to vector<8x32xf32>
    %18 = arith.truncf %17 : vector<8x32xf32> to vector<8x32xbf16>
    %cst_9 = arith.constant dense<0.000000e+00> : vector<8x8xf32>
    %19 = tpu.matmul %14, %16, %cst_9 {dimension_numbers = #tpu.dot_dimension_numbers<[1], [1], [0], [0], [0, 0, 1, 0], [], []>} : vector<8x32xbf16>, vector<8x32xbf16>, vector<8x8xf32> -> vector<8x8xf32>
    %cst_10 = arith.constant 0.176776692 : f32
    %20 = vector.broadcast %cst_10 : f32 to vector<8x8xf32>
    %21 = arith.mulf %19, %20 : vector<8x8xf32>
    %cst_11 = arith.constant 5.000000e-01 : f32
    %22 = vector.broadcast %cst_11 : f32 to vector<8x8xf32>
    %23 = arith.cmpf ogt, %12, %22 : vector<8x8xf32>
    %cst_12 = arith.constant -1.000000e+30 : f32
    %24 = vector.broadcast %cst_12 : f32 to vector<8x8xf32>
    %25 = arith.select %23, %24, %21 : vector<8x8xi1>, vector<8x8xf32>
    %cst_13 = arith.constant dense<0xFF800000> : vector<8xf32>
    %26 = vector.multi_reduction <maximumf>, %25, %cst_13 [1] : vector<8x8xf32> to vector<8xf32>
    %27 = vector.shape_cast %26 : vector<8xf32> to vector<8x1xf32>
    %28 = vector.broadcast %27 : vector<8x1xf32> to vector<8x8xf32>
    %29 = arith.subf %25, %28 : vector<8x8xf32>
    %30 = math.exp %29 : vector<8x8xf32>
    %cst_14 = arith.constant dense<0.000000e+00> : vector<8xf32>
    %31 = vector.multi_reduction <add>, %30, %cst_14 [1] : vector<8x8xf32> to vector<8xf32>
    %32 = vector.shape_cast %31 : vector<8xf32> to vector<8x1xf32>
    %33 = vector.broadcast %32 : vector<8x1xf32> to vector<8x8xf32>
    %34 = arith.divf %30, %33 : vector<8x8xf32>
    %35 = arith.truncf %34 : vector<8x8xf32> to vector<8x8xbf16>
    %cst_15 = arith.constant dense<0.000000e+00> : vector<8x32xf32>
    %36 = tpu.matmul %35, %18, %cst_15 {dimension_numbers = #tpu.dot_dimension_numbers<[1], [0], [0], [1], [0, 0, 1, 1], [], []>} : vector<8x8xbf16>, vector<8x32xbf16>, vector<8x32xf32> -> vector<8x32xf32>
    %37 = vector.extract_strided_slice %8 {offsets = [0, 32], sizes = [8, 32], strides = [1, 1]} : vector<8x128xf32> to vector<8x32xf32>
    %38 = arith.truncf %37 : vector<8x32xf32> to vector<8x32xbf16>
    %39 = vector.extract_strided_slice %9 {offsets = [0, 32], sizes = [8, 32], strides = [1, 1]} : vector<8x128xf32> to vector<8x32xf32>
    %40 = arith.truncf %39 : vector<8x32xf32> to vector<8x32xbf16>
    %41 = vector.extract_strided_slice %10 {offsets = [0, 32], sizes = [8, 32], strides = [1, 1]} : vector<8x128xf32> to vector<8x32xf32>
    %42 = arith.truncf %41 : vector<8x32xf32> to vector<8x32xbf16>
    %cst_16 = arith.constant dense<0.000000e+00> : vector<8x8xf32>
    %43 = tpu.matmul %38, %40, %cst_16 {dimension_numbers = #tpu.dot_dimension_numbers<[1], [1], [0], [0], [0, 0, 1, 0], [], []>} : vector<8x32xbf16>, vector<8x32xbf16>, vector<8x8xf32> -> vector<8x8xf32>
    %cst_17 = arith.constant 0.176776692 : f32
    %44 = vector.broadcast %cst_17 : f32 to vector<8x8xf32>
    %45 = arith.mulf %43, %44 : vector<8x8xf32>
    %cst_18 = arith.constant 5.000000e-01 : f32
    %46 = vector.broadcast %cst_18 : f32 to vector<8x8xf32>
    %47 = arith.cmpf ogt, %12, %46 : vector<8x8xf32>
    %cst_19 = arith.constant -1.000000e+30 : f32
    %48 = vector.broadcast %cst_19 : f32 to vector<8x8xf32>
    %49 = arith.select %47, %48, %45 : vector<8x8xi1>, vector<8x8xf32>
    %cst_20 = arith.constant dense<0xFF800000> : vector<8xf32>
    %50 = vector.multi_reduction <maximumf>, %49, %cst_20 [1] : vector<8x8xf32> to vector<8xf32>
    %51 = vector.shape_cast %50 : vector<8xf32> to vector<8x1xf32>
    %52 = vector.broadcast %51 : vector<8x1xf32> to vector<8x8xf32>
    %53 = arith.subf %49, %52 : vector<8x8xf32>
    %54 = math.exp %53 : vector<8x8xf32>
    %cst_21 = arith.constant dense<0.000000e+00> : vector<8xf32>
    %55 = vector.multi_reduction <add>, %54, %cst_21 [1] : vector<8x8xf32> to vector<8xf32>
    %56 = vector.shape_cast %55 : vector<8xf32> to vector<8x1xf32>
    %57 = vector.broadcast %56 : vector<8x1xf32> to vector<8x8xf32>
    %58 = arith.divf %54, %57 : vector<8x8xf32>
    %59 = arith.truncf %58 : vector<8x8xf32> to vector<8x8xbf16>
    %cst_22 = arith.constant dense<0.000000e+00> : vector<8x32xf32>
    %60 = tpu.matmul %59, %42, %cst_22 {dimension_numbers = #tpu.dot_dimension_numbers<[1], [0], [0], [1], [0, 0, 1, 1], [], []>} : vector<8x8xbf16>, vector<8x32xbf16>, vector<8x32xf32> -> vector<8x32xf32>
    %61 = vector.extract_strided_slice %8 {offsets = [0, 64], sizes = [8, 32], strides = [1, 1]} : vector<8x128xf32> to vector<8x32xf32>
    %62 = arith.truncf %61 : vector<8x32xf32> to vector<8x32xbf16>
    %63 = vector.extract_strided_slice %9 {offsets = [0, 64], sizes = [8, 32], strides = [1, 1]} : vector<8x128xf32> to vector<8x32xf32>
    %64 = arith.truncf %63 : vector<8x32xf32> to vector<8x32xbf16>
    %65 = vector.extract_strided_slice %10 {offsets = [0, 64], sizes = [8, 32], strides = [1, 1]} : vector<8x128xf32> to vector<8x32xf32>
    %66 = arith.truncf %65 : vector<8x32xf32> to vector<8x32xbf16>
    %cst_23 = arith.constant dense<0.000000e+00> : vector<8x8xf32>
    %67 = tpu.matmul %62, %64, %cst_23 {dimension_numbers = #tpu.dot_dimension_numbers<[1], [1], [0], [0], [0, 0, 1, 0], [], []>} : vector<8x32xbf16>, vector<8x32xbf16>, vector<8x8xf32> -> vector<8x8xf32>
    %cst_24 = arith.constant 0.176776692 : f32
    %68 = vector.broadcast %cst_24 : f32 to vector<8x8xf32>
    %69 = arith.mulf %67, %68 : vector<8x8xf32>
    %cst_25 = arith.constant 5.000000e-01 : f32
    %70 = vector.broadcast %cst_25 : f32 to vector<8x8xf32>
    %71 = arith.cmpf ogt, %12, %70 : vector<8x8xf32>
    %cst_26 = arith.constant -1.000000e+30 : f32
    %72 = vector.broadcast %cst_26 : f32 to vector<8x8xf32>
    %73 = arith.select %71, %72, %69 : vector<8x8xi1>, vector<8x8xf32>
    %cst_27 = arith.constant dense<0xFF800000> : vector<8xf32>
    %74 = vector.multi_reduction <maximumf>, %73, %cst_27 [1] : vector<8x8xf32> to vector<8xf32>
    %75 = vector.shape_cast %74 : vector<8xf32> to vector<8x1xf32>
    %76 = vector.broadcast %75 : vector<8x1xf32> to vector<8x8xf32>
    %77 = arith.subf %73, %76 : vector<8x8xf32>
    %78 = math.exp %77 : vector<8x8xf32>
    %cst_28 = arith.constant dense<0.000000e+00> : vector<8xf32>
    %79 = vector.multi_reduction <add>, %78, %cst_28 [1] : vector<8x8xf32> to vector<8xf32>
    %80 = vector.shape_cast %79 : vector<8xf32> to vector<8x1xf32>
    %81 = vector.broadcast %80 : vector<8x1xf32> to vector<8x8xf32>
    %82 = arith.divf %78, %81 : vector<8x8xf32>
    %83 = arith.truncf %82 : vector<8x8xf32> to vector<8x8xbf16>
    %cst_29 = arith.constant dense<0.000000e+00> : vector<8x32xf32>
    %84 = tpu.matmul %83, %66, %cst_29 {dimension_numbers = #tpu.dot_dimension_numbers<[1], [0], [0], [1], [0, 0, 1, 1], [], []>} : vector<8x8xbf16>, vector<8x32xbf16>, vector<8x32xf32> -> vector<8x32xf32>
    %85 = vector.extract_strided_slice %8 {offsets = [0, 96], sizes = [8, 32], strides = [1, 1]} : vector<8x128xf32> to vector<8x32xf32>
    %86 = arith.truncf %85 : vector<8x32xf32> to vector<8x32xbf16>
    %87 = vector.extract_strided_slice %9 {offsets = [0, 96], sizes = [8, 32], strides = [1, 1]} : vector<8x128xf32> to vector<8x32xf32>
    %88 = arith.truncf %87 : vector<8x32xf32> to vector<8x32xbf16>
    %89 = vector.extract_strided_slice %10 {offsets = [0, 96], sizes = [8, 32], strides = [1, 1]} : vector<8x128xf32> to vector<8x32xf32>
    %90 = arith.truncf %89 : vector<8x32xf32> to vector<8x32xbf16>
    %cst_30 = arith.constant dense<0.000000e+00> : vector<8x8xf32>
    %91 = tpu.matmul %86, %88, %cst_30 {dimension_numbers = #tpu.dot_dimension_numbers<[1], [1], [0], [0], [0, 0, 1, 0], [], []>} : vector<8x32xbf16>, vector<8x32xbf16>, vector<8x8xf32> -> vector<8x8xf32>
    %cst_31 = arith.constant 0.176776692 : f32
    %92 = vector.broadcast %cst_31 : f32 to vector<8x8xf32>
    %93 = arith.mulf %91, %92 : vector<8x8xf32>
    %cst_32 = arith.constant 5.000000e-01 : f32
    %94 = vector.broadcast %cst_32 : f32 to vector<8x8xf32>
    %95 = arith.cmpf ogt, %12, %94 : vector<8x8xf32>
    %cst_33 = arith.constant -1.000000e+30 : f32
    %96 = vector.broadcast %cst_33 : f32 to vector<8x8xf32>
    %97 = arith.select %95, %96, %93 : vector<8x8xi1>, vector<8x8xf32>
    %cst_34 = arith.constant dense<0xFF800000> : vector<8xf32>
    %98 = vector.multi_reduction <maximumf>, %97, %cst_34 [1] : vector<8x8xf32> to vector<8xf32>
    %99 = vector.shape_cast %98 : vector<8xf32> to vector<8x1xf32>
    %100 = vector.broadcast %99 : vector<8x1xf32> to vector<8x8xf32>
    %101 = arith.subf %97, %100 : vector<8x8xf32>
    %102 = math.exp %101 : vector<8x8xf32>
    %cst_35 = arith.constant dense<0.000000e+00> : vector<8xf32>
    %103 = vector.multi_reduction <add>, %102, %cst_35 [1] : vector<8x8xf32> to vector<8xf32>
    %104 = vector.shape_cast %103 : vector<8xf32> to vector<8x1xf32>
    %105 = vector.broadcast %104 : vector<8x1xf32> to vector<8x8xf32>
    %106 = arith.divf %102, %105 : vector<8x8xf32>
    %107 = arith.truncf %106 : vector<8x8xf32> to vector<8x8xbf16>
    %cst_36 = arith.constant dense<0.000000e+00> : vector<8x32xf32>
    %108 = tpu.matmul %107, %90, %cst_36 {dimension_numbers = #tpu.dot_dimension_numbers<[1], [0], [0], [1], [0, 0, 1, 1], [], []>} : vector<8x8xbf16>, vector<8x32xbf16>, vector<8x32xf32> -> vector<8x32xf32>
    %109 = tpu.concatenate %36, %60, %84, %108 in 1 : vector<8x32xf32>, vector<8x32xf32>, vector<8x32xf32>, vector<8x32xf32> -> vector<8x128xf32>
    %110 = arith.truncf %109 : vector<8x128xf32> to vector<8x128xbf16>
    %c0_37 = arith.constant 0 : index
    %c0_38 = arith.constant 0 : index
    %111 = vector.load %arg6[%c0_37, %c0_38] : memref<128x128xbf16, #tpu.memory_space<vmem>>, vector<128x128xbf16>
    %cst_39 = arith.constant dense<0.000000e+00> : vector<8x128xf32>
    %112 = tpu.matmul %110, %111, %cst_39 {dimension_numbers = #tpu.dot_dimension_numbers<[1], [0], [0], [1], [0, 0, 1, 1], [], []>} : vector<8x128xbf16>, vector<128x128xbf16>, vector<8x128xf32> -> vector<8x128xf32>
    %c0_40 = arith.constant 0 : index
    %c0_41 = arith.constant 0 : index
    %113 = vector.load %arg7[%c0_40, %c0_41] : memref<1x128xf32, #tpu.memory_space<vmem>>, vector<1x128xf32>
    %114 = vector.broadcast %113 : vector<1x128xf32> to vector<8x128xf32>
    %115 = arith.addf %112, %114 : vector<8x128xf32>
    %116 = arith.addf %1, %115 : vector<8x128xf32>
    %c0_42 = arith.constant 0 : index
    %c0_43 = arith.constant 0 : index
    %117 = vector.load %arg8[%c0_42, %c0_43] : memref<1x128xf32, #tpu.memory_space<vmem>>, vector<1x128xf32>
    %c0_44 = arith.constant 0 : index
    %c0_45 = arith.constant 0 : index
    %118 = vector.load %arg9[%c0_44, %c0_45] : memref<1x128xf32, #tpu.memory_space<vmem>>, vector<1x128xf32>
    %cst_46 = arith.constant dense<0.000000e+00> : vector<8xf32>
    %119 = vector.multi_reduction <add>, %116, %cst_46 [1] : vector<8x128xf32> to vector<8xf32>
    %120 = vector.shape_cast %119 : vector<8xf32> to vector<8x1xf32>
    %cst_47 = arith.constant 1.280000e+02 : f32
    %121 = vector.broadcast %cst_47 : f32 to vector<8x1xf32>
    %122 = arith.divf %120, %121 : vector<8x1xf32>
    %123 = vector.broadcast %122 : vector<8x1xf32> to vector<8x128xf32>
    %124 = arith.subf %116, %123 : vector<8x128xf32>
    %125 = arith.mulf %124, %124 : vector<8x128xf32>
    %cst_48 = arith.constant dense<0.000000e+00> : vector<8xf32>
    %126 = vector.multi_reduction <add>, %125, %cst_48 [1] : vector<8x128xf32> to vector<8xf32>
    %127 = vector.shape_cast %126 : vector<8xf32> to vector<8x1xf32>
    %cst_49 = arith.constant 1.280000e+02 : f32
    %128 = vector.broadcast %cst_49 : f32 to vector<8x1xf32>
    %129 = arith.divf %127, %128 : vector<8x1xf32>
    %cst_50 = arith.constant 9.99999974E-6 : f32
    %130 = vector.broadcast %cst_50 : f32 to vector<8x1xf32>
    %131 = arith.addf %129, %130 : vector<8x1xf32>
    %132 = math.rsqrt %131 : vector<8x1xf32>
    %133 = vector.broadcast %132 : vector<8x1xf32> to vector<8x128xf32>
    %134 = arith.mulf %124, %133 : vector<8x128xf32>
    %135 = vector.broadcast %117 : vector<1x128xf32> to vector<8x128xf32>
    %136 = arith.mulf %134, %135 : vector<8x128xf32>
    %137 = vector.broadcast %118 : vector<1x128xf32> to vector<8x128xf32>
    %138 = arith.addf %136, %137 : vector<8x128xf32>
    %c0_51 = arith.constant 0 : index
    %c0_52 = arith.constant 0 : index
    %c0_53 = arith.constant 0 : index
    %139 = vector.load %arg3[%c0_51, %c0_52, %c0_53] : memref<1x8x1xf32, #tpu.memory_space<vmem>>, vector<1x8x1xf32>
    %140 = vector.shape_cast %139 : vector<1x8x1xf32> to vector<8x1xf32>
    %141 = vector.broadcast %140 : vector<8x1xf32> to vector<8x128xf32>
    %142 = arith.mulf %138, %141 : vector<8x128xf32>
    %c0_54 = arith.constant 0 : index
    %c0_55 = arith.constant 0 : index
    %c0_56 = arith.constant 0 : index
    %143 = vector.load %arg10[%c0_54, %c0_55, %c0_56] : memref<1x8x128xf32, #tpu.memory_space<vmem>>, vector<1x8x128xf32>
    %144 = vector.shape_cast %143 : vector<1x8x128xf32> to vector<8x128xf32>
    %145 = vector.shape_cast %142 : vector<8x128xf32> to vector<1x8x128xf32>
    tpu.vector_store %arg10[%c0_54, %c0_55, %c0_56], %145 {strides = array<i32>} : memref<1x8x128xf32, #tpu.memory_space<vmem>>, vector<1x8x128xf32>,
    return
  }
  func.func @transform_0(%arg0: i32) -> (i32, i32, i32) {
    %c0_i32 = arith.constant 0 : i32
    %c0_i32_0 = arith.constant 0 : i32
    %c0_i32_1 = arith.constant 0 : i32
    return %arg0, %c0_i32, %c0_i32_0 : i32, i32, i32
  }
  func.func @transform_1(%arg0: i32) -> (i32, i32, i32) {
    %c0_i32 = arith.constant 0 : i32
    %c0_i32_0 = arith.constant 0 : i32
    %c0_i32_1 = arith.constant 0 : i32
    return %arg0, %c0_i32, %c0_i32_0 : i32, i32, i32
  }
  func.func @transform_2(%arg0: i32) -> (i32, i32, i32) {
    %c0_i32 = arith.constant 0 : i32
    %c0_i32_0 = arith.constant 0 : i32
    %c0_i32_1 = arith.constant 0 : i32
    return %arg0, %c0_i32, %c0_i32_0 : i32, i32, i32
  }
  func.func @transform_3(%arg0: i32) -> (i32, i32) {
    %c0_i32 = arith.constant 0 : i32
    %c0_i32_0 = arith.constant 0 : i32
    %c0_i32_1 = arith.constant 0 : i32
    return %c0_i32, %c0_i32_0 : i32, i32
  }
  func.func @transform_4(%arg0: i32) -> (i32, i32) {
    %c0_i32 = arith.constant 0 : i32
    %c0_i32_0 = arith.constant 0 : i32
    %c0_i32_1 = arith.constant 0 : i32
    return %c0_i32, %c0_i32_0 : i32, i32
  }
  func.func @transform_5(%arg0: i32) -> (i32, i32) {
    %c0_i32 = arith.constant 0 : i32
    %c0_i32_0 = arith.constant 0 : i32
    %c0_i32_1 = arith.constant 0 : i32
    return %c0_i32, %c0_i32_0 : i32, i32
  }
  func.func @transform_6(%arg0: i32) -> (i32, i32) {
    %c0_i32 = arith.constant 0 : i32
    %c0_i32_0 = arith.constant 0 : i32
    %c0_i32_1 = arith.constant 0 : i32
    return %c0_i32, %c0_i32_0 : i32, i32
  }
  func.func @transform_7(%arg0: i32) -> (i32, i32) {
    %c0_i32 = arith.constant 0 : i32
    %c0_i32_0 = arith.constant 0 : i32
    %c0_i32_1 = arith.constant 0 : i32
    return %c0_i32, %c0_i32_0 : i32, i32
  }
  func.func @transform_8(%arg0: i32) -> (i32, i32) {
    %c0_i32 = arith.constant 0 : i32
    %c0_i32_0 = arith.constant 0 : i32
    %c0_i32_1 = arith.constant 0 : i32
    return %c0_i32, %c0_i32_0 : i32, i32
  }
  func.func @transform_9(%arg0: i32) -> (i32, i32, i32) {
    %c0_i32 = arith.constant 0 : i32
    %c0_i32_0 = arith.constant 0 : i32
    %c0_i32_1 = arith.constant 0 : i32
    return %arg0, %c0_i32, %c0_i32_0 : i32, i32, i32
  }
}

module attributes {stable_mosaic.version = 11 : i64} {
  func.func @_cross_gate_ffn_kernel(%arg0: i32, %arg1: memref<1x8x128xf32, #tpu.memory_space<vmem>>, %arg2: memref<1x16x128xf32, #tpu.memory_space<vmem>>, %arg3: memref<1x8x128xf32, #tpu.memory_space<vmem>>, %arg4: memref<1x1x16xf32, #tpu.memory_space<vmem>>, %arg5: memref<1x1x8xf32, #tpu.memory_space<vmem>>, %arg6: memref<1x8x1xf32, #tpu.memory_space<vmem>>, %arg7: memref<128x128xbf16, #tpu.memory_space<vmem>>, %arg8: memref<1x128xf32, #tpu.memory_space<vmem>>, %arg9: memref<128x256xbf16, #tpu.memory_space<vmem>>, %arg10: memref<1x256xf32, #tpu.memory_space<vmem>>, %arg11: memref<128x128xbf16, #tpu.memory_space<vmem>>, %arg12: memref<1x128xf32, #tpu.memory_space<vmem>>, %arg13: memref<1x128xf32, #tpu.memory_space<vmem>>, %arg14: memref<1x128xf32, #tpu.memory_space<vmem>>, %arg15: memref<128x128xbf16, #tpu.memory_space<vmem>>, %arg16: memref<1x128xf32, #tpu.memory_space<vmem>>, %arg17: memref<128x256xbf16, #tpu.memory_space<vmem>>, %arg18: memref<1x256xf32, #tpu.memory_space<vmem>>, %arg19: memref<128x128xbf16, #tpu.memory_space<vmem>>, %arg20: memref<1x128xf32, #tpu.memory_space<vmem>>, %arg21: memref<1x128xf32, #tpu.memory_space<vmem>>, %arg22: memref<1x128xf32, #tpu.memory_space<vmem>>, %arg23: memref<128x128xbf16, #tpu.memory_space<vmem>>, %arg24: memref<128x128xbf16, #tpu.memory_space<vmem>>, %arg25: memref<1x128xf32, #tpu.memory_space<vmem>>, %arg26: memref<128x256xbf16, #tpu.memory_space<vmem>>, %arg27: memref<1x256xf32, #tpu.memory_space<vmem>>, %arg28: memref<256x128xbf16, #tpu.memory_space<vmem>>, %arg29: memref<1x128xf32, #tpu.memory_space<vmem>>, %arg30: memref<1x128xf32, #tpu.memory_space<vmem>>, %arg31: memref<1x128xf32, #tpu.memory_space<vmem>>, %arg32: memref<1x8x128xf32, #tpu.memory_space<vmem>>) attributes {dimension_semantics = [#tpu.dimension_semantics<parallel>], iteration_bounds = array<i64: 2>, scalar_prefetch = 0 : i64, scratch_operands = 0 : i64, tpu.core_type = #tpu.core_type<tc>, window_params = [{transform_indices = @transform_0, window_bounds = array<i64: 1, 8, 128>}, {transform_indices = @transform_1, window_bounds = array<i64: 1, 16, 128>}, {transform_indices = @transform_2, window_bounds = array<i64: 1, 8, 128>}, {transform_indices = @transform_3, window_bounds = array<i64: 1, 1, 16>}, {transform_indices = @transform_4, window_bounds = array<i64: 1, 1, 8>}, {transform_indices = @transform_5, window_bounds = array<i64: 1, 8, 1>}, {pipeline_mode = #tpu.pipeline_mode<synchronous>, transform_indices = @transform_6, window_bounds = array<i64: 128, 128>}, {pipeline_mode = #tpu.pipeline_mode<synchronous>, transform_indices = @transform_7, window_bounds = array<i64: 1, 128>}, {pipeline_mode = #tpu.pipeline_mode<synchronous>, transform_indices = @transform_8, window_bounds = array<i64: 128, 256>}, {pipeline_mode = #tpu.pipeline_mode<synchronous>, transform_indices = @transform_9, window_bounds = array<i64: 1, 256>}, {pipeline_mode = #tpu.pipeline_mode<synchronous>, transform_indices = @transform_10, window_bounds = array<i64: 128, 128>}, {pipeline_mode = #tpu.pipeline_mode<synchronous>, transform_indices = @transform_11, window_bounds = array<i64: 1, 128>}, {pipeline_mode = #tpu.pipeline_mode<synchronous>, transform_indices = @transform_12, window_bounds = array<i64: 1, 128>}, {pipeline_mode = #tpu.pipeline_mode<synchronous>, transform_indices = @transform_13, window_bounds = array<i64: 1, 128>}, {pipeline_mode = #tpu.pipeline_mode<synchronous>, transform_indices = @transform_14, window_bounds = array<i64: 128, 128>}, {pipeline_mode = #tpu.pipeline_mode<synchronous>, transform_indices = @transform_15, window_bounds = array<i64: 1, 128>}, {pipeline_mode = #tpu.pipeline_mode<synchronous>, transform_indices = @transform_16, window_bounds = array<i64: 128, 256>}, {pipeline_mode = #tpu.pipeline_mode<synchronous>, transform_indices = @transform_17, window_bounds = array<i64: 1, 256>}, {pipeline_mode = #tpu.pipeline_mode<synchronous>, transform_indices = @transform_18, window_bounds = array<i64: 128, 128>}, {pipeline_mode = #tpu.pipeline_mode<synchronous>, transform_indices = @transform_19, window_bounds = array<i64: 1, 128>}, {pipeline_mode = #tpu.pipeline_mode<synchronous>, transform_indices = @transform_20, window_bounds = array<i64: 1, 128>}, {pipeline_mode = #tpu.pipeline_mode<synchronous>, transform_indices = @transform_21, window_bounds = array<i64: 1, 128>}, {pipeline_mode = #tpu.pipeline_mode<synchronous>, transform_indices = @transform_22, window_bounds = array<i64: 128, 128>}, {pipeline_mode = #tpu.pipeline_mode<synchronous>, transform_indices = @transform_23, window_bounds = array<i64: 128, 128>}, {pipeline_mode = #tpu.pipeline_mode<synchronous>, transform_indices = @transform_24, window_bounds = array<i64: 1, 128>}, {pipeline_mode = #tpu.pipeline_mode<synchronous>, transform_indices = @transform_25, window_bounds = array<i64: 128, 256>}, {pipeline_mode = #tpu.pipeline_mode<synchronous>, transform_indices = @transform_26, window_bounds = array<i64: 1, 256>}, {pipeline_mode = #tpu.pipeline_mode<synchronous>, transform_indices = @transform_27, window_bounds = array<i64: 256, 128>}, {pipeline_mode = #tpu.pipeline_mode<synchronous>, transform_indices = @transform_28, window_bounds = array<i64: 1, 128>}, {pipeline_mode = #tpu.pipeline_mode<synchronous>, transform_indices = @transform_29, window_bounds = array<i64: 1, 128>}, {pipeline_mode = #tpu.pipeline_mode<synchronous>, transform_indices = @transform_30, window_bounds = array<i64: 1, 128>}, {transform_indices = @transform_31, window_bounds = array<i64: 1, 8, 128>}]} {
    %c0 = arith.constant 0 : index
    %c0_0 = arith.constant 0 : index
    %c0_1 = arith.constant 0 : index
    %0 = vector.load %arg1[%c0, %c0_0, %c0_1] : memref<1x8x128xf32, #tpu.memory_space<vmem>>, vector<1x8x128xf32>
    %1 = vector.shape_cast %0 : vector<1x8x128xf32> to vector<8x128xf32>
    %c0_2 = arith.constant 0 : index
    %c0_3 = arith.constant 0 : index
    %c0_4 = arith.constant 0 : index
    %2 = vector.load %arg6[%c0_2, %c0_3, %c0_4] : memref<1x8x1xf32, #tpu.memory_space<vmem>>, vector<1x8x1xf32>
    %3 = vector.shape_cast %2 : vector<1x8x1xf32> to vector<8x1xf32>
    %4 = arith.truncf %1 : vector<8x128xf32> to vector<8x128xbf16>
    %c0_5 = arith.constant 0 : index
    %c0_6 = arith.constant 0 : index
    %c0_7 = arith.constant 0 : index
    %5 = vector.load %arg2[%c0_5, %c0_6, %c0_7] : memref<1x16x128xf32, #tpu.memory_space<vmem>>, vector<1x16x128xf32>
    %6 = vector.shape_cast %5 : vector<1x16x128xf32> to vector<16x128xf32>
    %c0_8 = arith.constant 0 : index
    %c0_9 = arith.constant 0 : index
    %c0_10 = arith.constant 0 : index
    %7 = vector.load %arg4[%c0_8, %c0_9, %c0_10] : memref<1x1x16xf32, #tpu.memory_space<vmem>>, vector<1x1x16xf32>
    %8 = vector.shape_cast %7 : vector<1x1x16xf32> to vector<1x16xf32>
    %c0_11 = arith.constant 0 : index
    %c0_12 = arith.constant 0 : index
    %9 = vector.load %arg7[%c0_11, %c0_12] : memref<128x128xbf16, #tpu.memory_space<vmem>>, vector<128x128xbf16>
    %c0_13 = arith.constant 0 : index
    %c0_14 = arith.constant 0 : index
    %10 = vector.load %arg8[%c0_13, %c0_14] : memref<1x128xf32, #tpu.memory_space<vmem>>, vector<1x128xf32>
    %c0_15 = arith.constant 0 : index
    %c0_16 = arith.constant 0 : index
    %11 = vector.load %arg9[%c0_15, %c0_16] : memref<128x256xbf16, #tpu.memory_space<vmem>>, vector<128x256xbf16>
    %c0_17 = arith.constant 0 : index
    %c0_18 = arith.constant 0 : index
    %12 = vector.load %arg10[%c0_17, %c0_18] : memref<1x256xf32, #tpu.memory_space<vmem>>, vector<1x256xf32>
    %c0_19 = arith.constant 0 : index
    %c0_20 = arith.constant 0 : index
    %13 = vector.load %arg11[%c0_19, %c0_20] : memref<128x128xbf16, #tpu.memory_space<vmem>>, vector<128x128xbf16>
    %c0_21 = arith.constant 0 : index
    %c0_22 = arith.constant 0 : index
    %14 = vector.load %arg12[%c0_21, %c0_22] : memref<1x128xf32, #tpu.memory_space<vmem>>, vector<1x128xf32>
    %c0_23 = arith.constant 0 : index
    %c0_24 = arith.constant 0 : index
    %15 = vector.load %arg13[%c0_23, %c0_24] : memref<1x128xf32, #tpu.memory_space<vmem>>, vector<1x128xf32>
    %c0_25 = arith.constant 0 : index
    %c0_26 = arith.constant 0 : index
    %16 = vector.load %arg14[%c0_25, %c0_26] : memref<1x128xf32, #tpu.memory_space<vmem>>, vector<1x128xf32>
    %cst = arith.constant dense<0.000000e+00> : vector<8x128xf32>
    %17 = tpu.matmul %4, %9, %cst {dimension_numbers = #tpu.dot_dimension_numbers<[1], [0], [0], [1], [0, 0, 1, 1], [], []>} : vector<8x128xbf16>, vector<128x128xbf16>, vector<8x128xf32> -> vector<8x128xf32>
    %18 = vector.broadcast %10 : vector<1x128xf32> to vector<8x128xf32>
    %19 = arith.addf %17, %18 : vector<8x128xf32>
    %20 = arith.truncf %6 : vector<16x128xf32> to vector<16x128xbf16>
    %cst_27 = arith.constant dense<0.000000e+00> : vector<16x256xf32>
    %21 = tpu.matmul %20, %11, %cst_27 {dimension_numbers = #tpu.dot_dimension_numbers<[1], [0], [0], [1], [0, 0, 1, 1], [], []>} : vector<16x128xbf16>, vector<128x256xbf16>, vector<16x256xf32> -> vector<16x256xf32>
    %22 = vector.broadcast %12 : vector<1x256xf32> to vector<16x256xf32>
    %23 = arith.addf %21, %22 : vector<16x256xf32>
    %24 = vector.extract_strided_slice %23 {offsets = [0, 0], sizes = [16, 128], strides = [1, 1]} : vector<16x256xf32> to vector<16x128xf32>
    %25 = vector.extract_strided_slice %23 {offsets = [0, 128], sizes = [16, 128], strides = [1, 1]} : vector<16x256xf32> to vector<16x128xf32>
    %26 = vector.shape_cast %8 : vector<1x16xf32> to vector<1x16xf32>
    %27 = vector.broadcast %26 : vector<1x16xf32> to vector<8x16xf32>
    %28 = vector.extract_strided_slice %19 {offsets = [0, 0], sizes = [8, 32], strides = [1, 1]} : vector<8x128xf32> to vector<8x32xf32>
    %29 = arith.truncf %28 : vector<8x32xf32> to vector<8x32xbf16>
    %30 = vector.extract_strided_slice %24 {offsets = [0, 0], sizes = [16, 32], strides = [1, 1]} : vector<16x128xf32> to vector<16x32xf32>
    %31 = arith.truncf %30 : vector<16x32xf32> to vector<16x32xbf16>
    %32 = vector.extract_strided_slice %25 {offsets = [0, 0], sizes = [16, 32], strides = [1, 1]} : vector<16x128xf32> to vector<16x32xf32>
    %33 = arith.truncf %32 : vector<16x32xf32> to vector<16x32xbf16>
    %cst_28 = arith.constant dense<0.000000e+00> : vector<8x16xf32>
    %34 = tpu.matmul %29, %31, %cst_28 {dimension_numbers = #tpu.dot_dimension_numbers<[1], [1], [0], [0], [0, 0, 1, 0], [], []>} : vector<8x32xbf16>, vector<16x32xbf16>, vector<8x16xf32> -> vector<8x16xf32>
    %cst_29 = arith.constant 0.176776692 : f32
    %35 = vector.broadcast %cst_29 : f32 to vector<8x16xf32>
    %36 = arith.mulf %34, %35 : vector<8x16xf32>
    %cst_30 = arith.constant 5.000000e-01 : f32
    %37 = vector.broadcast %cst_30 : f32 to vector<8x16xf32>
    %38 = arith.cmpf ogt, %27, %37 : vector<8x16xf32>
    %cst_31 = arith.constant -1.000000e+30 : f32
    %39 = vector.broadcast %cst_31 : f32 to vector<8x16xf32>
    %40 = arith.select %38, %39, %36 : vector<8x16xi1>, vector<8x16xf32>
    %cst_32 = arith.constant dense<0xFF800000> : vector<8xf32>
    %41 = vector.multi_reduction <maximumf>, %40, %cst_32 [1] : vector<8x16xf32> to vector<8xf32>
    %42 = vector.shape_cast %41 : vector<8xf32> to vector<8x1xf32>
    %43 = vector.broadcast %42 : vector<8x1xf32> to vector<8x16xf32>
    %44 = arith.subf %40, %43 : vector<8x16xf32>
    %45 = math.exp %44 : vector<8x16xf32>
    %cst_33 = arith.constant dense<0.000000e+00> : vector<8xf32>
    %46 = vector.multi_reduction <add>, %45, %cst_33 [1] : vector<8x16xf32> to vector<8xf32>
    %47 = vector.shape_cast %46 : vector<8xf32> to vector<8x1xf32>
    %48 = vector.broadcast %47 : vector<8x1xf32> to vector<8x16xf32>
    %49 = arith.divf %45, %48 : vector<8x16xf32>
    %50 = arith.truncf %49 : vector<8x16xf32> to vector<8x16xbf16>
    %cst_34 = arith.constant dense<0.000000e+00> : vector<8x32xf32>
    %51 = tpu.matmul %50, %33, %cst_34 {dimension_numbers = #tpu.dot_dimension_numbers<[1], [0], [0], [1], [0, 0, 1, 1], [], []>} : vector<8x16xbf16>, vector<16x32xbf16>, vector<8x32xf32> -> vector<8x32xf32>
    %52 = vector.extract_strided_slice %19 {offsets = [0, 32], sizes = [8, 32], strides = [1, 1]} : vector<8x128xf32> to vector<8x32xf32>
    %53 = arith.truncf %52 : vector<8x32xf32> to vector<8x32xbf16>
    %54 = vector.extract_strided_slice %24 {offsets = [0, 32], sizes = [16, 32], strides = [1, 1]} : vector<16x128xf32> to vector<16x32xf32>
    %55 = arith.truncf %54 : vector<16x32xf32> to vector<16x32xbf16>
    %56 = vector.extract_strided_slice %25 {offsets = [0, 32], sizes = [16, 32], strides = [1, 1]} : vector<16x128xf32> to vector<16x32xf32>
    %57 = arith.truncf %56 : vector<16x32xf32> to vector<16x32xbf16>
    %cst_35 = arith.constant dense<0.000000e+00> : vector<8x16xf32>
    %58 = tpu.matmul %53, %55, %cst_35 {dimension_numbers = #tpu.dot_dimension_numbers<[1], [1], [0], [0], [0, 0, 1, 0], [], []>} : vector<8x32xbf16>, vector<16x32xbf16>, vector<8x16xf32> -> vector<8x16xf32>
    %cst_36 = arith.constant 0.176776692 : f32
    %59 = vector.broadcast %cst_36 : f32 to vector<8x16xf32>
    %60 = arith.mulf %58, %59 : vector<8x16xf32>
    %cst_37 = arith.constant 5.000000e-01 : f32
    %61 = vector.broadcast %cst_37 : f32 to vector<8x16xf32>
    %62 = arith.cmpf ogt, %27, %61 : vector<8x16xf32>
    %cst_38 = arith.constant -1.000000e+30 : f32
    %63 = vector.broadcast %cst_38 : f32 to vector<8x16xf32>
    %64 = arith.select %62, %63, %60 : vector<8x16xi1>, vector<8x16xf32>
    %cst_39 = arith.constant dense<0xFF800000> : vector<8xf32>
    %65 = vector.multi_reduction <maximumf>, %64, %cst_39 [1] : vector<8x16xf32> to vector<8xf32>
    %66 = vector.shape_cast %65 : vector<8xf32> to vector<8x1xf32>
    %67 = vector.broadcast %66 : vector<8x1xf32> to vector<8x16xf32>
    %68 = arith.subf %64, %67 : vector<8x16xf32>
    %69 = math.exp %68 : vector<8x16xf32>
    %cst_40 = arith.constant dense<0.000000e+00> : vector<8xf32>
    %70 = vector.multi_reduction <add>, %69, %cst_40 [1] : vector<8x16xf32> to vector<8xf32>
    %71 = vector.shape_cast %70 : vector<8xf32> to vector<8x1xf32>
    %72 = vector.broadcast %71 : vector<8x1xf32> to vector<8x16xf32>
    %73 = arith.divf %69, %72 : vector<8x16xf32>
    %74 = arith.truncf %73 : vector<8x16xf32> to vector<8x16xbf16>
    %cst_41 = arith.constant dense<0.000000e+00> : vector<8x32xf32>
    %75 = tpu.matmul %74, %57, %cst_41 {dimension_numbers = #tpu.dot_dimension_numbers<[1], [0], [0], [1], [0, 0, 1, 1], [], []>} : vector<8x16xbf16>, vector<16x32xbf16>, vector<8x32xf32> -> vector<8x32xf32>
    %76 = vector.extract_strided_slice %19 {offsets = [0, 64], sizes = [8, 32], strides = [1, 1]} : vector<8x128xf32> to vector<8x32xf32>
    %77 = arith.truncf %76 : vector<8x32xf32> to vector<8x32xbf16>
    %78 = vector.extract_strided_slice %24 {offsets = [0, 64], sizes = [16, 32], strides = [1, 1]} : vector<16x128xf32> to vector<16x32xf32>
    %79 = arith.truncf %78 : vector<16x32xf32> to vector<16x32xbf16>
    %80 = vector.extract_strided_slice %25 {offsets = [0, 64], sizes = [16, 32], strides = [1, 1]} : vector<16x128xf32> to vector<16x32xf32>
    %81 = arith.truncf %80 : vector<16x32xf32> to vector<16x32xbf16>
    %cst_42 = arith.constant dense<0.000000e+00> : vector<8x16xf32>
    %82 = tpu.matmul %77, %79, %cst_42 {dimension_numbers = #tpu.dot_dimension_numbers<[1], [1], [0], [0], [0, 0, 1, 0], [], []>} : vector<8x32xbf16>, vector<16x32xbf16>, vector<8x16xf32> -> vector<8x16xf32>
    %cst_43 = arith.constant 0.176776692 : f32
    %83 = vector.broadcast %cst_43 : f32 to vector<8x16xf32>
    %84 = arith.mulf %82, %83 : vector<8x16xf32>
    %cst_44 = arith.constant 5.000000e-01 : f32
    %85 = vector.broadcast %cst_44 : f32 to vector<8x16xf32>
    %86 = arith.cmpf ogt, %27, %85 : vector<8x16xf32>
    %cst_45 = arith.constant -1.000000e+30 : f32
    %87 = vector.broadcast %cst_45 : f32 to vector<8x16xf32>
    %88 = arith.select %86, %87, %84 : vector<8x16xi1>, vector<8x16xf32>
    %cst_46 = arith.constant dense<0xFF800000> : vector<8xf32>
    %89 = vector.multi_reduction <maximumf>, %88, %cst_46 [1] : vector<8x16xf32> to vector<8xf32>
    %90 = vector.shape_cast %89 : vector<8xf32> to vector<8x1xf32>
    %91 = vector.broadcast %90 : vector<8x1xf32> to vector<8x16xf32>
    %92 = arith.subf %88, %91 : vector<8x16xf32>
    %93 = math.exp %92 : vector<8x16xf32>
    %cst_47 = arith.constant dense<0.000000e+00> : vector<8xf32>
    %94 = vector.multi_reduction <add>, %93, %cst_47 [1] : vector<8x16xf32> to vector<8xf32>
    %95 = vector.shape_cast %94 : vector<8xf32> to vector<8x1xf32>
    %96 = vector.broadcast %95 : vector<8x1xf32> to vector<8x16xf32>
    %97 = arith.divf %93, %96 : vector<8x16xf32>
    %98 = arith.truncf %97 : vector<8x16xf32> to vector<8x16xbf16>
    %cst_48 = arith.constant dense<0.000000e+00> : vector<8x32xf32>
    %99 = tpu.matmul %98, %81, %cst_48 {dimension_numbers = #tpu.dot_dimension_numbers<[1], [0], [0], [1], [0, 0, 1, 1], [], []>} : vector<8x16xbf16>, vector<16x32xbf16>, vector<8x32xf32> -> vector<8x32xf32>
    %100 = vector.extract_strided_slice %19 {offsets = [0, 96], sizes = [8, 32], strides = [1, 1]} : vector<8x128xf32> to vector<8x32xf32>
    %101 = arith.truncf %100 : vector<8x32xf32> to vector<8x32xbf16>
    %102 = vector.extract_strided_slice %24 {offsets = [0, 96], sizes = [16, 32], strides = [1, 1]} : vector<16x128xf32> to vector<16x32xf32>
    %103 = arith.truncf %102 : vector<16x32xf32> to vector<16x32xbf16>
    %104 = vector.extract_strided_slice %25 {offsets = [0, 96], sizes = [16, 32], strides = [1, 1]} : vector<16x128xf32> to vector<16x32xf32>
    %105 = arith.truncf %104 : vector<16x32xf32> to vector<16x32xbf16>
    %cst_49 = arith.constant dense<0.000000e+00> : vector<8x16xf32>
    %106 = tpu.matmul %101, %103, %cst_49 {dimension_numbers = #tpu.dot_dimension_numbers<[1], [1], [0], [0], [0, 0, 1, 0], [], []>} : vector<8x32xbf16>, vector<16x32xbf16>, vector<8x16xf32> -> vector<8x16xf32>
    %cst_50 = arith.constant 0.176776692 : f32
    %107 = vector.broadcast %cst_50 : f32 to vector<8x16xf32>
    %108 = arith.mulf %106, %107 : vector<8x16xf32>
    %cst_51 = arith.constant 5.000000e-01 : f32
    %109 = vector.broadcast %cst_51 : f32 to vector<8x16xf32>
    %110 = arith.cmpf ogt, %27, %109 : vector<8x16xf32>
    %cst_52 = arith.constant -1.000000e+30 : f32
    %111 = vector.broadcast %cst_52 : f32 to vector<8x16xf32>
    %112 = arith.select %110, %111, %108 : vector<8x16xi1>, vector<8x16xf32>
    %cst_53 = arith.constant dense<0xFF800000> : vector<8xf32>
    %113 = vector.multi_reduction <maximumf>, %112, %cst_53 [1] : vector<8x16xf32> to vector<8xf32>
    %114 = vector.shape_cast %113 : vector<8xf32> to vector<8x1xf32>
    %115 = vector.broadcast %114 : vector<8x1xf32> to vector<8x16xf32>
    %116 = arith.subf %112, %115 : vector<8x16xf32>
    %117 = math.exp %116 : vector<8x16xf32>
    %cst_54 = arith.constant dense<0.000000e+00> : vector<8xf32>
    %118 = vector.multi_reduction <add>, %117, %cst_54 [1] : vector<8x16xf32> to vector<8xf32>
    %119 = vector.shape_cast %118 : vector<8xf32> to vector<8x1xf32>
    %120 = vector.broadcast %119 : vector<8x1xf32> to vector<8x16xf32>
    %121 = arith.divf %117, %120 : vector<8x16xf32>
    %122 = arith.truncf %121 : vector<8x16xf32> to vector<8x16xbf16>
    %cst_55 = arith.constant dense<0.000000e+00> : vector<8x32xf32>
    %123 = tpu.matmul %122, %105, %cst_55 {dimension_numbers = #tpu.dot_dimension_numbers<[1], [0], [0], [1], [0, 0, 1, 1], [], []>} : vector<8x16xbf16>, vector<16x32xbf16>, vector<8x32xf32> -> vector<8x32xf32>
    %124 = tpu.concatenate %51, %75, %99, %123 in 1 : vector<8x32xf32>, vector<8x32xf32>, vector<8x32xf32>, vector<8x32xf32> -> vector<8x128xf32>
    %125 = arith.truncf %124 : vector<8x128xf32> to vector<8x128xbf16>
    %cst_56 = arith.constant dense<0.000000e+00> : vector<8x128xf32>
    %126 = tpu.matmul %125, %13, %cst_56 {dimension_numbers = #tpu.dot_dimension_numbers<[1], [0], [0], [1], [0, 0, 1, 1], [], []>} : vector<8x128xbf16>, vector<128x128xbf16>, vector<8x128xf32> -> vector<8x128xf32>
    %127 = vector.broadcast %14 : vector<1x128xf32> to vector<8x128xf32>
    %128 = arith.addf %126, %127 : vector<8x128xf32>
    %129 = arith.addf %1, %128 : vector<8x128xf32>
    %cst_57 = arith.constant dense<0.000000e+00> : vector<8xf32>
    %130 = vector.multi_reduction <add>, %129, %cst_57 [1] : vector<8x128xf32> to vector<8xf32>
    %131 = vector.shape_cast %130 : vector<8xf32> to vector<8x1xf32>
    %cst_58 = arith.constant 1.280000e+02 : f32
    %132 = vector.broadcast %cst_58 : f32 to vector<8x1xf32>
    %133 = arith.divf %131, %132 : vector<8x1xf32>
    %134 = vector.broadcast %133 : vector<8x1xf32> to vector<8x128xf32>
    %135 = arith.subf %129, %134 : vector<8x128xf32>
    %136 = arith.mulf %135, %135 : vector<8x128xf32>
    %cst_59 = arith.constant dense<0.000000e+00> : vector<8xf32>
    %137 = vector.multi_reduction <add>, %136, %cst_59 [1] : vector<8x128xf32> to vector<8xf32>
    %138 = vector.shape_cast %137 : vector<8xf32> to vector<8x1xf32>
    %cst_60 = arith.constant 1.280000e+02 : f32
    %139 = vector.broadcast %cst_60 : f32 to vector<8x1xf32>
    %140 = arith.divf %138, %139 : vector<8x1xf32>
    %cst_61 = arith.constant 9.99999974E-6 : f32
    %141 = vector.broadcast %cst_61 : f32 to vector<8x1xf32>
    %142 = arith.addf %140, %141 : vector<8x1xf32>
    %143 = math.rsqrt %142 : vector<8x1xf32>
    %144 = vector.broadcast %143 : vector<8x1xf32> to vector<8x128xf32>
    %145 = arith.mulf %135, %144 : vector<8x128xf32>
    %146 = vector.broadcast %15 : vector<1x128xf32> to vector<8x128xf32>
    %147 = arith.mulf %145, %146 : vector<8x128xf32>
    %148 = vector.broadcast %16 : vector<1x128xf32> to vector<8x128xf32>
    %149 = arith.addf %147, %148 : vector<8x128xf32>
    %150 = vector.broadcast %3 : vector<8x1xf32> to vector<8x128xf32>
    %151 = arith.mulf %149, %150 : vector<8x128xf32>
    %c0_62 = arith.constant 0 : index
    %c0_63 = arith.constant 0 : index
    %c0_64 = arith.constant 0 : index
    %152 = vector.load %arg3[%c0_62, %c0_63, %c0_64] : memref<1x8x128xf32, #tpu.memory_space<vmem>>, vector<1x8x128xf32>
    %153 = vector.shape_cast %152 : vector<1x8x128xf32> to vector<8x128xf32>
    %c0_65 = arith.constant 0 : index
    %c0_66 = arith.constant 0 : index
    %c0_67 = arith.constant 0 : index
    %154 = vector.load %arg5[%c0_65, %c0_66, %c0_67] : memref<1x1x8xf32, #tpu.memory_space<vmem>>, vector<1x1x8xf32>
    %155 = vector.shape_cast %154 : vector<1x1x8xf32> to vector<1x8xf32>
    %c0_68 = arith.constant 0 : index
    %c0_69 = arith.constant 0 : index
    %156 = vector.load %arg15[%c0_68, %c0_69] : memref<128x128xbf16, #tpu.memory_space<vmem>>, vector<128x128xbf16>
    %c0_70 = arith.constant 0 : index
    %c0_71 = arith.constant 0 : index
    %157 = vector.load %arg16[%c0_70, %c0_71] : memref<1x128xf32, #tpu.memory_space<vmem>>, vector<1x128xf32>
    %c0_72 = arith.constant 0 : index
    %c0_73 = arith.constant 0 : index
    %158 = vector.load %arg17[%c0_72, %c0_73] : memref<128x256xbf16, #tpu.memory_space<vmem>>, vector<128x256xbf16>
    %c0_74 = arith.constant 0 : index
    %c0_75 = arith.constant 0 : index
    %159 = vector.load %arg18[%c0_74, %c0_75] : memref<1x256xf32, #tpu.memory_space<vmem>>, vector<1x256xf32>
    %c0_76 = arith.constant 0 : index
    %c0_77 = arith.constant 0 : index
    %160 = vector.load %arg19[%c0_76, %c0_77] : memref<128x128xbf16, #tpu.memory_space<vmem>>, vector<128x128xbf16>
    %c0_78 = arith.constant 0 : index
    %c0_79 = arith.constant 0 : index
    %161 = vector.load %arg20[%c0_78, %c0_79] : memref<1x128xf32, #tpu.memory_space<vmem>>, vector<1x128xf32>
    %c0_80 = arith.constant 0 : index
    %c0_81 = arith.constant 0 : index
    %162 = vector.load %arg21[%c0_80, %c0_81] : memref<1x128xf32, #tpu.memory_space<vmem>>, vector<1x128xf32>
    %c0_82 = arith.constant 0 : index
    %c0_83 = arith.constant 0 : index
    %163 = vector.load %arg22[%c0_82, %c0_83] : memref<1x128xf32, #tpu.memory_space<vmem>>, vector<1x128xf32>
    %cst_84 = arith.constant dense<0.000000e+00> : vector<8x128xf32>
    %164 = tpu.matmul %4, %156, %cst_84 {dimension_numbers = #tpu.dot_dimension_numbers<[1], [0], [0], [1], [0, 0, 1, 1], [], []>} : vector<8x128xbf16>, vector<128x128xbf16>, vector<8x128xf32> -> vector<8x128xf32>
    %165 = vector.broadcast %157 : vector<1x128xf32> to vector<8x128xf32>
    %166 = arith.addf %164, %165 : vector<8x128xf32>
    %167 = arith.truncf %153 : vector<8x128xf32> to vector<8x128xbf16>
    %cst_85 = arith.constant dense<0.000000e+00> : vector<8x256xf32>
    %168 = tpu.matmul %167, %158, %cst_85 {dimension_numbers = #tpu.dot_dimension_numbers<[1], [0], [0], [1], [0, 0, 1, 1], [], []>} : vector<8x128xbf16>, vector<128x256xbf16>, vector<8x256xf32> -> vector<8x256xf32>
    %169 = vector.broadcast %159 : vector<1x256xf32> to vector<8x256xf32>
    %170 = arith.addf %168, %169 : vector<8x256xf32>
    %171 = vector.extract_strided_slice %170 {offsets = [0, 0], sizes = [8, 128], strides = [1, 1]} : vector<8x256xf32> to vector<8x128xf32>
    %172 = vector.extract_strided_slice %170 {offsets = [0, 128], sizes = [8, 128], strides = [1, 1]} : vector<8x256xf32> to vector<8x128xf32>
    %173 = vector.shape_cast %155 : vector<1x8xf32> to vector<1x8xf32>
    %174 = vector.broadcast %173 : vector<1x8xf32> to vector<8x8xf32>
    %175 = vector.extract_strided_slice %166 {offsets = [0, 0], sizes = [8, 32], strides = [1, 1]} : vector<8x128xf32> to vector<8x32xf32>
    %176 = arith.truncf %175 : vector<8x32xf32> to vector<8x32xbf16>
    %177 = vector.extract_strided_slice %171 {offsets = [0, 0], sizes = [8, 32], strides = [1, 1]} : vector<8x128xf32> to vector<8x32xf32>
    %178 = arith.truncf %177 : vector<8x32xf32> to vector<8x32xbf16>
    %179 = vector.extract_strided_slice %172 {offsets = [0, 0], sizes = [8, 32], strides = [1, 1]} : vector<8x128xf32> to vector<8x32xf32>
    %180 = arith.truncf %179 : vector<8x32xf32> to vector<8x32xbf16>
    %cst_86 = arith.constant dense<0.000000e+00> : vector<8x8xf32>
    %181 = tpu.matmul %176, %178, %cst_86 {dimension_numbers = #tpu.dot_dimension_numbers<[1], [1], [0], [0], [0, 0, 1, 0], [], []>} : vector<8x32xbf16>, vector<8x32xbf16>, vector<8x8xf32> -> vector<8x8xf32>
    %cst_87 = arith.constant 0.176776692 : f32
    %182 = vector.broadcast %cst_87 : f32 to vector<8x8xf32>
    %183 = arith.mulf %181, %182 : vector<8x8xf32>
    %cst_88 = arith.constant 5.000000e-01 : f32
    %184 = vector.broadcast %cst_88 : f32 to vector<8x8xf32>
    %185 = arith.cmpf ogt, %174, %184 : vector<8x8xf32>
    %cst_89 = arith.constant -1.000000e+30 : f32
    %186 = vector.broadcast %cst_89 : f32 to vector<8x8xf32>
    %187 = arith.select %185, %186, %183 : vector<8x8xi1>, vector<8x8xf32>
    %cst_90 = arith.constant dense<0xFF800000> : vector<8xf32>
    %188 = vector.multi_reduction <maximumf>, %187, %cst_90 [1] : vector<8x8xf32> to vector<8xf32>
    %189 = vector.shape_cast %188 : vector<8xf32> to vector<8x1xf32>
    %190 = vector.broadcast %189 : vector<8x1xf32> to vector<8x8xf32>
    %191 = arith.subf %187, %190 : vector<8x8xf32>
    %192 = math.exp %191 : vector<8x8xf32>
    %cst_91 = arith.constant dense<0.000000e+00> : vector<8xf32>
    %193 = vector.multi_reduction <add>, %192, %cst_91 [1] : vector<8x8xf32> to vector<8xf32>
    %194 = vector.shape_cast %193 : vector<8xf32> to vector<8x1xf32>
    %195 = vector.broadcast %194 : vector<8x1xf32> to vector<8x8xf32>
    %196 = arith.divf %192, %195 : vector<8x8xf32>
    %197 = arith.truncf %196 : vector<8x8xf32> to vector<8x8xbf16>
    %cst_92 = arith.constant dense<0.000000e+00> : vector<8x32xf32>
    %198 = tpu.matmul %197, %180, %cst_92 {dimension_numbers = #tpu.dot_dimension_numbers<[1], [0], [0], [1], [0, 0, 1, 1], [], []>} : vector<8x8xbf16>, vector<8x32xbf16>, vector<8x32xf32> -> vector<8x32xf32>
    %199 = vector.extract_strided_slice %166 {offsets = [0, 32], sizes = [8, 32], strides = [1, 1]} : vector<8x128xf32> to vector<8x32xf32>
    %200 = arith.truncf %199 : vector<8x32xf32> to vector<8x32xbf16>
    %201 = vector.extract_strided_slice %171 {offsets = [0, 32], sizes = [8, 32], strides = [1, 1]} : vector<8x128xf32> to vector<8x32xf32>
    %202 = arith.truncf %201 : vector<8x32xf32> to vector<8x32xbf16>
    %203 = vector.extract_strided_slice %172 {offsets = [0, 32], sizes = [8, 32], strides = [1, 1]} : vector<8x128xf32> to vector<8x32xf32>
    %204 = arith.truncf %203 : vector<8x32xf32> to vector<8x32xbf16>
    %cst_93 = arith.constant dense<0.000000e+00> : vector<8x8xf32>
    %205 = tpu.matmul %200, %202, %cst_93 {dimension_numbers = #tpu.dot_dimension_numbers<[1], [1], [0], [0], [0, 0, 1, 0], [], []>} : vector<8x32xbf16>, vector<8x32xbf16>, vector<8x8xf32> -> vector<8x8xf32>
    %cst_94 = arith.constant 0.176776692 : f32
    %206 = vector.broadcast %cst_94 : f32 to vector<8x8xf32>
    %207 = arith.mulf %205, %206 : vector<8x8xf32>
    %cst_95 = arith.constant 5.000000e-01 : f32
    %208 = vector.broadcast %cst_95 : f32 to vector<8x8xf32>
    %209 = arith.cmpf ogt, %174, %208 : vector<8x8xf32>
    %cst_96 = arith.constant -1.000000e+30 : f32
    %210 = vector.broadcast %cst_96 : f32 to vector<8x8xf32>
    %211 = arith.select %209, %210, %207 : vector<8x8xi1>, vector<8x8xf32>
    %cst_97 = arith.constant dense<0xFF800000> : vector<8xf32>
    %212 = vector.multi_reduction <maximumf>, %211, %cst_97 [1] : vector<8x8xf32> to vector<8xf32>
    %213 = vector.shape_cast %212 : vector<8xf32> to vector<8x1xf32>
    %214 = vector.broadcast %213 : vector<8x1xf32> to vector<8x8xf32>
    %215 = arith.subf %211, %214 : vector<8x8xf32>
    %216 = math.exp %215 : vector<8x8xf32>
    %cst_98 = arith.constant dense<0.000000e+00> : vector<8xf32>
    %217 = vector.multi_reduction <add>, %216, %cst_98 [1] : vector<8x8xf32> to vector<8xf32>
    %218 = vector.shape_cast %217 : vector<8xf32> to vector<8x1xf32>
    %219 = vector.broadcast %218 : vector<8x1xf32> to vector<8x8xf32>
    %220 = arith.divf %216, %219 : vector<8x8xf32>
    %221 = arith.truncf %220 : vector<8x8xf32> to vector<8x8xbf16>
    %cst_99 = arith.constant dense<0.000000e+00> : vector<8x32xf32>
    %222 = tpu.matmul %221, %204, %cst_99 {dimension_numbers = #tpu.dot_dimension_numbers<[1], [0], [0], [1], [0, 0, 1, 1], [], []>} : vector<8x8xbf16>, vector<8x32xbf16>, vector<8x32xf32> -> vector<8x32xf32>
    %223 = vector.extract_strided_slice %166 {offsets = [0, 64], sizes = [8, 32], strides = [1, 1]} : vector<8x128xf32> to vector<8x32xf32>
    %224 = arith.truncf %223 : vector<8x32xf32> to vector<8x32xbf16>
    %225 = vector.extract_strided_slice %171 {offsets = [0, 64], sizes = [8, 32], strides = [1, 1]} : vector<8x128xf32> to vector<8x32xf32>
    %226 = arith.truncf %225 : vector<8x32xf32> to vector<8x32xbf16>
    %227 = vector.extract_strided_slice %172 {offsets = [0, 64], sizes = [8, 32], strides = [1, 1]} : vector<8x128xf32> to vector<8x32xf32>
    %228 = arith.truncf %227 : vector<8x32xf32> to vector<8x32xbf16>
    %cst_100 = arith.constant dense<0.000000e+00> : vector<8x8xf32>
    %229 = tpu.matmul %224, %226, %cst_100 {dimension_numbers = #tpu.dot_dimension_numbers<[1], [1], [0], [0], [0, 0, 1, 0], [], []>} : vector<8x32xbf16>, vector<8x32xbf16>, vector<8x8xf32> -> vector<8x8xf32>
    %cst_101 = arith.constant 0.176776692 : f32
    %230 = vector.broadcast %cst_101 : f32 to vector<8x8xf32>
    %231 = arith.mulf %229, %230 : vector<8x8xf32>
    %cst_102 = arith.constant 5.000000e-01 : f32
    %232 = vector.broadcast %cst_102 : f32 to vector<8x8xf32>
    %233 = arith.cmpf ogt, %174, %232 : vector<8x8xf32>
    %cst_103 = arith.constant -1.000000e+30 : f32
    %234 = vector.broadcast %cst_103 : f32 to vector<8x8xf32>
    %235 = arith.select %233, %234, %231 : vector<8x8xi1>, vector<8x8xf32>
    %cst_104 = arith.constant dense<0xFF800000> : vector<8xf32>
    %236 = vector.multi_reduction <maximumf>, %235, %cst_104 [1] : vector<8x8xf32> to vector<8xf32>
    %237 = vector.shape_cast %236 : vector<8xf32> to vector<8x1xf32>
    %238 = vector.broadcast %237 : vector<8x1xf32> to vector<8x8xf32>
    %239 = arith.subf %235, %238 : vector<8x8xf32>
    %240 = math.exp %239 : vector<8x8xf32>
    %cst_105 = arith.constant dense<0.000000e+00> : vector<8xf32>
    %241 = vector.multi_reduction <add>, %240, %cst_105 [1] : vector<8x8xf32> to vector<8xf32>
    %242 = vector.shape_cast %241 : vector<8xf32> to vector<8x1xf32>
    %243 = vector.broadcast %242 : vector<8x1xf32> to vector<8x8xf32>
    %244 = arith.divf %240, %243 : vector<8x8xf32>
    %245 = arith.truncf %244 : vector<8x8xf32> to vector<8x8xbf16>
    %cst_106 = arith.constant dense<0.000000e+00> : vector<8x32xf32>
    %246 = tpu.matmul %245, %228, %cst_106 {dimension_numbers = #tpu.dot_dimension_numbers<[1], [0], [0], [1], [0, 0, 1, 1], [], []>} : vector<8x8xbf16>, vector<8x32xbf16>, vector<8x32xf32> -> vector<8x32xf32>
    %247 = vector.extract_strided_slice %166 {offsets = [0, 96], sizes = [8, 32], strides = [1, 1]} : vector<8x128xf32> to vector<8x32xf32>
    %248 = arith.truncf %247 : vector<8x32xf32> to vector<8x32xbf16>
    %249 = vector.extract_strided_slice %171 {offsets = [0, 96], sizes = [8, 32], strides = [1, 1]} : vector<8x128xf32> to vector<8x32xf32>
    %250 = arith.truncf %249 : vector<8x32xf32> to vector<8x32xbf16>
    %251 = vector.extract_strided_slice %172 {offsets = [0, 96], sizes = [8, 32], strides = [1, 1]} : vector<8x128xf32> to vector<8x32xf32>
    %252 = arith.truncf %251 : vector<8x32xf32> to vector<8x32xbf16>
    %cst_107 = arith.constant dense<0.000000e+00> : vector<8x8xf32>
    %253 = tpu.matmul %248, %250, %cst_107 {dimension_numbers = #tpu.dot_dimension_numbers<[1], [1], [0], [0], [0, 0, 1, 0], [], []>} : vector<8x32xbf16>, vector<8x32xbf16>, vector<8x8xf32> -> vector<8x8xf32>
    %cst_108 = arith.constant 0.176776692 : f32
    %254 = vector.broadcast %cst_108 : f32 to vector<8x8xf32>
    %255 = arith.mulf %253, %254 : vector<8x8xf32>
    %cst_109 = arith.constant 5.000000e-01 : f32
    %256 = vector.broadcast %cst_109 : f32 to vector<8x8xf32>
    %257 = arith.cmpf ogt, %174, %256 : vector<8x8xf32>
    %cst_110 = arith.constant -1.000000e+30 : f32
    %258 = vector.broadcast %cst_110 : f32 to vector<8x8xf32>
    %259 = arith.select %257, %258, %255 : vector<8x8xi1>, vector<8x8xf32>
    %cst_111 = arith.constant dense<0xFF800000> : vector<8xf32>
    %260 = vector.multi_reduction <maximumf>, %259, %cst_111 [1] : vector<8x8xf32> to vector<8xf32>
    %261 = vector.shape_cast %260 : vector<8xf32> to vector<8x1xf32>
    %262 = vector.broadcast %261 : vector<8x1xf32> to vector<8x8xf32>
    %263 = arith.subf %259, %262 : vector<8x8xf32>
    %264 = math.exp %263 : vector<8x8xf32>
    %cst_112 = arith.constant dense<0.000000e+00> : vector<8xf32>
    %265 = vector.multi_reduction <add>, %264, %cst_112 [1] : vector<8x8xf32> to vector<8xf32>
    %266 = vector.shape_cast %265 : vector<8xf32> to vector<8x1xf32>
    %267 = vector.broadcast %266 : vector<8x1xf32> to vector<8x8xf32>
    %268 = arith.divf %264, %267 : vector<8x8xf32>
    %269 = arith.truncf %268 : vector<8x8xf32> to vector<8x8xbf16>
    %cst_113 = arith.constant dense<0.000000e+00> : vector<8x32xf32>
    %270 = tpu.matmul %269, %252, %cst_113 {dimension_numbers = #tpu.dot_dimension_numbers<[1], [0], [0], [1], [0, 0, 1, 1], [], []>} : vector<8x8xbf16>, vector<8x32xbf16>, vector<8x32xf32> -> vector<8x32xf32>
    %271 = tpu.concatenate %198, %222, %246, %270 in 1 : vector<8x32xf32>, vector<8x32xf32>, vector<8x32xf32>, vector<8x32xf32> -> vector<8x128xf32>
    %272 = arith.truncf %271 : vector<8x128xf32> to vector<8x128xbf16>
    %cst_114 = arith.constant dense<0.000000e+00> : vector<8x128xf32>
    %273 = tpu.matmul %272, %160, %cst_114 {dimension_numbers = #tpu.dot_dimension_numbers<[1], [0], [0], [1], [0, 0, 1, 1], [], []>} : vector<8x128xbf16>, vector<128x128xbf16>, vector<8x128xf32> -> vector<8x128xf32>
    %274 = vector.broadcast %161 : vector<1x128xf32> to vector<8x128xf32>
    %275 = arith.addf %273, %274 : vector<8x128xf32>
    %276 = arith.addf %1, %275 : vector<8x128xf32>
    %cst_115 = arith.constant dense<0.000000e+00> : vector<8xf32>
    %277 = vector.multi_reduction <add>, %276, %cst_115 [1] : vector<8x128xf32> to vector<8xf32>
    %278 = vector.shape_cast %277 : vector<8xf32> to vector<8x1xf32>
    %cst_116 = arith.constant 1.280000e+02 : f32
    %279 = vector.broadcast %cst_116 : f32 to vector<8x1xf32>
    %280 = arith.divf %278, %279 : vector<8x1xf32>
    %281 = vector.broadcast %280 : vector<8x1xf32> to vector<8x128xf32>
    %282 = arith.subf %276, %281 : vector<8x128xf32>
    %283 = arith.mulf %282, %282 : vector<8x128xf32>
    %cst_117 = arith.constant dense<0.000000e+00> : vector<8xf32>
    %284 = vector.multi_reduction <add>, %283, %cst_117 [1] : vector<8x128xf32> to vector<8xf32>
    %285 = vector.shape_cast %284 : vector<8xf32> to vector<8x1xf32>
    %cst_118 = arith.constant 1.280000e+02 : f32
    %286 = vector.broadcast %cst_118 : f32 to vector<8x1xf32>
    %287 = arith.divf %285, %286 : vector<8x1xf32>
    %cst_119 = arith.constant 9.99999974E-6 : f32
    %288 = vector.broadcast %cst_119 : f32 to vector<8x1xf32>
    %289 = arith.addf %287, %288 : vector<8x1xf32>
    %290 = math.rsqrt %289 : vector<8x1xf32>
    %291 = vector.broadcast %290 : vector<8x1xf32> to vector<8x128xf32>
    %292 = arith.mulf %282, %291 : vector<8x128xf32>
    %293 = vector.broadcast %162 : vector<1x128xf32> to vector<8x128xf32>
    %294 = arith.mulf %292, %293 : vector<8x128xf32>
    %295 = vector.broadcast %163 : vector<1x128xf32> to vector<8x128xf32>
    %296 = arith.addf %294, %295 : vector<8x128xf32>
    %297 = vector.broadcast %3 : vector<8x1xf32> to vector<8x128xf32>
    %298 = arith.mulf %296, %297 : vector<8x128xf32>
    %c0_120 = arith.constant 0 : index
    %c0_121 = arith.constant 0 : index
    %299 = vector.load %arg23[%c0_120, %c0_121] : memref<128x128xbf16, #tpu.memory_space<vmem>>, vector<128x128xbf16>
    %cst_122 = arith.constant dense<0.000000e+00> : vector<8x128xf32>
    %300 = tpu.matmul %4, %299, %cst_122 {dimension_numbers = #tpu.dot_dimension_numbers<[1], [0], [0], [1], [0, 0, 1, 1], [], []>} : vector<8x128xbf16>, vector<128x128xbf16>, vector<8x128xf32> -> vector<8x128xf32>
    %c0_123 = arith.constant 0 : index
    %c0_124 = arith.constant 0 : index
    %301 = vector.load %arg25[%c0_123, %c0_124] : memref<1x128xf32, #tpu.memory_space<vmem>>, vector<1x128xf32>
    %302 = vector.broadcast %301 : vector<1x128xf32> to vector<8x128xf32>
    %303 = arith.addf %300, %302 : vector<8x128xf32>
    %304 = arith.truncf %151 : vector<8x128xf32> to vector<8x128xbf16>
    %c0_125 = arith.constant 0 : index
    %c0_126 = arith.constant 0 : index
    %305 = vector.load %arg24[%c0_125, %c0_126] : memref<128x128xbf16, #tpu.memory_space<vmem>>, vector<128x128xbf16>
    %cst_127 = arith.constant dense<0.000000e+00> : vector<8x128xf32>
    %306 = tpu.matmul %304, %305, %cst_127 {dimension_numbers = #tpu.dot_dimension_numbers<[1], [0], [0], [1], [0, 0, 1, 1], [], []>} : vector<8x128xbf16>, vector<128x128xbf16>, vector<8x128xf32> -> vector<8x128xf32>
    %307 = arith.addf %303, %306 : vector<8x128xf32>
    %cst_128 = arith.constant 0.000000e+00 : f32
    %308 = vector.broadcast %cst_128 : f32 to vector<8x128xf32>
    %309 = arith.subf %308, %307 : vector<8x128xf32>
    %310 = math.exp %309 : vector<8x128xf32>
    %cst_129 = arith.constant 1.000000e+00 : f32
    %311 = vector.broadcast %cst_129 : f32 to vector<8x128xf32>
    %312 = arith.addf %311, %310 : vector<8x128xf32>
    %cst_130 = arith.constant 1.000000e+00 : f32
    %313 = vector.broadcast %cst_130 : f32 to vector<8x128xf32>
    %314 = arith.divf %313, %312 : vector<8x128xf32>
    %315 = arith.truncf %298 : vector<8x128xf32> to vector<8x128xbf16>
    %c0_131 = arith.constant 0 : index
    %c0_132 = arith.constant 0 : index
    %316 = vector.load %arg24[%c0_131, %c0_132] : memref<128x128xbf16, #tpu.memory_space<vmem>>, vector<128x128xbf16>
    %cst_133 = arith.constant dense<0.000000e+00> : vector<8x128xf32>
    %317 = tpu.matmul %315, %316, %cst_133 {dimension_numbers = #tpu.dot_dimension_numbers<[1], [0], [0], [1], [0, 0, 1, 1], [], []>} : vector<8x128xbf16>, vector<128x128xbf16>, vector<8x128xf32> -> vector<8x128xf32>
    %318 = arith.addf %303, %317 : vector<8x128xf32>
    %cst_134 = arith.constant 0.000000e+00 : f32
    %319 = vector.broadcast %cst_134 : f32 to vector<8x128xf32>
    %320 = arith.subf %319, %318 : vector<8x128xf32>
    %321 = math.exp %320 : vector<8x128xf32>
    %cst_135 = arith.constant 1.000000e+00 : f32
    %322 = vector.broadcast %cst_135 : f32 to vector<8x128xf32>
    %323 = arith.addf %322, %321 : vector<8x128xf32>
    %cst_136 = arith.constant 1.000000e+00 : f32
    %324 = vector.broadcast %cst_136 : f32 to vector<8x128xf32>
    %325 = arith.divf %324, %323 : vector<8x128xf32>
    %326 = arith.mulf %151, %314 : vector<8x128xf32>
    %327 = arith.mulf %298, %325 : vector<8x128xf32>
    %328 = arith.addf %326, %327 : vector<8x128xf32>
    %cst_137 = arith.constant 0.707106769 : f32
    %329 = vector.broadcast %cst_137 : f32 to vector<8x128xf32>
    %330 = arith.mulf %328, %329 : vector<8x128xf32>
    %331 = vector.broadcast %3 : vector<8x1xf32> to vector<8x128xf32>
    %332 = arith.mulf %330, %331 : vector<8x128xf32>
    %333 = arith.truncf %332 : vector<8x128xf32> to vector<8x128xbf16>
    %c0_138 = arith.constant 0 : index
    %c0_139 = arith.constant 0 : index
    %334 = vector.load %arg26[%c0_138, %c0_139] : memref<128x256xbf16, #tpu.memory_space<vmem>>, vector<128x256xbf16>
    %cst_140 = arith.constant dense<0.000000e+00> : vector<8x256xf32>
    %335 = tpu.matmul %333, %334, %cst_140 {dimension_numbers = #tpu.dot_dimension_numbers<[1], [0], [0], [1], [0, 0, 1, 1], [], []>} : vector<8x128xbf16>, vector<128x256xbf16>, vector<8x256xf32> -> vector<8x256xf32>
    %c0_141 = arith.constant 0 : index
    %c0_142 = arith.constant 0 : index
    %336 = vector.load %arg27[%c0_141, %c0_142] : memref<1x256xf32, #tpu.memory_space<vmem>>, vector<1x256xf32>
    %337 = vector.broadcast %336 : vector<1x256xf32> to vector<8x256xf32>
    %338 = arith.addf %335, %337 : vector<8x256xf32>
    %cst_143 = arith.constant 0.000000e+00 : f32
    %339 = vector.broadcast %cst_143 : f32 to vector<8x256xf32>
    %340 = arith.maximumf %338, %339 : vector<8x256xf32>
    %341 = arith.truncf %340 : vector<8x256xf32> to vector<8x256xbf16>
    %c0_144 = arith.constant 0 : index
    %c0_145 = arith.constant 0 : index
    %342 = vector.load %arg28[%c0_144, %c0_145] : memref<256x128xbf16, #tpu.memory_space<vmem>>, vector<256x128xbf16>
    %cst_146 = arith.constant dense<0.000000e+00> : vector<8x128xf32>
    %343 = tpu.matmul %341, %342, %cst_146 {dimension_numbers = #tpu.dot_dimension_numbers<[1], [0], [0], [1], [0, 0, 1, 1], [], []>} : vector<8x256xbf16>, vector<256x128xbf16>, vector<8x128xf32> -> vector<8x128xf32>
    %c0_147 = arith.constant 0 : index
    %c0_148 = arith.constant 0 : index
    %344 = vector.load %arg29[%c0_147, %c0_148] : memref<1x128xf32, #tpu.memory_space<vmem>>, vector<1x128xf32>
    %345 = vector.broadcast %344 : vector<1x128xf32> to vector<8x128xf32>
    %346 = arith.addf %343, %345 : vector<8x128xf32>
    %347 = arith.addf %332, %346 : vector<8x128xf32>
    %c0_149 = arith.constant 0 : index
    %c0_150 = arith.constant 0 : index
    %348 = vector.load %arg30[%c0_149, %c0_150] : memref<1x128xf32, #tpu.memory_space<vmem>>, vector<1x128xf32>
    %c0_151 = arith.constant 0 : index
    %c0_152 = arith.constant 0 : index
    %349 = vector.load %arg31[%c0_151, %c0_152] : memref<1x128xf32, #tpu.memory_space<vmem>>, vector<1x128xf32>
    %cst_153 = arith.constant dense<0.000000e+00> : vector<8xf32>
    %350 = vector.multi_reduction <add>, %347, %cst_153 [1] : vector<8x128xf32> to vector<8xf32>
    %351 = vector.shape_cast %350 : vector<8xf32> to vector<8x1xf32>
    %cst_154 = arith.constant 1.280000e+02 : f32
    %352 = vector.broadcast %cst_154 : f32 to vector<8x1xf32>
    %353 = arith.divf %351, %352 : vector<8x1xf32>
    %354 = vector.broadcast %353 : vector<8x1xf32> to vector<8x128xf32>
    %355 = arith.subf %347, %354 : vector<8x128xf32>
    %356 = arith.mulf %355, %355 : vector<8x128xf32>
    %cst_155 = arith.constant dense<0.000000e+00> : vector<8xf32>
    %357 = vector.multi_reduction <add>, %356, %cst_155 [1] : vector<8x128xf32> to vector<8xf32>
    %358 = vector.shape_cast %357 : vector<8xf32> to vector<8x1xf32>
    %cst_156 = arith.constant 1.280000e+02 : f32
    %359 = vector.broadcast %cst_156 : f32 to vector<8x1xf32>
    %360 = arith.divf %358, %359 : vector<8x1xf32>
    %cst_157 = arith.constant 9.99999974E-6 : f32
    %361 = vector.broadcast %cst_157 : f32 to vector<8x1xf32>
    %362 = arith.addf %360, %361 : vector<8x1xf32>
    %363 = math.rsqrt %362 : vector<8x1xf32>
    %364 = vector.broadcast %363 : vector<8x1xf32> to vector<8x128xf32>
    %365 = arith.mulf %355, %364 : vector<8x128xf32>
    %366 = vector.broadcast %348 : vector<1x128xf32> to vector<8x128xf32>
    %367 = arith.mulf %365, %366 : vector<8x128xf32>
    %368 = vector.broadcast %349 : vector<1x128xf32> to vector<8x128xf32>
    %369 = arith.addf %367, %368 : vector<8x128xf32>
    %370 = vector.broadcast %3 : vector<8x1xf32> to vector<8x128xf32>
    %371 = arith.mulf %369, %370 : vector<8x128xf32>
    %c0_158 = arith.constant 0 : index
    %c0_159 = arith.constant 0 : index
    %c0_160 = arith.constant 0 : index
    %372 = vector.load %arg32[%c0_158, %c0_159, %c0_160] : memref<1x8x128xf32, #tpu.memory_space<vmem>>, vector<1x8x128xf32>
    %373 = vector.shape_cast %372 : vector<1x8x128xf32> to vector<8x128xf32>
    %374 = vector.shape_cast %371 : vector<8x128xf32> to vector<1x8x128xf32>
    tpu.vector_store %arg32[%c0_158, %c0_159, %c0_160], %374 {strides = array<i32>} : memref<1x8x128xf32, #tpu.memory_space<vmem>>, vector<1x8x128xf32>,
    return
  }
  func.func @transform_0(%arg0: i32) -> (i32, i32, i32) {
    %c0_i32 = arith.constant 0 : i32
    %c0_i32_0 = arith.constant 0 : i32
    %c0_i32_1 = arith.constant 0 : i32
    return %arg0, %c0_i32, %c0_i32_0 : i32, i32, i32
  }
  func.func @transform_1(%arg0: i32) -> (i32, i32, i32) {
    %c0_i32 = arith.constant 0 : i32
    %c0_i32_0 = arith.constant 0 : i32
    %c0_i32_1 = arith.constant 0 : i32
    return %arg0, %c0_i32, %c0_i32_0 : i32, i32, i32
  }
  func.func @transform_2(%arg0: i32) -> (i32, i32, i32) {
    %c0_i32 = arith.constant 0 : i32
    %c0_i32_0 = arith.constant 0 : i32
    %c0_i32_1 = arith.constant 0 : i32
    return %arg0, %c0_i32, %c0_i32_0 : i32, i32, i32
  }
  func.func @transform_3(%arg0: i32) -> (i32, i32, i32) {
    %c0_i32 = arith.constant 0 : i32
    %c0_i32_0 = arith.constant 0 : i32
    %c0_i32_1 = arith.constant 0 : i32
    return %arg0, %c0_i32, %c0_i32_0 : i32, i32, i32
  }
  func.func @transform_4(%arg0: i32) -> (i32, i32, i32) {
    %c0_i32 = arith.constant 0 : i32
    %c0_i32_0 = arith.constant 0 : i32
    %c0_i32_1 = arith.constant 0 : i32
    return %arg0, %c0_i32, %c0_i32_0 : i32, i32, i32
  }
  func.func @transform_5(%arg0: i32) -> (i32, i32, i32) {
    %c0_i32 = arith.constant 0 : i32
    %c0_i32_0 = arith.constant 0 : i32
    %c0_i32_1 = arith.constant 0 : i32
    return %arg0, %c0_i32, %c0_i32_0 : i32, i32, i32
  }
  func.func @transform_6(%arg0: i32) -> (i32, i32) {
    %c0_i32 = arith.constant 0 : i32
    %c0_i32_0 = arith.constant 0 : i32
    %c0_i32_1 = arith.constant 0 : i32
    return %c0_i32, %c0_i32_0 : i32, i32
  }
  func.func @transform_7(%arg0: i32) -> (i32, i32) {
    %c0_i32 = arith.constant 0 : i32
    %c0_i32_0 = arith.constant 0 : i32
    %c0_i32_1 = arith.constant 0 : i32
    return %c0_i32, %c0_i32_0 : i32, i32
  }
  func.func @transform_8(%arg0: i32) -> (i32, i32) {
    %c0_i32 = arith.constant 0 : i32
    %c0_i32_0 = arith.constant 0 : i32
    %c0_i32_1 = arith.constant 0 : i32
    return %c0_i32, %c0_i32_0 : i32, i32
  }
  func.func @transform_9(%arg0: i32) -> (i32, i32) {
    %c0_i32 = arith.constant 0 : i32
    %c0_i32_0 = arith.constant 0 : i32
    %c0_i32_1 = arith.constant 0 : i32
    return %c0_i32, %c0_i32_0 : i32, i32
  }
  func.func @transform_10(%arg0: i32) -> (i32, i32) {
    %c0_i32 = arith.constant 0 : i32
    %c0_i32_0 = arith.constant 0 : i32
    %c0_i32_1 = arith.constant 0 : i32
    return %c0_i32, %c0_i32_0 : i32, i32
  }
  func.func @transform_11(%arg0: i32) -> (i32, i32) {
    %c0_i32 = arith.constant 0 : i32
    %c0_i32_0 = arith.constant 0 : i32
    %c0_i32_1 = arith.constant 0 : i32
    return %c0_i32, %c0_i32_0 : i32, i32
  }
  func.func @transform_12(%arg0: i32) -> (i32, i32) {
    %c0_i32 = arith.constant 0 : i32
    %c0_i32_0 = arith.constant 0 : i32
    %c0_i32_1 = arith.constant 0 : i32
    return %c0_i32, %c0_i32_0 : i32, i32
  }
  func.func @transform_13(%arg0: i32) -> (i32, i32) {
    %c0_i32 = arith.constant 0 : i32
    %c0_i32_0 = arith.constant 0 : i32
    %c0_i32_1 = arith.constant 0 : i32
    return %c0_i32, %c0_i32_0 : i32, i32
  }
  func.func @transform_14(%arg0: i32) -> (i32, i32) {
    %c0_i32 = arith.constant 0 : i32
    %c0_i32_0 = arith.constant 0 : i32
    %c0_i32_1 = arith.constant 0 : i32
    return %c0_i32, %c0_i32_0 : i32, i32
  }
  func.func @transform_15(%arg0: i32) -> (i32, i32) {
    %c0_i32 = arith.constant 0 : i32
    %c0_i32_0 = arith.constant 0 : i32
    %c0_i32_1 = arith.constant 0 : i32
    return %c0_i32, %c0_i32_0 : i32, i32
  }
  func.func @transform_16(%arg0: i32) -> (i32, i32) {
    %c0_i32 = arith.constant 0 : i32
    %c0_i32_0 = arith.constant 0 : i32
    %c0_i32_1 = arith.constant 0 : i32
    return %c0_i32, %c0_i32_0 : i32, i32
  }
  func.func @transform_17(%arg0: i32) -> (i32, i32) {
    %c0_i32 = arith.constant 0 : i32
    %c0_i32_0 = arith.constant 0 : i32
    %c0_i32_1 = arith.constant 0 : i32
    return %c0_i32, %c0_i32_0 : i32, i32
  }
  func.func @transform_18(%arg0: i32) -> (i32, i32) {
    %c0_i32 = arith.constant 0 : i32
    %c0_i32_0 = arith.constant 0 : i32
    %c0_i32_1 = arith.constant 0 : i32
    return %c0_i32, %c0_i32_0 : i32, i32
  }
  func.func @transform_19(%arg0: i32) -> (i32, i32) {
    %c0_i32 = arith.constant 0 : i32
    %c0_i32_0 = arith.constant 0 : i32
    %c0_i32_1 = arith.constant 0 : i32
    return %c0_i32, %c0_i32_0 : i32, i32
  }
  func.func @transform_20(%arg0: i32) -> (i32, i32) {
    %c0_i32 = arith.constant 0 : i32
    %c0_i32_0 = arith.constant 0 : i32
    %c0_i32_1 = arith.constant 0 : i32
    return %c0_i32, %c0_i32_0 : i32, i32
  }
  func.func @transform_21(%arg0: i32) -> (i32, i32) {
    %c0_i32 = arith.constant 0 : i32
    %c0_i32_0 = arith.constant 0 : i32
    %c0_i32_1 = arith.constant 0 : i32
    return %c0_i32, %c0_i32_0 : i32, i32
  }
  func.func @transform_22(%arg0: i32) -> (i32, i32) {
    %c0_i32 = arith.constant 0 : i32
    %c0_i32_0 = arith.constant 0 : i32
    %c0_i32_1 = arith.constant 0 : i32
    return %c0_i32, %c0_i32_0 : i32, i32
  }
  func.func @transform_23(%arg0: i32) -> (i32, i32) {
    %c0_i32 = arith.constant 0 : i32
    %c0_i32_0 = arith.constant 0 : i32
    %c0_i32_1 = arith.constant 0 : i32
    return %c0_i32, %c0_i32_0 : i32, i32
  }
  func.func @transform_24(%arg0: i32) -> (i32, i32) {
    %c0_i32 = arith.constant 0 : i32
    %c0_i32_0 = arith.constant 0 : i32
    %c0_i32_1 = arith.constant 0 : i32
    return %c0_i32, %c0_i32_0 : i32, i32
  }
  func.func @transform_25(%arg0: i32) -> (i32, i32) {
    %c0_i32 = arith.constant 0 : i32
    %c0_i32_0 = arith.constant 0 : i32
    %c0_i32_1 = arith.constant 0 : i32
    return %c0_i32, %c0_i32_0 : i32, i32
  }
  func.func @transform_26(%arg0: i32) -> (i32, i32) {
    %c0_i32 = arith.constant 0 : i32
    %c0_i32_0 = arith.constant 0 : i32
    %c0_i32_1 = arith.constant 0 : i32
    return %c0_i32, %c0_i32_0 : i32, i32
  }
  func.func @transform_27(%arg0: i32) -> (i32, i32) {
    %c0_i32 = arith.constant 0 : i32
    %c0_i32_0 = arith.constant 0 : i32
    %c0_i32_1 = arith.constant 0 : i32
    return %c0_i32, %c0_i32_0 : i32, i32
  }
  func.func @transform_28(%arg0: i32) -> (i32, i32) {
    %c0_i32 = arith.constant 0 : i32
    %c0_i32_0 = arith.constant 0 : i32
    %c0_i32_1 = arith.constant 0 : i32
    return %c0_i32, %c0_i32_0 : i32, i32
  }
  func.func @transform_29(%arg0: i32) -> (i32, i32) {
    %c0_i32 = arith.constant 0 : i32
    %c0_i32_0 = arith.constant 0 : i32
    %c0_i32_1 = arith.constant 0 : i32
    return %c0_i32, %c0_i32_0 : i32, i32
  }
  func.func @transform_30(%arg0: i32) -> (i32, i32) {
    %c0_i32 = arith.constant 0 : i32
    %c0_i32_0 = arith.constant 0 : i32
    %c0_i32_1 = arith.constant 0 : i32
    return %c0_i32, %c0_i32_0 : i32, i32
  }
  func.func @transform_31(%arg0: i32) -> (i32, i32, i32) {
    %c0_i32 = arith.constant 0 : i32
    %c0_i32_0 = arith.constant 0 : i32
    %c0_i32_1 = arith.constant 0 : i32
    return %arg0, %c0_i32, %c0_i32_0 : i32, i32, i32
  }
}

</mosaic_0001>

<bundles_post_ra>
// kernel: caption_generator_forward.9
= control target key start
LH: loop header
LB: loop body
LE: loop exit
PB: predicated region body
PF: predicated region fallthrough
CT: control target
= control target key end

     0   :  { %7 = vsyncpa [#allocation3], 0  ;;  %s389_s0 = inlined_call_operand.hbm [shape: f32[16,128], index: 0, kind: input, shape index: {}]   ;;  %s390_s1 = inlined_call_operand.hbm [shape: bf16[128,128], index: 1, kind: input, shape index: {}]   ;;  %s391_s2 = inlined_call_operand.hbm [shape: f32[16,128], index: 2, kind: output, shape index: {}]  }
   0x1   :  { %8 = vsyncpa [#allocation6], 0 }
   0x2   :  { %9 = vsyncpa [#allocation4], 0  ;;  %s323_s9 = smov [#allocation2]   ;;  %s251_s13 = scalar_lea.hbm %s389_s0, 256 }
   0x3   :  { %s15_s10 = sshll.u32 %s323_s9, 4  ;;  %p252_p0 = scmp.ne.s32.totalorder %s389_s0, %s251_s13  ;;  %s16_s10 = int_to_ptr.vmem [resolvable:$true] %s15_s10 }
   0x4   :  { %p255_p1 = scmp.lt.u32.totalorder %s251_s13, %s389_s0 }
   0x6   :  { %p257_p2 = pnand %p255_p1, %p252_p0 }
   0x8   :  { %260 = shalt.err (!%p257_p2)
}
   0x9   :  { %s261_s18 = scalar_lea.vmem %s16_s10, 256  ;;  %p266_p4 = scmp.lt.s32.totalorder %s16_s10, %s16_s10 }
   0xa   :  { %p262_p3 = scmp.ne.s32.totalorder %s16_s10, %s261_s18  ;;  %p267_p5 = scmp.lt.s32.totalorder %s261_s18, %s261_s18 }
   0xc   :  { %p268_p6 = por %p267_p5, %p266_p4 }
   0xe   :  { %p269_p7 = pnand %p268_p6, %p262_p3 }
  0x10   :  { %272 = shalt.err (!%p269_p7)
}
  0x11   :  { %s324_s19 = smov 128   ;;  %s325_s20 = smov 8  }
  0x12   :  { %21 = dma.hbm_to_vmem [thread:$0]  %s389_s0, 256, %s16_s10, [#allocation3], %s324_s19, %s324_s19, %s325_s20  }
  0x13   :  { %s326_s23 = smov [#allocation5]   ;;  %s273_s27 = scalar_lea.hbm %s390_s1, 1024 }
  0x14   :  { %s27_s24 = sshll.u32 %s326_s23, 4  ;;  %p274_p8 = scmp.ne.s32.totalorder %s390_s1, %s273_s27  ;;  %s28_s24 = int_to_ptr.vmem [resolvable:$true] %s27_s24 }
  0x15   :  { %p277_p9 = scmp.lt.u32.totalorder %s273_s27, %s390_s1 }
  0x17   :  { %p279_p10 = pnand %p277_p9, %p274_p8 }
  0x19   :  { %282 = shalt.err (!%p279_p10)
}
  0x1a   :  { %s283_s4 = scalar_lea.vmem %s28_s24, 1024  ;;  %p288_p12 = scmp.lt.s32.totalorder %s28_s24, %s28_s24 }
  0x1b   :  { %p284_p11 = scmp.ne.s32.totalorder %s28_s24, %s283_s4  ;;  %p289_p13 = scmp.lt.s32.totalorder %s283_s4, %s283_s4 }
  0x1d   :  { %p290_p0 = por %p289_p13, %p288_p12 }
  0x1f   :  { %p291_p1 = pnand %p290_p0, %p284_p11 }
  0x21   :  { %294 = shalt.err (!%p291_p1)
}
  0x22   :  { %s327_s0 = smov 64   ;;  %s328_s5 = smov 4  }
  0x23   :  { %33 = dma.hbm_to_vmem [thread:$0]  %s390_s1, 1024, %s28_s24, [#allocation6], %s327_s0, %s327_s0, %s328_s5  }
  0x24   :  { %317 = dma.done.wait [#allocation3], 256  }
  0x25   :  { %318 = vsyncadd [#allocation3], 4294967040 }
  0x26   :  { %319 = dma.done.wait [#allocation6], 1024  }
  0x27   :  { %320 = vsyncadd [#allocation6], 4294966272  ;;  %v329_v0 = vmov 0.0   ;;  %vm330_vm0 = vmmov 0   ;;  %v235_v1 = vld [vmem:[#allocation5] sm:$0xff]   ;;  %v236_v2 = vld [vmem:[#allocation5 + $0x8] sm:$0xff]  }
  0x28   :  { %206 = vmatprep.subr.bf16.mxu0 %v329_v0  ;;  %222 = vmatprep.mubr.msk.bf16.mxu0 %vm330_vm0, %v329_v0  ;;  %v237_v3 = vld [vmem:[#allocation5 + $0x10] sm:$0xff]   ;;  %v238_v4 = vld [vmem:[#allocation5 + $0x18] sm:$0xff]   ;;  %v239_v5 = vld [vmem:[#allocation5 + $0x20] sm:$0xff]   ;;  %s331_s1 = smov [#allocation7]  }
  0x29   :  { %207 = vmatpush3.bf16.msra.mxu0 %v235_v1  ;;  %v240_v6 = vld [vmem:[#allocation5 + $0x28] sm:$0xff]   ;;  %v241_v7 = vld [vmem:[#allocation5 + $0x30] sm:$0xff]   ;;  %v242_v8 = vld [vmem:[#allocation5 + $0x38] sm:$0xff]   ;;  %s176_s8 = sshll.u32 %s331_s1, 4  ;;  %s177_s8 = int_to_ptr.vmem [resolvable:$true] %s176_s8 }
  0x2a   :  { %208 = vmatprep.subr.bf16.mxu0 %v329_v0  ;;  %v41_v9 = vld [vmem:[#allocation2] sm:$0xff]  ;;  %v42_v10 = vld [vmem:[#allocation2 + $0x8] sm:$0xff]  ;;  %s295_s9 = scalar_lea.vmem %s177_s8, 256  ;;  %p300_p3 = scmp.lt.s32.totalorder %s177_s8, %s177_s8 }
  0x2b   :  { %v43_v11 = vpack.c.bf16 %v42_v10, %v41_v9  ;;  %p296_p2 = scmp.ne.s32.totalorder %s177_s8, %s295_s9  ;;  %p301_p4 = scmp.lt.s32.totalorder %s295_s9, %s295_s9 }
  0x2d   :  { %209 = vmatpush3.bf16.msra.mxu0 %v236_v2  ;;  %p302_p5 = por %p301_p4, %p300_p3 }
  0x2e   :  { %210 = vmatprep.subr.bf16.mxu0 %v329_v0 }
  0x2f   :  { %p303_p6 = pnand %p302_p5, %p296_p2 }
  0x31   :  { %211 = vmatpush3.bf16.msra.mxu0 %v237_v3 }
  0x32   :  { %212 = vmatprep.subr.bf16.mxu0 %v329_v0 }
  0x35   :  { %213 = vmatpush3.bf16.msra.mxu0 %v238_v4 }
  0x36   :  { %214 = vmatprep.subr.bf16.mxu0 %v329_v0 }
  0x39   :  { %215 = vmatpush3.bf16.msra.mxu0 %v239_v5 }
  0x3a   :  { %216 = vmatprep.subr.bf16.mxu0 %v329_v0 }
  0x3d   :  { %217 = vmatpush3.bf16.msra.mxu0 %v240_v6 }
  0x3e   :  { %218 = vmatprep.subr.bf16.mxu0 %v329_v0 }
  0x41   :  { %219 = vmatpush3.bf16.msra.mxu0 %v241_v7 }
  0x42   :  { %220 = vmatprep.subr.bf16.mxu0 %v329_v0 }
  0x45   :  { %221 = vmatpush3.bf16.msra.mxu0 %v242_v8 }
  0x48   :  { %223 = vmatmul.mubr.bf16.vlgmr.msra.gmra.mrb[0].mxu0 %v43_v11 }
 0x11b   :  { %v142_v12 = vpop.f32.mrb[0].mxu0 }
 0x11c   :  { %149 = vmax.xlane.f32.xlu0 %v142_v12  ;;  %v224_v13 = vpop.f32.mrb[1].mxu0 }
 0x11d   :  { %v145_v14 = vpop.f32.mrb[2].mxu0 }
 0x11e   :  { %v225_v15 = vpop.f32.mrb[3].mxu0 }
 0x120   :  { %151 = vmax.xlane.f32.xlu0 %v145_v14 }
 0x1a9   :  { %v150_v16 = vpop.xlane.xlu0 %149 }
 0x1aa   :  { %v153_v17 = vsub.f32 %v142_v12, %v150_v16 }
 0x1ac   :  { %v155_v18 = vmul.f32 1.442695, %v153_v17 }
 0x1ad   :  { %v152_v19 = vpop.xlane.xlu0 %151 }
 0x1ae   :  { %v154_v20 = vsub.f32 %v145_v14, %v152_v19  ;;  %243 = vpow2.f32 %v155_v18 }
 0x1b0   :  { %v157_v21 = vmul.f32 1.442695, %v154_v20 }
 0x1b2   :  { %245 = vpow2.f32 %v157_v21 }
 0x1b8   :  { %v244_v22 = vpop.eup %243 }
 0x1b9   :  { %159 = vadd.xlane.f32.xlu1 %v244_v22 }
 0x1bc   :  { %v246_v23 = vpop.eup %245 }
 0x1bd   :  { %161 = vadd.xlane.f32.xlu1 %v246_v23 }
 0x246   :  { %v160_v24 = vpop.xlane.xlu1 %159 }
 0x247   :  { %247 = vlog2.f32 %v160_v24 }
 0x24a   :  { %v162_v25 = vpop.xlane.xlu1 %161 }
 0x24b   :  { %249 = vlog2.f32 %v162_v25 }
 0x251   :  { %v248_v26 = vpop.eup %247 }
 0x252   :  { %v164_v27 = vmul.f32 0.6931472, %v248_v26 }
 0x254   :  { %v167_v28 = vsub.f32 %v153_v17, %v164_v27 }
 0x255   :  { %v250_v29 = vpop.eup %249 }
 0x256   :  { %169 = vst [vmem:[#allocation7] sm:$0xff] %v167_v28  ;;  %v166_v30 = vmul.f32 0.6931472, %v250_v29 }
 0x258   :  { %v168_v31 = vsub.f32 %v154_v20, %v166_v30 }
 0x25a   :  { %170 = vst [vmem:[#allocation7 + $0x8] sm:$0xff] %v168_v31 }
 0x25b   :  { %306 = shalt.err (!%p303_p6)
}
 0x25c   :  { %s307_s12 = scalar_lea.hbm %s391_s2, 256 }
 0x25d   :  { %p308_p7 = scmp.ne.s32.totalorder %s391_s2, %s307_s12  ;;  %p311_p8 = scmp.lt.u32.totalorder %s307_s12, %s391_s2 }
 0x25f   :  { %p313_p9 = pnand %p311_p8, %p308_p7 }
 0x261   :  { %316 = shalt.err (!%p313_p9)
}
 0x262   :  { %182 = dma.vmem_to_hbm [thread:$0]  %s177_s8, 256, %s391_s2, [#allocation4], %s324_s19, %s324_s19, %s325_s20  }
 0x263   :  { %321 = dma.done.wait [#allocation4], 256  }
 0x264   :  { %322 = vsyncadd [#allocation4], 4294967040 }
 0x265   :  { %186 = vsyncpa [#allocation3], 1 }
 0x266   :  { %187 = vsyncpa [#allocation6], 1 }
 0x267   :  { %188 = vsyncpa [#allocation4], 1 }

// kernel: caption_generator_forward.5
= control target key start
LH: loop header
LB: loop body
LE: loop exit
PB: predicated region body
PF: predicated region fallthrough
CT: control target
= control target key end

     0   :  { %s2853_s0 = inlined_call_operand.hbm [shape: f32[2,8,128], index: 0, kind: input, shape index: {}]   ;;  %s2854_s1 = inlined_call_operand.hbm [shape: f32[2,8,8], index: 1, kind: input, shape index: {}]   ;;  %s2855_s2 = inlined_call_operand.hbm [shape: f32[2,8,1], index: 2, kind: input, shape index: {}]   ;;  %s2856_s3 = inlined_call_operand.hbm [shape: bf16[128,384], index: 3, kind: input, shape index: {}]   ;;  %s2857_s4 = inlined_call_operand.hbm [shape: f32[1,384], index: 4, kind: input, shape index: {}]   ;;  %s2858_s5 = inlined_call_operand.hbm [shape: bf16[128,128], index: 5, kind: input, shape index: {}]   ;;  %s2859_s6 = inlined_call_operand.hbm [shape: f32[1,128], index: 6, kind: input, shape index: {}]   ;;  %s2860_s7 = inlined_call_operand.hbm [shape: f32[1,128], index: 7, kind: input, shape index: {}]   ;;  %s2861_s8 = inlined_call_operand.hbm [shape: f32[1,128], index: 8, kind: input, shape index: {}]   ;;  %s2862_s9 = inlined_call_operand.hbm [shape: f32[2,8,128], index: 9, kind: output, shape index: {}]  }
   0x1   :  { %2882 = sst [smem:[#allocation29_spill]] %s2854_s1 }
   0x2   :  { %2883 = sst [smem:[#allocation30_spill]] %s2856_s3 }
   0x3   :  { %2884 = sst [smem:[#allocation31_spill]] %s2858_s5 }
   0x4   :  { %2885 = sst [smem:[#allocation32_spill]] %s2860_s7 }
   0x5   :  { %2886 = sst [smem:[#allocation33_spill]] %s2862_s9 }
   0x6   :  { %14 = vsyncpa [#allocation3], 0 }
   0x7   :  { %16 = vsyncpa [#allocation3 + $0x1], 0 }
   0x8   :  { %17 = vsyncpa [#allocation6], 0 }
   0x9   :  { %19 = vsyncpa [#allocation6 + $0x1], 0 }
   0xa   :  { %20 = vsyncpa [#allocation9], 0 }
   0xb   :  { %21 = vsyncpa [#allocation12], 0 }
   0xc   :  { %22 = vsyncpa [#allocation15], 0 }
   0xd   :  { %23 = vsyncpa [#allocation4], 0 }
   0xe   :  { %25 = vsyncpa [#allocation4 + $0x1], 0  ;;  %s2355_s30 = smov 0   ;;  %s2357_s10 = smov 0  }
   0xf   :  { %s2359_s11 = smov 0   ;;  %s2361_s12 = smov 0  }
  0x10 LB: > { %2887 = sst [smem:[#allocation24_spill]] %s2271_s30  ;;  %s2285_s13 = smov [#allocation8]   ;;  %s2283_s12 = sphi %s2361_s12, %s2926_s12   ;;  %s2279_s11 = sphi %s2359_s11, %s2930_s11   ;;  %s2275_s10 = sphi %s2357_s10, %s2929_s10   ;;  %s2271_s30 = sphi %s2355_s30, %s2928_s30  }
  0x11   : > { %2888 = sst [smem:[#allocation25_spill]] %s2283_s12  ;;  %s278_s14 = sshll.u32 %s2285_s13, 4  ;;  %s2381_s14 = int_to_ptr.vmem [resolvable:$true] %s278_s14 }
  0x12   : > { %s2376_s15 = sadd.s32 4294967295, %s2283_s12   ;;  %p1563_p0 = scmp.ge.s32.totalorder %s2283_s12, 1 }
  0x13   : > { %p2864_p1 = scmp.eq.s32.totalorder %s2376_s15, 0  ;;  %p266_p2 = scmp.lt.s32.totalorder %s2283_s12, 3 }
  0x14   : > { %s2286_s17 = smov [#allocation11]   ;;  %s2287_s20 = smov [#allocation14]  }
  0x15   : > { %p2383_p3 = pnand %p1563_p0, %p266_p2  ;;  %s302_s18 = sshll.u32 %s2286_s17, 4  ;;  %s2396_s18 = int_to_ptr.vmem [resolvable:$true] %s302_s18 }
  0x16   : > { %s2398_s21 = sshll.u32 %s2287_s20, 4  ;;  %s2891_s3 = sld [smem:[#allocation30_spill]]  ;;  %s328_s21 = int_to_ptr.vmem [resolvable:$true] %s2398_s21 }
  0x17   : > { %s2889_s16 = scalar_select %p2383_p3, 1, 0 }
  0x18   : > { %p1789_p5 = pneg %p2383_p3 }
  0x1a   : > { %p2392_p6 = pnand %p1789_p5, %p2864_p1 }
  0x1c   : > { %s2890_s19 = scalar_select %p2392_p6, 1, 0 }
  0x1d   : > { %s1943_s24 = scalar_lea.hbm %s2891_s3, 3072  ;;  %p2408_p8 = pneg %p2392_p6 }
  0x1e   : > { %p1944_p7 = scmp.ne.s32.totalorder %s2891_s3, %s1943_s24  ;;  %p1950_p11 = scmp.lt.u32.totalorder %s1943_s24, %s2891_s3 }
  0x1f   : > { %s2892_s27 = scalar_select %p2408_p8, 1, 0 }
  0x20   : > { %p1946_p9 = pnand %p2408_p8, %p1944_p7 }
  0x22   : > { %p1947_p10 = pneg %p1946_p9 }
  0x24   : > { %p1952_p12 = pnand %p1950_p11, %p1947_p10 }
  0x26   : > { %1955 = shalt.err (!%p1952_p12)
}
  0x27   : > { %s1956_s13 = scalar_lea.vmem %s2381_s14, 3072  ;;  %p1964_p5 = scmp.lt.s32.totalorder %s2381_s14, %s2381_s14 }
  0x28   : > { %p1957_p13 = scmp.ne.s32.totalorder %s2381_s14, %s1956_s13  ;;  %p1965_p4 = scmp.lt.s32.totalorder %s1956_s13, %s1956_s13 }
  0x2a   : > { %p1959_p0 = pnand %p1957_p13, %p2408_p8  ;;  %p1966_p7 = por %p1965_p4, %p1964_p5 }
  0x2c   : > { %p1960_p2 = pneg %p1959_p0 }
  0x2e   : > { %p1967_p9 = pnand %p1966_p7, %p1960_p2 }
  0x30   : > { %1970 = shalt.err (!%p1967_p9)
}
  0x31   : > { %s2288_s17 = smov 192   ;;  %s2289_s20 = smov 12  }
  0x32   : > { %1792 = dma.hbm_to_vmem [thread:$0]  (!%p2392_p6), %s2891_s3, 3072, %s2381_s14, [#allocation9], %s2288_s17, %s2288_s17, %s2289_s20  }
  0x33   : > { %s2893_s5 = sld [smem:[#allocation31_spill]] }
  0x39   : > { %s1971_s26 = scalar_lea.hbm %s2893_s5, 1024 }
  0x3a   : > { %p1972_p4 = scmp.ne.s32.totalorder %s2893_s5, %s1971_s26  ;;  %p1978_p12 = scmp.lt.u32.totalorder %s1971_s26, %s2893_s5 }
  0x3c   : > { %p1974_p10 = pnand %p1972_p4, %p2408_p8 }
  0x3e   : > { %p1975_p11 = pneg %p1974_p10 }
  0x40   : > { %p1980_p13 = pnand %p1978_p12, %p1975_p11 }
  0x42   : > { %1983 = shalt.err (!%p1980_p13)
}
  0x43   : > { %s1984_s14 = scalar_lea.vmem %s2396_s18, 1024  ;;  %p1992_p7 = scmp.lt.s32.totalorder %s2396_s18, %s2396_s18 }
  0x44   : > { %p1985_p0 = scmp.ne.s32.totalorder %s2396_s18, %s1984_s14  ;;  %p1993_p9 = scmp.lt.s32.totalorder %s1984_s14, %s1984_s14 }
  0x46   : > { %p1987_p2 = pnand %p1985_p0, %p2408_p8  ;;  %p1994_p4 = por %p1993_p9, %p1992_p7 }
  0x48   : > { %p1988_p5 = pneg %p1987_p2 }
  0x4a   : > { %p1995_p10 = pnand %p1994_p4, %p1988_p5 }
  0x4c   : > { %1998 = shalt.err (!%p1995_p10)
}
  0x4d   : > { %s2290_s17 = smov 64   ;;  %s2291_s9 = smov 4  }
  0x4e   : > { %1798 = dma.hbm_to_vmem [thread:$0]  (!%p2392_p6), %s2893_s5, 1024, %s2396_s18, [#allocation12], %s2290_s17, %s2290_s17, %s2291_s9  }
  0x4f   : > { %s2894_s7 = sld [smem:[#allocation32_spill]] }
  0x55   : > { %s1999_s25 = scalar_lea.hbm %s2894_s7, 16 }
  0x56   : > { %p2000_p11 = scmp.ne.s32.totalorder %s2894_s7, %s1999_s25  ;;  %p2006_p0 = scmp.lt.u32.totalorder %s1999_s25, %s2894_s7 }
  0x58   : > { %p2002_p12 = pnand %p2000_p11, %p2408_p8 }
  0x5a   : > { %p2003_p13 = pneg %p2002_p12 }
  0x5c   : > { %p2008_p2 = pnand %p2006_p0, %p2003_p13 }
  0x5e   : > { %2011 = shalt.err (!%p2008_p2)
}
  0x5f   : > { %s2012_s14 = scalar_lea.vmem %s328_s21, 16  ;;  %s2019_s18 = scalar_lea.vmem %s328_s21, 32 }
  0x60   : > { %p2013_p5 = scmp.ne.s32.totalorder %s328_s21, %s2012_s14  ;;  %p2020_p4 = scmp.lt.s32.totalorder %s328_s21, %s328_s21 }
  0x61   : > { %p2021_p10 = scmp.lt.s32.totalorder %s2019_s18, %s2012_s14 }
  0x62   : > { %p2015_p7 = pnand %p2013_p5, %p2408_p8 }
  0x63   : > { %p2022_p1 = por %p2021_p10, %p2020_p4 }
  0x64   : > { %p2016_p9 = pneg %p2015_p7 }
  0x66   : > { %p2023_p3 = pnand %p2022_p1, %p2016_p9 }
  0x68   : > { %2026 = shalt.err (!%p2023_p3)
}
  0x69   : > { %1804 = dma.hbm_to_vmem [thread:$0]  (!%p2392_p6), %s2894_s7, 16, %s328_s21, [#allocation15]  }
  0x6a   : > { %s1562_s20 = sadd.s32 4294967294, %s2283_s12   ;;  %s2473_s22 = sadd.s32 1, %s2283_s12  }
  0x6b   : > { %2895 = sst [smem:[#allocation26_spill]] %s2473_s22  ;;  %s38_s23 = sadd.s32 1, %s2279_s11 }
  0x6c   : > { %s35_s24 = ssub.s32 %s2283_s12, %s2473_s22  ;;  %p45_p1 = scmp.ne.s32.totalorder %s2279_s11, %s2275_s10 }
  0x6d   : > { %p36_p3 = scmp.eq.s32.totalorder %s35_s24, 0  ;;  %p46_p11 = scmp.eq.s32.totalorder %s2283_s12, 0 }
  0x6e   : > { %p51_p12 = scmp.ne.s32.totalorder %s2275_s10, %s2271_s30  ;;  %p253_p13 = scmp.eq.s32.totalorder %s2376_s15, 1 }
  0x6f   : > { %s2485_s25 = scalar_select %p36_p3, %s2279_s11, %s38_s23  }
  0x70   : > { %p47_p0 = por %p46_p11, %p45_p1  ;;  %p2897_p2 = scmp.eq.s32.totalorder %s2376_s15, 0 }
  0x71   : > { %2896 = sst [smem:[#allocation27_spill]] %s2485_s25  ;;  %p2493_p7 = por %p253_p13, %p45_p1 }
  0x72   : > { %p2489_p5 = por %p2897_p2, %p51_p12  ;;  %p259_p9 = scmp.eq.s32.totalorder %s1562_s20, 1 }
  0x73   : > { %s2899_s26 = scalar_select %p2493_p7, 1, 0 }
  0x74   : > { %s2898_s21 = scalar_select %p2489_p5, 1, 0 }
  0x75   : > { %p1828_p4 = scmp.lt.s32.totalorder %s2283_s12, 2  ;;  %s2866_s28 = sand.u32 1, %s2279_s11  }
  0x76   : > { %p2499_p10 = por %p259_p9, %p51_p12  ;;  %s2505_s13 = sshll.u32 %s2866_s28, 3 }
  0x77   : > { %s2508_s14 = sshll.u32 %s2283_s12, 7  ;;  %p2510_p3 = pnand %p1828_p4, %p47_p0 }
  0x78   : > { %s2900_s29 = scalar_select %p2499_p10, 1, 0 }
  0x79   : > { %s2902_s18 = scalar_select %p2510_p3, 1, 0 }
  0x7a   : > { %2901 = sst [smem:[#allocation28_spill]] %s2900_s29  ;;  %s367_s17 = sand.u32 1, %s2283_s12  }
  0x7b   : > { %s2903_s1 = sld [smem:[#allocation29_spill]]  ;;  %s371_s24 = scalar_lea.vmem [#allocation5], %s2505_s13 }
  0x7c   : > { %s378_s28 = sshll.u32 %s371_s24, 4  ;;  %s2524_s3 = scalar_lea.sflag [#allocation6], %s367_s17  ;;  %s2522_s28 = int_to_ptr.vmem [resolvable:$true] %s378_s28 }
  0x7d   : > { %p2530_p11 = pneg %p2510_p3 }
  0x7f   : > { %s2904_s7 = scalar_select %p2530_p11, 1, 0 }
  0x81   : > { %s2519_s23 = scalar_lea.hbm %s2903_s1, %s2508_s14  ;;  %s2032_s25 = scalar_lea.hbm %s2903_s1, 256 }
  0x82   : > { %s2027_s5 = scalar_lea.hbm %s2519_s23, 128  ;;  %p2033_p0 = scmp.lt.u32.totalorder %s2519_s23, %s2903_s1 }
  0x83   : > { %p2028_p1 = scmp.ne.s32.totalorder %s2519_s23, %s2027_s5  ;;  %p2034_p2 = scmp.lt.u32.totalorder %s2032_s25, %s2027_s5 }
  0x84   : > { %p2036_p4 = scmp.lt.u32.totalorder %s2027_s5, %s2519_s23 }
  0x85   : > { %p2030_p12 = pnand %p2530_p11, %p2028_p1  ;;  %p2035_p9 = por %p2034_p2, %p2033_p0 }
  0x87   : > { %p2031_p13 = pneg %p2030_p12  ;;  %p2037_p10 = por %p2036_p4, %p2035_p9 }
  0x89   : > { %p2038_p7 = pnand %p2037_p10, %p2031_p13 }
  0x8b   : > { %2041 = shalt.err (!%p2038_p7)
}
  0x8c   : > { %s2042_s17 = scalar_lea.vmem %s2522_s28, 128  ;;  %s2292_s9 = smov [#allocation5]  }
  0x8d   : > { %p2043_p1 = scmp.ne.s32.totalorder %s2522_s28, %s2042_s17  ;;  %s2047_s20 = sshll.u32 %s2292_s9, 4  ;;  %s2048_s20 = int_to_ptr.vmem [resolvable:$false] %s2047_s20 }
  0x8e   : > { %s2049_s22 = scalar_lea.vmem %s2048_s20, 256  ;;  %p2050_p6 = scmp.lt.s32.totalorder %s2522_s28, %s2048_s20 }
  0x8f   : > { %p2045_p12 = pnand %p2043_p1, %p2530_p11  ;;  %p2051_p8 = scmp.lt.s32.totalorder %s2049_s22, %s2042_s17 }
  0x91   : > { %p2046_p5 = pneg %p2045_p12  ;;  %p2052_p0 = por %p2051_p8, %p2050_p6 }
  0x93   : > { %p2053_p2 = pnand %p2052_p0, %p2046_p5 }
  0x95   : > { %2056 = shalt.err (!%p2053_p2)
}
  0x96   : > { %1814 = dma.hbm_to_vmem [thread:$0]  (!%p2510_p3), %s2519_s23, 128, %s2522_s28, %s2524_s3  }
  0x97   : > { %s2293_s5 = smov [#allocation10]   ;;  %s2294_s24 = smov [#allocation13]  }
  0x98   : > { %s292_s25 = sshll.u32 %s2293_s5, 4  ;;  %s316_s1 = sshll.u32 %s2294_s24, 4  ;;  %s293_s25 = int_to_ptr.vmem [resolvable:$true] %s292_s25  ;;  %s317_s1 = int_to_ptr.vmem [resolvable:$true] %s316_s1 }
  0x99   : > { %s2057_s20 = scalar_lea.hbm %s2857_s4, 48  ;;  %p2905_p8 = scmp.ne.s32.totalorder %s2892_s27, 0 }
  0x9a   : > { %p2058_p6 = scmp.ne.s32.totalorder %s2857_s4, %s2057_s20  ;;  %p2064_p10 = scmp.lt.u32.totalorder %s2057_s20, %s2857_s4 }
  0x9c   : > { %p2060_p5 = pnand %p2058_p6, %p2905_p8 }
  0x9e   : > { %p2061_p7 = pneg %p2060_p5 }
  0xa0   : > { %p2066_p13 = pnand %p2064_p10, %p2061_p7 }
  0xa2   : > { %2069 = shalt.err (!%p2066_p13)
}
  0xa3   : > { %s2070_s28 = scalar_lea.vmem %s293_s25, 48  ;;  %s2077_s12 = scalar_lea.vmem %s293_s25, 64 }
  0xa4   : > { %p2071_p9 = scmp.ne.s32.totalorder %s293_s25, %s2070_s28  ;;  %p2078_p12 = scmp.lt.s32.totalorder %s293_s25, %s293_s25 }
  0xa5   : > { %p2079_p0 = scmp.lt.s32.totalorder %s2077_s12, %s2070_s28 }
  0xa6   : > { %p2073_p4 = pnand %p2071_p9, %p2905_p8 }
  0xa7   : > { %p2080_p2 = por %p2079_p0, %p2078_p12 }
  0xa8   : > { %p2074_p1 = pneg %p2073_p4 }
  0xaa   : > { %p2081_p3 = pnand %p2080_p2, %p2074_p1 }
  0xac   : > { %2084 = shalt.err (!%p2081_p3)
}
  0xad   : > { %p2906_p6 = scmp.ne.s32.totalorder %s2890_s19, 0  ;;  %s2085_s24 = scalar_lea.hbm %s2859_s6, 16 }
  0xae   : > { %p2086_p5 = scmp.ne.s32.totalorder %s2859_s6, %s2085_s24  ;;  %p2092_p3 = scmp.lt.u32.totalorder %s2085_s24, %s2859_s6 }
  0xaf   : > { %1795 = dma.hbm_to_vmem [thread:$0]  (!%p2906_p6), %s2857_s4, 48, %s293_s25, [#allocation9]  }
  0xb0   : > { %p2088_p7 = pnand %p2086_p5, %p2905_p8 }
  0xb2   : > { %p2089_p10 = pneg %p2088_p7 }
  0xb4   : > { %p2094_p13 = pnand %p2092_p3, %p2089_p10 }
  0xb6   : > { %2097 = shalt.err (!%p2094_p13)
}
  0xb7   : > { %s2098_s28 = scalar_lea.vmem %s317_s1, 16  ;;  %s2105_s25 = scalar_lea.vmem %s317_s1, 32 }
  0xb8   : > { %p2099_p9 = scmp.ne.s32.totalorder %s317_s1, %s2098_s28  ;;  %p2106_p12 = scmp.lt.s32.totalorder %s317_s1, %s317_s1 }
  0xb9   : > { %p2107_p0 = scmp.lt.s32.totalorder %s2105_s25, %s2098_s28 }
  0xba   : > { %p2101_p4 = pnand %p2099_p9, %p2905_p8 }
  0xbb   : > { %p2108_p2 = por %p2107_p0, %p2106_p12 }
  0xbc   : > { %p2102_p1 = pneg %p2101_p4 }
  0xbe   : > { %p2109_p11 = pnand %p2108_p2, %p2102_p1 }
  0xc0   : > { %2112 = shalt.err (!%p2109_p11)
}
  0xc1   : > { %1801 = dma.hbm_to_vmem [thread:$0]  (!%p2906_p6), %s2859_s6, 16, %s317_s1, [#allocation12]  }
  0xc2   : > { %s2295_s5 = smov [#allocation16]   ;;  %s2113_s9 = scalar_lea.hbm %s2861_s8, 16 }
  0xc3   : > { %s338_s30 = sshll.u32 %s2295_s5, 4  ;;  %p2114_p5 = scmp.ne.s32.totalorder %s2861_s8, %s2113_s9  ;;  %s339_s30 = int_to_ptr.vmem [resolvable:$true] %s338_s30 }
  0xc4   : > { %p2120_p10 = scmp.lt.u32.totalorder %s2113_s9, %s2861_s8 }
  0xc5   : > { %p2116_p11 = pnand %p2114_p5, %p2905_p8 }
  0xc7   : > { %p2117_p7 = pneg %p2116_p11 }
  0xc9   : > { %p2122_p3 = pnand %p2120_p10, %p2117_p7 }
  0xcb   : > { %2125 = shalt.err (!%p2122_p3)
}
  0xcc   : > { %s2126_s1 = scalar_lea.vmem %s339_s30, 16  ;;  %s2133_s25 = scalar_lea.vmem %s339_s30, 32 }
  0xcd   : > { %p2127_p13 = scmp.ne.s32.totalorder %s339_s30, %s2126_s1  ;;  %p2134_p1 = scmp.lt.s32.totalorder %s339_s30, %s339_s30 }
  0xce   : > { %p2135_p12 = scmp.lt.s32.totalorder %s2133_s25, %s2126_s1 }
  0xcf   : > { %p2129_p9 = pnand %p2127_p13, %p2905_p8 }
  0xd0   : > { %p2136_p0 = por %p2135_p12, %p2134_p1 }
  0xd1   : > { %p2130_p4 = pneg %p2129_p9 }
  0xd3   : > { %p2137_p2 = pnand %p2136_p0, %p2130_p4 }
  0xd5   : > { %2140 = shalt.err (!%p2137_p2)
}
  0xd6   : > { %1807 = dma.hbm_to_vmem [thread:$0]  (!%p2906_p6), %s2861_s8, 16, %s339_s30, [#allocation15]  }
  0xd7   : > { %s2612_s29 = scalar_lea.hbm %s2853_s0, %s2508_s14  ;;  %s353_s24 = scalar_lea.vmem [#allocation2], %s2505_s13 }
  0xd8   : > { %s360_s9 = sshll.u32 %s353_s24, 4  ;;  %s2907_s19 = sand.u32 1, %s2279_s11   ;;  %s361_s9 = int_to_ptr.vmem [resolvable:$true] %s360_s9 }
  0xd9   : > { %s350_s20 = scalar_lea.sflag [#allocation3], %s2907_s19  ;;  %s2141_s17 = scalar_lea.hbm %s2612_s29, 128 }
  0xda   : > { %p2142_p8 = scmp.ne.s32.totalorder %s2612_s29, %s2141_s17  ;;  %p2908_p5 = scmp.ne.s32.totalorder %s2904_s7, 0 }
  0xdb   : > { %s2146_s28 = scalar_lea.hbm %s2853_s0, 256  ;;  %p2147_p6 = scmp.lt.u32.totalorder %s2612_s29, %s2853_s0 }
  0xdc   : > { %p2144_p11 = pnand %p2142_p8, %p2908_p5  ;;  %p2148_p10 = scmp.lt.u32.totalorder %s2146_s28, %s2141_s17 }
  0xdd   : > { %p2150_p13 = scmp.lt.u32.totalorder %s2141_s17, %s2612_s29 }
  0xde   : > { %p2145_p7 = pneg %p2144_p11  ;;  %p2149_p3 = por %p2148_p10, %p2147_p6 }
  0xe0   : > { %p2151_p9 = por %p2150_p13, %p2149_p3 }
  0xe2   : > { %p2152_p4 = pnand %p2151_p9, %p2145_p7 }
  0xe4   : > { %2155 = shalt.err (!%p2152_p4)
}
  0xe5   : > { %s2156_s12 = scalar_lea.vmem %s361_s9, 128  ;;  %s2296_s23 = smov [#allocation2]  }
  0xe6   : > { %p2157_p1 = scmp.ne.s32.totalorder %s361_s9, %s2156_s12  ;;  %s2161_s5 = sshll.u32 %s2296_s23, 4  ;;  %s2162_s5 = int_to_ptr.vmem [resolvable:$false] %s2161_s5 }
  0xe7   : > { %s2163_s27 = scalar_lea.vmem %s2162_s5, 256  ;;  %p2164_p2 = scmp.lt.s32.totalorder %s361_s9, %s2162_s5 }
  0xe8   : > { %p2159_p12 = pnand %p2157_p1, %p2908_p5  ;;  %p2165_p8 = scmp.lt.s32.totalorder %s2163_s27, %s2156_s12 }
  0xea   : > { %p2160_p0 = pneg %p2159_p12  ;;  %p2166_p11 = por %p2165_p8, %p2164_p2 }
  0xec   : > { %p2167_p6 = pnand %p2166_p11, %p2160_p0 }
  0xee   : > { %2170 = shalt.err (!%p2167_p6)
}
  0xef   : > { %p2909_p10 = scmp.ne.s32.totalorder %s2902_s18, 0  ;;  %s2638_s17 = scalar_lea.hbm %s2855_s2, %s2508_s14 }
  0xf0   : > { %s389_s30 = scalar_lea.vmem [#allocation7], %s2505_s13  ;;  %s2171_s28 = scalar_lea.hbm %s2638_s17, 128 }
  0xf1   : > { %1811 = dma.hbm_to_vmem [thread:$0]  (!%p2909_p10), %s2612_s29, 128, %s361_s9, %s350_s20  }
  0xf2   : > { %s396_s22 = sshll.u32 %s389_s30, 4  ;;  %p2172_p7 = scmp.ne.s32.totalorder %s2638_s17, %s2171_s28  ;;  %s397_s22 = int_to_ptr.vmem [resolvable:$true] %s396_s22 }
  0xf3   : > { %s2176_s29 = scalar_lea.hbm %s2855_s2, 256  ;;  %p2177_p9 = scmp.lt.u32.totalorder %s2638_s17, %s2855_s2 }
  0xf4   : > { %p2174_p3 = pnand %p2172_p7, %p2908_p5  ;;  %p2178_p4 = scmp.lt.u32.totalorder %s2176_s29, %s2171_s28 }
  0xf5   : > { %p2180_p12 = scmp.lt.u32.totalorder %s2171_s28, %s2638_s17 }
  0xf6   : > { %p2175_p13 = pneg %p2174_p3  ;;  %p2179_p1 = por %p2178_p4, %p2177_p9 }
  0xf8   : > { %p2181_p0 = por %p2180_p12, %p2179_p1 }
  0xfa   : > { %p2182_p2 = pnand %p2181_p0, %p2175_p13 }
  0xfc   : > { %2185 = shalt.err (!%p2182_p2)
}
  0xfd   : > { %s2186_s13 = scalar_lea.vmem %s397_s22, 128  ;;  %s2297_s14 = smov [#allocation7]  }
  0xfe   : > { %p2187_p8 = scmp.ne.s32.totalorder %s397_s22, %s2186_s13  ;;  %s2191_s12 = sshll.u32 %s2297_s14, 4  ;;  %s2192_s12 = int_to_ptr.vmem [resolvable:$false] %s2191_s12 }
  0xff   : > { %s2193_s23 = scalar_lea.vmem %s2192_s12, 256  ;;  %p2194_p7 = scmp.lt.s32.totalorder %s397_s22, %s2192_s12 }
 0x100   : > { %p2189_p11 = pnand %p2187_p8, %p2908_p5  ;;  %p2195_p3 = scmp.lt.s32.totalorder %s2193_s23, %s2186_s13 }
 0x102   : > { %p2190_p6 = pneg %p2189_p11  ;;  %p2196_p10 = por %p2195_p3, %p2194_p7 }
 0x104   : > { %p2197_p4 = pnand %p2196_p10, %p2190_p6 }
 0x106   : > { %2200 = shalt.err (!%p2197_p4)
}
 0x107   : > { %p2910_p9 = scmp.ne.s32.totalorder %s2902_s18, 0  ;;  %p2911_p13 = scmp.ne.s32.totalorder %s2889_s16, 0 }
 0x108   : > { %s2662_s7 = sand.u32 (!%p2911_p13), 1, %s2275_s10   ;;  %p2912_p5 = scmp.ne.s32.totalorder (!%p2911_p13), %s2898_s21, 0 }
 0x109   : > { %1817 = dma.hbm_to_vmem [thread:$0]  (!%p2910_p9), %s2638_s17, 128, %s397_s22, %s2524_s3  }
 0x10a   : > { %405 = sbr.rel (%p2911_p13) target bundleno = 2513 (0x9d1), region = 56  ;;  %s2665_s5 = sshll.u32 (!%p2911_p13), %s2662_s7, 3 }
 0x10b   : > { %s408_s27 = scalar_lea.sflag (!%p2911_p13), [#allocation3], %s2662_s7  ;;  %s411_s24 = scalar_lea.vmem (!%p2911_p13), [#allocation2], %s2665_s5 }
 0x111   : > { %2246 = dma.done.wait (%p2912_p5), %s408_s27, 128  }
 0x112   : > { %2248 = vsyncadd (%p2912_p5), %s408_s27, 4294967168  ;;  %s416_s3 = sand.u32 1, %s2376_s15   ;;  %s420_s18 = scalar_lea.vmem [#allocation5], %s2665_s5 }
 0x113   : > { %s417_s16 = scalar_lea.sflag [#allocation6], %s416_s3 }
 0x114   : > { %2250 = dma.done.wait (%p2912_p5), %s417_s16, 256  }
 0x115   : > { %2252 = vsyncadd (%p2912_p5), %s417_s16, 4294967040  ;;  %s429_s19 = scalar_lea.vmem [#allocation7], %s2665_s5  ;;  %p2913_p10 = scmp.eq.s32.totalorder %s2376_s15, 0 }
 0x117   : > { %2254 = dma.done.wait (%p2913_p10), [#allocation9], 3120   ;;  %p2914_p1 = pmov %p2913_p10 }
 0x119   : > { %2256 = vsyncadd (%p2914_p1), [#allocation9], 4294964176  ;;  %p2915_p12 = pmov %p2914_p1 }
 0x11a   : > { %p2916_p0 = pmov %p2914_p1 }
 0x11b   : > { %2258 = dma.done.wait (%p2915_p12), [#allocation12], 1040  }
 0x11c   : > { %2260 = vsyncadd (%p2916_p0), [#allocation12], 4294966256  ;;  %p2917_p2 = pmov %p2916_p0 }
 0x11d   : > { %p2918_p8 = pmov %p2916_p0 }
 0x11e   : > { %2262 = dma.done.wait (%p2917_p2), [#allocation15], 32  }
 0x11f   : > { %2264 = vsyncadd (%p2918_p8), [#allocation15], 4294967264  ;;  %v2298_v0 = vmov 0   ;;  %v2299_v1 = vmov 0.0   ;;  %v1885_v2 = vld [vmem:[#allocation8 + $0x4] ss:$12 sps:$4 sm:$0xff]   ;;  %v535_v28 = vlaneseq }
 0x120   : > { %710 = vmatprep.mubr.bf16.mxu0 %v2298_v0  ;;  %1669 = vmatprep.subr.bf16.mxu1 %v2299_v1  ;;  %v1887_v3 = vld [vmem:[#allocation8] ss:$12 sps:$4 sm:$0xff]   ;;  %v1888_v4 = vld [vmem:[#allocation8 + $0x1c] ss:$12 sps:$4 sm:$0xff]   ;;  %v1890_v5 = vld [vmem:[#allocation8 + $0x18] ss:$12 sps:$4 sm:$0xff]  }
 0x121   : > { %1884 = vset.pattern.permute.xlu0 %v2298_v0  ;;  %678 = vmatprep.subr.bf16.mxu0 %v1885_v2  ;;  %v1891_v6 = vld [vmem:[#allocation8 + $0x34] ss:$12 sps:$4 sm:$0xff]   ;;  %v1893_v7 = vld [vmem:[#allocation8 + $0x30] ss:$12 sps:$4 sm:$0xff]   ;;  %v1894_v8 = vld [vmem:[#allocation8 + $0x4c] ss:$12 sps:$4 sm:$0xff]  }
 0x122   : > { %679 = vmatpush1.bf16.msra.mxu0 %v1887_v3  ;;  %v1896_v9 = vld [vmem:[#allocation8 + $0x48] ss:$12 sps:$4 sm:$0xff]   ;;  %v1897_v11 = vld [vmem:[#allocation8 + $0x64] ss:$12 sps:$4 sm:$0xff]   ;;  %v1910_v12 = vld [vmem:[#allocation8 + $0x20] ss:$12 sps:$4 sm:$0xff]  }
 0x123   : > { %680 = vmatprep.subr.bf16.mxu0 %v1888_v4  ;;  %v1909_v10 = vld [vmem:[#allocation8 + $0x8] ss:$12 sps:$4 sm:$0xff]   ;;  %v1899_v13 = vld [vmem:[#allocation8 + $0x60] ss:$12 sps:$4 sm:$0xff]   ;;  %v1902_v15 = vld [vmem:[#allocation8 + $0x78] ss:$12 sps:$4 sm:$0xff]  }
 0x124   : > { %1670 = vmatpush3.bf16.msra.mxu1 %v1909_v10  ;;  %v1900_v14 = vld [vmem:[#allocation8 + $0x7c] ss:$12 sps:$4 sm:$0xff]   ;;  %v1911_v16 = vld [vmem:[#allocation8 + $0x38] ss:$12 sps:$4 sm:$0xff]   ;;  %v1903_v17 = vld [vmem:[#allocation8 + $0x94] ss:$12 sps:$4 sm:$0xff]  }
 0x125   : > { %1671 = vmatprep.subr.bf16.mxu1 %v2299_v1  ;;  %v1912_v18 = vld [vmem:[#allocation8 + $0x50] ss:$12 sps:$4 sm:$0xff]   ;;  %v1906_v20 = vld [vmem:[#allocation8 + $0xac] ss:$12 sps:$4 sm:$0xff]   ;;  %v1913_v21 = vld [vmem:[#allocation8 + $0x68] ss:$12 sps:$4 sm:$0xff]  }
 0x126   : > { %681 = vmatpush1.bf16.msra.mxu0 %v1890_v5  ;;  %v1905_v19 = vld [vmem:[#allocation8 + $0x90] ss:$12 sps:$4 sm:$0xff]   ;;  %v1908_v22 = vld [vmem:[#allocation8 + $0xa8] ss:$12 sps:$4 sm:$0xff]   ;;  %v1914_v24 = vld [vmem:[#allocation8 + $0x80] ss:$12 sps:$4 sm:$0xff]  }
 0x127   : > { %682 = vmatprep.subr.bf16.mxu0 %v1891_v6  ;;  %v2699_v23 = vld [vmem:[%s411_s24] sm:$0xff]  ;;  %vm2300_vm0 = vmmov 0   ;;  %v536_v29 = vshrl.u32 %v535_v28, 7  ;;  %v533_v31 = vld [vmem:[#allocation10] sm:$0x7]  ;;  %vm763_vm1 = vcmask 261120  }
 0x128   : > { %1672 = vmatpush3.bf16.msra.mxu1 %v1910_v12  ;;  %v500_v25 = vpack.c.bf16 %v2699_v23, %v2699_v23  ;;  %v1915_v26 = vld [vmem:[#allocation8 + $0x98] ss:$12 sps:$4 sm:$0xff]   ;;  %v1916_v27 = vld [vmem:[#allocation8 + $0xb0] ss:$12 sps:$4 sm:$0xff]   ;;  %1685 = vmatprep.mubr.msk.bf16.mxu1 %vm2300_vm0, %v2299_v1  ;;  %s2301_s21 = smov 96   ;;  %s2302_s17 = smov 64  }
 0x129   : > { %1673 = vmatprep.subr.bf16.mxu1 %v2299_v1  ;;  %v541_v30 = vsub.s32 1, %v536_v29  ;;  %v537_v32 = vsub.s32 0, %v536_v29  ;;  %s2303_s30 = smov 32   ;;  %v545_v44 = vsub.s32 2, %v536_v29  ;;  %vm829_vm2 = vcmask 1043456   ;;  %v2731_v53 = vld [vmem:[%s420_s18] sm:$0xff] }
 0x12a   : > { %683 = vmatpush1.bf16.msra.mxu0 %v1893_v7  ;;  %vm811_vm3 = vcmp.gt.f32.partialorder %v2731_v53, 0.5  ;;  %vm813_vm4 = vcmask 64512   ;;  %vm1225_vm5 = vcmask 523264   ;;  %vm1227_vm6 = vcmask 785408   ;;  %s1632_s22 = sshll.u32 %s2376_s15, 7  ;;  %s497_s28 = scalar_lea.vmem [#allocation17], %s2665_s5 }
 0x12b   : > { %684 = vmatprep.subr.bf16.mxu0 %v1894_v8  ;;  %v542_v33 = vrot.slane %v533_v31, %v541_v30  ;;  %v538_v34 = vrot.slane %v533_v31, %v537_v32  ;;  %v546_v45 = vrot.slane %v533_v31, %v545_v44  ;;  %s1392_s1 = sshll.u32 %s497_s28, 4  ;;  %s2919_s9 = sld [smem:[#allocation33_spill]]  ;;  %s2811_s1 = int_to_ptr.vmem [resolvable:$true] %s1392_s1 }
 0x12c   : > { %1674 = vmatpush3.bf16.msra.mxu1 %v1911_v16  ;;  %s1379_s13 = scalar_lea.sflag [#allocation4], %s2662_s7  ;;  %s2201_s14 = scalar_lea.vmem %s2811_s1, 128 }
 0x12d   : > { %1675 = vmatprep.subr.bf16.mxu1 %v2299_v1  ;;  %p2202_p11 = scmp.ne.s32.totalorder %s2811_s1, %s2201_s14  ;;  %p2920_p6 = scmp.ne.s32.totalorder %s2899_s26, 0 }
 0x12e   : > { %685 = vmatpush1.bf16.msra.mxu0 %v1896_v9  ;;  %s2304_s15 = smov [#allocation17]  }
 0x12f   : > { %686 = vmatprep.subr.bf16.mxu0 %v1897_v11  ;;  %p2203_p7 = pnand %p2202_p11, %p2920_p6  ;;  %s2205_s12 = sshll.u32 %s2304_s15, 4  ;;  %s2206_s12 = int_to_ptr.vmem [resolvable:$false] %s2205_s12 }
 0x130   : > { %1676 = vmatpush3.bf16.msra.mxu1 %v1912_v18  ;;  %s2207_s23 = scalar_lea.vmem %s2206_s12, 256  ;;  %p2208_p4 = scmp.lt.s32.totalorder %s2811_s1, %s2206_s12 }
 0x131   : > { %1677 = vmatprep.subr.bf16.mxu1 %v2299_v1  ;;  %s2809_s20 = scalar_lea.hbm %s2919_s9, %s1632_s22  ;;  %p2204_p3 = pneg %p2203_p7 }
 0x132   : > { %687 = vmatpush1.bf16.msra.mxu0 %v1899_v13  ;;  %p2209_p9 = scmp.lt.s32.totalorder %s2207_s23, %s2201_s14 }
 0x133   : > { %688 = vmatprep.subr.bf16.mxu0 %v1900_v14 }
 0x134   : > { %1678 = vmatpush3.bf16.msra.mxu1 %v1913_v21  ;;  %p2210_p13 = por %p2209_p9, %p2208_p4 }
 0x135   : > { %1679 = vmatprep.subr.bf16.mxu1 %v2299_v1 }
 0x136   : > { %689 = vmatpush1.bf16.msra.mxu0 %v1902_v15  ;;  %p2211_p5 = pnand %p2210_p13, %p2204_p3 }
 0x137   : > { %690 = vmatprep.subr.bf16.mxu0 %v1903_v17 }
 0x138   : > { %1680 = vmatpush3.bf16.msra.mxu1 %v1914_v24 }
 0x139   : > { %1681 = vmatprep.subr.bf16.mxu1 %v2299_v1 }
 0x13a   : > { %691 = vmatpush1.bf16.msra.mxu0 %v1905_v19 }
 0x13b   : > { %692 = vmatprep.subr.bf16.mxu0 %v1906_v20 }
 0x13c   : > { %1682 = vmatpush3.bf16.msra.mxu1 %v1915_v26 }
 0x13d   : > { %1683 = vmatprep.subr.bf16.mxu1 %v2299_v1 }
 0x13e   : > { %693 = vmatpush1.bf16.msra.mxu0 %v1908_v22 }
 0x13f   : > { %1713 = vmatprep.subr.bf16.mxu0 %v2299_v1 }
 0x140   : > { %1684 = vmatpush3.bf16.msra.mxu1 %v1916_v27 }
 0x141   : > { %711 = vmatmul.mubr.bf16.vlgmr.msra.gmra.mrb[0].mxu0 %v500_v25  ;;  %1689 = vmatprep.subr.bf16.mxu1 %v2299_v1 }
 0x142   : > { %1715 = vmatprep.mubr.msk.bf16.mxu0 %vm2300_vm0, %v2299_v1 }
 0x143   : > { %1686 = vmatmul.mubr.bf16.vlgmr.msra.gmra.mrb[0].mxu1 %v500_v25 }
 0x144   : > { %1691 = vmatprep.mubr.msk.bf16.mxu1 %vm2300_vm0, %v2299_v1 }
 0x214   : > { %v712_v35 = vpop.f32.mrb[0].mxu0 }
 0x215   : > { %v714_v36 = vpop.f32.mrb[1].mxu0  ;;  %v713_v40 = vadd.f32 %v712_v35, %v538_v34 }
 0x216   : > { %v715_v37 = vadd.f32 %v714_v36, %v542_v33  ;;  %v716_v38 = vpop.f32.mrb[2].mxu0  ;;  %v753_v46 = vpop.f32.mrb[0].mxu1 }
 0x217   : > { %v717_v39 = vpop.f32.mrb[3].mxu0  ;;  %v760_v43 = vpack.c.bf16 %v713_v40, %v713_v40  ;;  %v754_v47 = vadd.f32 %v753_v46, %v546_v45  ;;  %v1687_v48 = vpop.f32.mrb[1].mxu1 }
 0x218   : > { %v761_v41 = vpack.c.bf16 %v715_v37, %v715_v37  ;;  %v756_v49 = vpop.f32.mrb[2].mxu1 }
 0x219   : > { %v2724_v50 = vpack.c.bf16 %v754_v47, %v754_v47  ;;  %v1688_v51 = vpop.f32.mrb[3].mxu1 }
 0x21a   : > { %877 = vrot.lane.b32.xlu1 %v761_v41, %s2301_s21  ;;  %v768_v42 = vsel %vm763_vm1, %v761_v41, 0 }
 0x21b   : > { %1690 = vmatpush3.bf16.xpose.msra.mxu1 %v768_v42  ;;  %v831_v52 = vsel %vm829_vm2, %v2724_v50, 0 }
 0x21c   : > { %1695 = vmatprep.subr.bf16.mxu1 %v2299_v1 }
 0x21e   : > { %874 = vrot.lane.b32.xlu1 %v760_v43, %s2301_s21 }
 0x222   : > { %988 = vrot.lane.b32.xlu1 %v760_v43, %s2302_s17  ;;  %1692 = vmatmul.mubr.msk.bf16.vlgmr.msra.gmra.mrb[4].mxu1 %vm763_vm1, %v760_v43 }
 0x223   : > { %1697 = vmatprep.mubr.msk.bf16.mxu1 %vm2300_vm0, %v2299_v1  ;;  %1696 = vmatpush3.bf16.msra.mxu1 %v831_v52 }
 0x224   : > { %1701 = vmatprep.subr.bf16.mxu1 %v2299_v1 }
 0x226   : > { %1102 = vrot.lane.b32.xlu1 %v761_v41, %s2303_s30 }
 0x22a   : > { %1100 = vrot.lane.b32.xlu1 %v760_v43, %s2303_s30 }
 0x28c   : > { %v878_v3 = vpop.permute.xlu1 %877 }
 0x28d   : > { %v883_v14 = vsel %vm763_vm1, %v878_v3, 0 }
 0x290   : > { %v875_v4 = vpop.permute.xlu1 %874 }
 0x294   : > { %v989_v6 = vpop.permute.xlu1 %988 }
 0x298   : > { %v1103_v9 = vpop.permute.xlu1 %1102 }
 0x299   : > { %v1108_v12 = vsel %vm763_vm1, %v1103_v9, 0 }
 0x29c   : > { %v1101_v15 = vpop.permute.xlu1 %1100 }
 0x2f5   : > { %v804_v54 = vpop.f32.mrb[4].mxu1 }
 0x2f6   : > { %v810_v55 = vmul.f32 0.17677669, %v804_v54  ;;  %v1693_v56 = vpop.f32.mrb[5].mxu1 }
 0x2f7   : > { %v807_v57 = vpop.f32.mrb[6].mxu1 }
 0x2f8   : > { %v1694_v58 = vpop.f32.mrb[7].mxu1  ;;  %v812_v59 = vsel %vm811_vm3, -1e+30, %v810_v55 }
 0x2f9   : > { %v814_v60 = vsel %vm813_vm4, %v812_v59, -inf }
 0x2fa   : > { %815 = vmax.xlane.f32.xlu0 %v814_v60 }
 0x387   : > { %v816_v61 = vpop.xlane.xlu0 %815 }
 0x388   : > { %v817_v62 = vsub.f32 %v812_v59, %v816_v61 }
 0x38a   : > { %v818_v63 = vmul.f32 1.442695, %v817_v62 }
 0x38c   : > { %1925 = vpow2.f32 %v818_v63 }
 0x396   : > { %v1926_v0 = vpop.eup %1925 }
 0x397   : > { %v820_v2 = vsel %vm813_vm4, %v1926_v0, 0.0 }
 0x398   : > { %821 = vadd.xlane.f32.xlu0 %v820_v2 }
 0x3ae   : > { %990 = vrot.lane.b32.xlu0 %v761_v41, %s2302_s17 }
 0x425   : > { %v822_v5 = vpop.xlane.xlu0 %821 }
 0x426   : > { %1927 = vrcp.f32 %v822_v5 }
 0x429   : > { %v991_v7 = vpop.permute.xlu0 %990 }
 0x42a   : > { %v996_v8 = vsel %vm763_vm1, %v991_v7, 0 }
 0x42b   : > { %1714 = vmatpush3.bf16.xpose.msra.mxu0 %v996_v8 }
 0x42c   : > { %1725 = vmatprep.subr.bf16.mxu0 %v2299_v1 }
 0x430   : > { %v1928_v10 = vpop.eup %1927 }
 0x431   : > { %v824_v11 = vmul.f32 %v1928_v10, %v1926_v0 }
 0x432   : > { %1716 = vmatmul.mubr.msk.bf16.vlgmr.msra.gmra.mrb[4].mxu0 %vm763_vm1, %v989_v6 }
 0x433   : > { %1726 = vmatpush3.bf16.xpose.msra.mxu0 %v1108_v12  ;;  %v825_v13 = vpack.c.bf16 %v824_v11, %v824_v11  ;;  %1727 = vmatprep.mubr.msk.bf16.mxu0 %vm2300_vm0, %v2299_v1  ;;  %v1917_v12 = vld [vmem:[#allocation11] sm:$0xff]  }
 0x434   : > { %1737 = vmatprep.subr.bf16.mxu0 %v2299_v1 }
 0x435   : > { %1698 = vmatmul.mubr.msk.bf16.vlgmr.msra.gmra.mrb[8].mxu1 %vm813_vm4, %v825_v13  ;;  %v1918_v13 = vld [vmem:[#allocation11 + $0x8] sm:$0xff]  }
 0x436   : > { %1702 = vmatpush3.bf16.xpose.msra.mxu1 %v883_v14  ;;  %1703 = vmatprep.mubr.msk.bf16.mxu1 %vm2300_vm0, %v2299_v1  ;;  %v1919_v14 = vld [vmem:[#allocation11 + $0x10] sm:$0xff]  }
 0x437   : > { %1707 = vmatprep.subr.bf16.mxu1 %v2299_v1 }
 0x43a   : > { %1728 = vmatmul.mubr.msk.bf16.vlgmr.msra.gmra.mrb[8].mxu0 %vm763_vm1, %v1101_v15  ;;  %v1920_v15 = vld [vmem:[#allocation11 + $0x18] sm:$0xff]  }
 0x43b   : > { %1753 = vmatprep.mubr.msk.bf16.mxu0 %vm2300_vm0, %v2299_v1  ;;  %1738 = vmatpush3.bf16.msra.mxu0 %v1917_v12 }
 0x43c   : > { %1739 = vmatprep.subr.bf16.mxu0 %v2299_v1 }
 0x43d   : > { %1704 = vmatmul.mubr.msk.bf16.vlgmr.msra.gmra.mrb[12].mxu1 %vm763_vm1, %v875_v4 }
 0x43e   : > { %1709 = vmatprep.mubr.msk.bf16.mxu1 %vm2300_vm0, %v2299_v1 }
 0x43f   : > { %1740 = vmatpush3.bf16.msra.mxu0 %v1918_v13 }
 0x440   : > { %1741 = vmatprep.subr.bf16.mxu0 %v2299_v1 }
 0x443   : > { %1742 = vmatpush3.bf16.msra.mxu0 %v1919_v14 }
 0x444   : > { %1743 = vmatprep.subr.bf16.mxu0 %v2299_v1 }
 0x447   : > { %1744 = vmatpush3.bf16.msra.mxu0 %v1920_v15 }
 0x448   : > { %1745 = vmatprep.subr.bf16.mxu0 %v2299_v1 }
 0x505   : > { %v1032_v16 = vpop.f32.mrb[4].mxu0 }
 0x506   : > { %v1038_v17 = vmul.f32 0.17677669, %v1032_v16  ;;  %v1717_v18 = vpop.f32.mrb[5].mxu0  ;;  %v1921_v16 = vld [vmem:[#allocation11 + $0x20] sm:$0xff]  }
 0x507   : > { %v1035_v19 = vpop.f32.mrb[6].mxu0  ;;  %1746 = vmatpush3.bf16.msra.mxu0 %v1921_v16  ;;  %v1923_v18 = vld [vmem:[#allocation11 + $0x30] sm:$0xff]  }
 0x508   : > { %v2757_v20 = vpop.f32.mrb[8].mxu1  ;;  %v1718_v21 = vpop.f32.mrb[7].mxu0  ;;  %v1039_v22 = vsel %vm811_vm3, -1e+30, %v1038_v17  ;;  %1747 = vmatprep.subr.bf16.mxu0 %v2299_v1  ;;  %v1922_v17 = vld [vmem:[#allocation11 + $0x28] sm:$0xff]  }
 0x509   : > { %v1699_v24 = vpop.f32.mrb[9].mxu1  ;;  %v1040_v25 = vsel %vm813_vm4, %v1039_v22, -inf }
 0x50a   : > { %1041 = vmax.xlane.f32.xlu0 %v1040_v25  ;;  %v870_v26 = vpop.f32.mrb[10].mxu1  ;;  %v1924_v25 = vld [vmem:[#allocation11 + $0x38] sm:$0xff]  }
 0x50b   : > { %v1700_v27 = vpop.f32.mrb[11].mxu1  ;;  %1748 = vmatpush3.bf16.msra.mxu0 %v1922_v17 }
 0x50c   : > { %1749 = vmatprep.subr.bf16.mxu0 %v2299_v1 }
 0x50d   : > { %v1144_v28 = vpop.f32.mrb[8].mxu0 }
 0x50e   : > { %v1729_v29 = vpop.f32.mrb[9].mxu0  ;;  %v1150_v33 = vmul.f32 0.17677669, %v1144_v28 }
 0x50f   : > { %v1147_v30 = vpop.f32.mrb[10].mxu0  ;;  %1750 = vmatpush3.bf16.msra.mxu0 %v1923_v18 }
 0x510   : > { %v919_v31 = vpop.f32.mrb[12].mxu1  ;;  %v1730_v32 = vpop.f32.mrb[11].mxu0  ;;  %v1151_v40 = vsel %vm811_vm3, -1e+30, %v1150_v33  ;;  %1751 = vmatprep.subr.bf16.mxu0 %v2299_v1 }
 0x511   : > { %v925_v34 = vmul.f32 0.17677669, %v919_v31  ;;  %v1705_v35 = vpop.f32.mrb[13].mxu1  ;;  %v1152_v41 = vsel %vm813_vm4, %v1151_v40, -inf }
 0x512   : > { %v922_v36 = vpop.f32.mrb[14].mxu1 }
 0x513   : > { %v1706_v37 = vpop.f32.mrb[15].mxu1  ;;  %v926_v38 = vsel %vm811_vm3, -1e+30, %v925_v34  ;;  %1752 = vmatpush3.bf16.msra.mxu0 %v1924_v25 }
 0x514   : > { %v927_v39 = vsel %vm813_vm4, %v926_v38, -inf }
 0x515   : > { %928 = vmax.xlane.f32.xlu1 %v927_v39 }
 0x519   : > { %1153 = vmax.xlane.f32.xlu1 %v1152_v41 }
 0x597   : > { %v1042_v42 = vpop.xlane.xlu0 %1041 }
 0x598   : > { %v1043_v43 = vsub.f32 %v1039_v22, %v1042_v42 }
 0x59a   : > { %v1044_v44 = vmul.f32 1.442695, %v1043_v43 }
 0x59c   : > { %1929 = vpow2.f32 %v1044_v44 }
 0x5a2   : > { %v929_v45 = vpop.xlane.xlu1 %928 }
 0x5a3   : > { %v930_v46 = vsub.f32 %v926_v38, %v929_v45 }
 0x5a5   : > { %v931_v52 = vmul.f32 1.442695, %v930_v46 }
 0x5a6   : > { %v1930_v47 = vpop.eup %1929  ;;  %v1154_v48 = vpop.xlane.xlu1 %1153 }
 0x5a7   : > { %v1155_v49 = vsub.f32 %v1151_v40, %v1154_v48  ;;  %v1046_v51 = vsel %vm813_vm4, %v1930_v47, 0.0  ;;  %v1620_v40 = vld [vmem:[#allocation13] ss:$0 sm:$0xff] }
 0x5a8   : > { %1047 = vadd.xlane.f32.xlu0 %v1046_v51  ;;  %v1370_v51 = vld [vmem:[%s429_s19] sm:$0xff] }
 0x5a9   : > { %v1156_v54 = vmul.f32 1.442695, %v1155_v49 }
 0x5ab   : > { %1931 = vpow2.f32 %v1156_v54 }
 0x5ac   : > { %1933 = vpow2.f32 %v931_v52 }
 0x5b5   : > { %v1932_v53 = vpop.eup %1931 }
 0x5b6   : > { %v1158_v55 = vsel %vm813_vm4, %v1932_v53, 0.0  ;;  %v1934_v56 = vpop.eup %1933 }
 0x5b7   : > { %1159 = vadd.xlane.f32.xlu1 %v1158_v55  ;;  %v933_v57 = vsel %vm813_vm4, %v1934_v56, 0.0 }
 0x5bb   : > { %934 = vadd.xlane.f32.xlu1 %v933_v57  ;;  %v1630_v57 = vld [vmem:[#allocation16] ss:$0 sm:$0xff] }
 0x5be   : > { %940 = vrot.lane.b32.xlu0 %v2724_v50, %s2301_s21 }
 0x5cc   : > { %1052 = vrot.lane.b32.xlu1 %v2724_v50, %s2302_s17 }
 0x5d0   : > { %1164 = vrot.lane.b32.xlu1 %v2724_v50, %s2303_s30 }
 0x635   : > { %v1048_v58 = vpop.xlane.xlu0 %1047 }
 0x639   : > { %v941_v59 = vpop.permute.xlu0 %940 }
 0x63a   : > { %v946_v60 = vsel %vm829_vm2, %v941_v59, 0 }
 0x63b   : > { %1708 = vmatpush3.bf16.msra.mxu1 %v946_v60 }
 0x63c   : > { %1719 = vmatprep.subr.bf16.mxu1 %v2299_v1 }
 0x644   : > { %v1160_v61 = vpop.xlane.xlu1 %1159 }
 0x648   : > { %v935_v62 = vpop.xlane.xlu1 %934 }
 0x649   : > { %1935 = vrcp.f32 %v935_v62 }
 0x64a   : > { %1937 = vrcp.f32 %v1048_v58 }
 0x64b   : > { %1939 = vrcp.f32 %v1160_v61 }
 0x64c   : > { %v1053_v2 = vpop.permute.xlu1 %1052 }
 0x64d   : > { %v1058_v5 = vsel %vm829_vm2, %v1053_v2, 0 }
 0x650   : > { %v1165_v6 = vpop.permute.xlu1 %1164 }
 0x651   : > { %v1170_v9 = vsel %vm829_vm2, %v1165_v6, 0 }
 0x653   : > { %v1936_v63 = vpop.eup %1935 }
 0x654   : > { %v937_v0 = vmul.f32 %v1936_v63, %v1934_v56  ;;  %v1938_v4 = vpop.eup %1937  ;;  %v1629_v56 = vld [vmem:[#allocation14] ss:$0 sm:$0xff] }
 0x655   : > { %v1050_v50 = vmul.f32 %v1938_v4, %v1930_v47  ;;  %v1940_v8 = vpop.eup %1939 }
 0x656   : > { %v938_v3 = vpack.c.bf16 %v937_v0, %v937_v0  ;;  %v1162_v10 = vmul.f32 %v1940_v8, %v1932_v53 }
 0x657   : > { %v1051_v7 = vpack.c.bf16 %v1050_v50, %v1050_v50 }
 0x658   : > { %1710 = vmatmul.mubr.msk.bf16.vlgmr.msra.gmra.mrb[16].mxu1 %vm813_vm4, %v938_v3  ;;  %v1163_v11 = vpack.c.bf16 %v1162_v10, %v1162_v10 }
 0x659   : > { %1720 = vmatpush3.bf16.msra.mxu1 %v1058_v5  ;;  %1721 = vmatprep.mubr.msk.bf16.mxu1 %vm2300_vm0, %v2299_v1 }
 0x65a   : > { %1731 = vmatprep.subr.bf16.mxu1 %v2299_v1 }
 0x660   : > { %1722 = vmatmul.mubr.msk.bf16.vlgmr.msra.gmra.mrb[20].mxu1 %vm813_vm4, %v1051_v7 }
 0x661   : > { %1732 = vmatpush3.bf16.msra.mxu1 %v1170_v9  ;;  %1733 = vmatprep.mubr.msk.bf16.mxu1 %vm2300_vm0, %v2299_v1 }
 0x668   : > { %1734 = vmatmul.mubr.msk.bf16.vlgmr.msra.gmra.mrb[24].mxu1 %vm813_vm4, %v1163_v11 }
 0x72b   : > { %v982_v19 = vpop.f32.mrb[16].mxu1 }
 0x72c   : > { %1213 = vrot.lane.b32.xlu0 %v982_v19, %s2303_s30  ;;  %v1711_v21 = vpop.f32.mrb[17].mxu1 }
 0x72d   : > { %v985_v22 = vpop.f32.mrb[18].mxu1 }
 0x72e   : > { %v1712_v24 = vpop.f32.mrb[19].mxu1 }
 0x733   : > { %v1094_v26 = vpop.f32.mrb[20].mxu1 }
 0x734   : > { %1217 = vrot.lane.b32.xlu1 %v1094_v26, %s2302_s17  ;;  %v1723_v27 = vpop.f32.mrb[21].mxu1 }
 0x735   : > { %v1097_v28 = vpop.f32.mrb[22].mxu1 }
 0x736   : > { %v1724_v29 = vpop.f32.mrb[23].mxu1 }
 0x73b   : > { %v1206_v30 = vpop.f32.mrb[24].mxu1 }
 0x73c   : > { %1221 = vrot.lane.b32.xlu0 %v1206_v30, %s2301_s21  ;;  %v1735_v31 = vpop.f32.mrb[25].mxu1 }
 0x73d   : > { %v1209_v32 = vpop.f32.mrb[26].mxu1 }
 0x73e   : > { %v1736_v33 = vpop.f32.mrb[27].mxu1 }
 0x79e   : > { %v1214_v34 = vpop.permute.xlu0 %1213 }
 0x79f   : > { %v1224_v1 = vsel %vm763_vm1, %v2757_v20, %v1214_v34 }
 0x7a6   : > { %v1218_v35 = vpop.permute.xlu1 %1217 }
 0x7a7   : > { %v1226_v36 = vsel %vm1225_vm5, %v1224_v1, %v1218_v35 }
 0x7ae   : > { %v1222_v37 = vpop.permute.xlu0 %1221 }
 0x7af   : > { %v1228_v38 = vsel %vm1227_vm6, %v1226_v36, %v1222_v37 }
 0x7b0   : > { %v1229_v39 = vpack.c.bf16 %v1228_v38, %v1228_v38 }
 0x7b2   : > { %1754 = vmatmul.mubr.bf16.vlgmr.msra.gmra.mrb[12].mxu0 %v1229_v39 }
 0x885   : > { %v1335_v41 = vpop.f32.mrb[12].mxu0 }
 0x886   : > { %v1336_v42 = vadd.f32 %v1620_v40, %v1335_v41  ;;  %v1755_v43 = vpop.f32.mrb[13].mxu0 }
 0x887   : > { %v1338_v44 = vpop.f32.mrb[14].mxu0 }
 0x888   : > { %v1756_v45 = vpop.f32.mrb[15].mxu0  ;;  %v1341_v46 = vadd.f32 %v1336_v42, %v2699_v23 }
 0x88a   : > { %1344 = vadd.xlane.f32.xlu1 %v1341_v46 }
 0x917   : > { %v1345_v47 = vpop.xlane.xlu1 %1344 }
 0x918   : > { %v1347_v48 = vmul.f32 0.0078125, %v1345_v47 }
 0x91a   : > { %v1348_v49 = vsub.f32 %v1341_v46, %v1347_v48 }
 0x91c   : > { %v1349_v20 = vmul.f32 %v1348_v49, %v1348_v49 }
 0x91e   : > { %1350 = vadd.xlane.f32.xlu0 %v1349_v20 }
 0x934   : > { %1373 = vperm.xlu0 %1884, %v1370_v51  }
 0x9ab   : > { %v1351_v52 = vpop.xlane.xlu0 %1350 }
 0x9ac   : > { %v1352_v54 = vmul.f32 0.0078125, %v1351_v52 }
 0x9ae   : > { %v1353_v53 = vadd.f32 1e-05, %v1352_v54 }
 0x9b0   : > { %1941 = vrsqrt.f32 %v1353_v53 }
 0x9b3   : > { %v1374_v59 = vpop.permute.xlu0 %1373 }
 0x9ba   : > { %v1942_v55 = vpop.eup %1941 }
 0x9bb   : > { %v1355_v23 = vmul.f32 %v1942_v55, %v1348_v49 }
 0x9bd   : > { %v1362_v58 = vmul.f32 %v1629_v56, %v1355_v23 }
 0x9bf   : > { %v1369_v60 = vadd.f32 %v1630_v57, %v1362_v58 }
 0x9c1   : > { %v1376_v61 = vmul.f32 %v1374_v59, %v1369_v60 }
 0x9c3   : > { %1377 = vst [vmem:[%s497_s28] sm:$0xff] %v1376_v61 }
 0x9c4   : > { %2214 = shalt.err (!%p2211_p5)
}
 0x9c5   : > { %s2215_s7 = scalar_lea.hbm %s2809_s20, 128  ;;  %s2219_s24 = scalar_lea.hbm %s2919_s9, 256 }
 0x9c6   : > { %p2216_p10 = scmp.ne.s32.totalorder %s2809_s20, %s2215_s7  ;;  %p2220_p0 = scmp.lt.u32.totalorder %s2809_s20, %s2919_s9 }
 0x9c7   : > { %p2221_p2 = scmp.lt.u32.totalorder %s2219_s24, %s2215_s7  ;;  %p2223_p11 = scmp.lt.u32.totalorder %s2215_s7, %s2809_s20 }
 0x9c8   : > { %p2217_p1 = pnand %p2216_p10, %p2920_p6 }
 0x9c9   : > { %p2222_p8 = por %p2221_p2, %p2220_p0 }
 0x9ca   : > { %p2218_p12 = pneg %p2217_p1 }
 0x9cb   : > { %p2224_p7 = por %p2223_p11, %p2222_p8 }
 0x9cd   : > { %p2225_p3 = pnand %p2224_p7, %p2218_p12 }
 0x9cf   : > { %2228 = shalt.err (!%p2225_p3)
}
 0x9d0   : > { %1787 = dma.vmem_to_hbm [thread:$0]  (%p2920_p6), %s2811_s1, 128, %s2809_s20, %s1379_s13  }
 0x9d1 PF: > { %s2921_s18 = sld [smem:[#allocation24_spill]]  ;;  %s2922_s19 = sld [smem:[#allocation28_spill]] }
 0x9d2   : > { %s2923_s21 = sld [smem:[#allocation25_spill]] }
 0x9d7   : > { %s1404_s17 = sand.u32 1, %s2921_s18   ;;  %p2924_p4 = scmp.ne.s32.totalorder %s2922_s19, 0 }
 0x9d8   : > { %p2925_p9 = scmp.ge.s32.totalorder %s2923_s21, 2  ;;  %s1405_s30 = scalar_lea.sflag [#allocation4], %s1404_s17 }
 0x9da   : > { %p1819_p13 = pnand %p2925_p9, %p2924_p4 }
 0x9dc   : > { %2266 = dma.done.wait (!%p1819_p13), %s1405_s30, 128  }
 0x9dd   : > { %2268 = vsyncadd (!%p1819_p13), %s1405_s30, 4294967168  ;;  %s2926_s12 = sld [smem:[#allocation26_spill]]  ;;  %s2927_s22 = sld [smem:[#allocation27_spill]] }
 0x9de   : > { %s2928_s30 = smov %s2275_s10  ;;  %s2929_s10 = smov %s2279_s11 }
 0x9e3   : > { %p28_p5 = scmp.ge.s32.totalorder %s2926_s12, 4   ;;  %s2930_s11 = smov %s2927_s22 }
 0x9e5   :  { %30 = sbr.rel (!%p28_p5) target bundleno = 16 (0x10), region = 149 }
 0x9ec   :  { %1410 = vsyncpa [#allocation3], 1 }
 0x9ed   :  { %1412 = vsyncpa [#allocation3 + $0x1], 1 }
 0x9ee   :  { %1413 = vsyncpa [#allocation6], 1 }
 0x9ef   :  { %1415 = vsyncpa [#allocation6 + $0x1], 1 }
 0x9f0   :  { %1416 = vsyncpa [#allocation9], 1 }
 0x9f1   :  { %1417 = vsyncpa [#allocation12], 1 }
 0x9f2   :  { %1418 = vsyncpa [#allocation15], 1 }
 0x9f3   :  { %1419 = vsyncpa [#allocation4], 1 }
 0x9f4   :  { %1421 = vsyncpa [#allocation4 + $0x1], 1 }

// kernel: caption_generator_forward.6
= control target key start
LH: loop header
LB: loop body
LE: loop exit
PB: predicated region body
PF: predicated region fallthrough
CT: control target
= control target key end

     0   :  { %s6460_s6 = smov 1   ;;  %s6461_s10 = smov 2   ;;  %s7698_s0 = inlined_call_operand.smem [shape: u32[32], index: -1, kind: input, shape index: {}] }
   0x1   :  { %s6541_s5 = sld [smem:[%s7698_s0]]   ;;  %s6462_s14 = smov 3  }
   0x2   :  { %s6546_s9 = sld [smem:[%s7698_s0 + %s6460_s6]]   ;;  %s6463_s18 = smov 4  }
   0x3   :  { %s6551_s13 = sld [smem:[%s7698_s0 + %s6461_s10]]   ;;  %s6464_s22 = smov 5  }
   0x4   :  { %s6556_s17 = sld [smem:[%s7698_s0 + %s6462_s14]]   ;;  %s6465_s26 = smov 6  }
   0x5   :  { %s6561_s21 = sld [smem:[%s7698_s0 + %s6463_s18]]   ;;  %s6466_s30 = smov 7  }
   0x6   :  { %s6566_s25 = sld [smem:[%s7698_s0 + %s6464_s22]]   ;;  %s6467_s4 = smov 8  }
   0x7   :  { %7761 = sst [smem:[#allocation69_spill]] %s6541_s5  ;;  %s6468_s10 = smov 9  }
   0x8   :  { %7762 = sst [smem:[#allocation70_spill]] %s6546_s9  ;;  %s6469_s15 = smov 10  }
   0x9   :  { %7763 = sst [smem:[#allocation71_spill]] %s6551_s13  ;;  %s6470_s20 = smov 11  }
   0xa   :  { %7764 = sst [smem:[#allocation72_spill]] %s6556_s17  ;;  %s6472_s1 = smov 13  }
   0xb   :  { %7765 = sst [smem:[#allocation73_spill]] %s6561_s21  ;;  %s6473_s7 = smov 14  }
   0xc   :  { %7766 = sst [smem:[#allocation74_spill]] %s6566_s25  ;;  %s6475_s22 = smov 16  }
   0xd   :  { %s6571_s29 = sld [smem:[%s7698_s0 + %s6465_s26]]   ;;  %s6471_s26 = smov 12  }
   0xe   :  { %s6576_s3 = sld [smem:[%s7698_s0 + %s6466_s30]]   ;;  %s6476_s28 = smov 17  }
   0xf   :  { %s6581_s8 = sld [smem:[%s7698_s0 + %s6467_s4]]  }
  0x10   :  { %s6586_s14 = sld [smem:[%s7698_s0 + %s6468_s10]]  }
  0x11   :  { %s6591_s19 = sld [smem:[%s7698_s0 + %s6469_s15]]   ;;  %s6474_s15 = smov 15  }
  0x12   :  { %s6596_s24 = sld [smem:[%s7698_s0 + %s6470_s20]]  }
  0x13   :  { %7767 = sst [smem:[#allocation75_spill]] %s6571_s29 }
  0x14   :  { %7768 = sst [smem:[#allocation76_spill]] %s6576_s3 }
  0x15   :  { %7769 = sst [smem:[#allocation77_spill]] %s6581_s8 }
  0x16   :  { %7770 = sst [smem:[#allocation78_spill]] %s6586_s14 }
  0x17   :  { %7771 = sst [smem:[#allocation79_spill]] %s6591_s19 }
  0x18   :  { %7772 = sst [smem:[#allocation80_spill]] %s6596_s24 }
  0x19   :  { %s6601_s30 = sld [smem:[%s7698_s0 + %s6471_s26]]  }
  0x1a   :  { %s6606_s6 = sld [smem:[%s7698_s0 + %s6472_s1]]  }
  0x1b   :  { %s6611_s12 = sld [smem:[%s7698_s0 + %s6473_s7]]   ;;  %s6477_s7 = smov 18  }
  0x1c   :  { %s6616_s20 = sld [smem:[%s7698_s0 + %s6474_s15]]   ;;  %s6478_s15 = smov 19  }
  0x1d   :  { %s6621_s27 = sld [smem:[%s7698_s0 + %s6475_s22]]   ;;  %s6479_s22 = smov 20  }
  0x1e   :  { %s6626_s4 = sld [smem:[%s7698_s0 + %s6476_s28]]   ;;  %s6480_s28 = smov 21  }
  0x1f   :  { %7773 = sst [smem:[#allocation81_spill]] %s6601_s30 }
  0x20   :  { %7774 = sst [smem:[#allocation82_spill]] %s6606_s6 }
  0x21   :  { %7775 = sst [smem:[#allocation83_spill]] %s6611_s12 }
  0x22   :  { %7776 = sst [smem:[#allocation84_spill]] %s6616_s20 }
  0x23   :  { %7777 = sst [smem:[#allocation85_spill]] %s6621_s27 }
  0x24   :  { %7778 = sst [smem:[#allocation86_spill]] %s6626_s4 }
  0x25   :  { %s6631_s25 = sld [smem:[%s7698_s0 + %s6477_s7]]   ;;  %s6481_s7 = smov 22  }
  0x26   :  { %s6636_s13 = sld [smem:[%s7698_s0 + %s6478_s15]]   ;;  %s6482_s15 = smov 23  }
  0x27   :  { %s6641_s5 = sld [smem:[%s7698_s0 + %s6479_s22]]   ;;  %s6483_s22 = smov 24  }
  0x28   :  { %s6646_s27 = sld [smem:[%s7698_s0 + %s6480_s28]]   ;;  %s6484_s28 = smov 25  }
  0x29   :  { %s6656_s12 = sld [smem:[%s7698_s0 + %s6482_s15]]   ;;  %s6486_s15 = smov 27  }
  0x2a   :  { %s6666_s30 = sld [smem:[%s7698_s0 + %s6484_s28]]   ;;  %s6488_s28 = smov 29  }
  0x2b   :  { %7779 = sst [smem:[#allocation87_spill]] %s6631_s25 }
  0x2c   :  { %7780 = sst [smem:[#allocation88_spill]] %s6636_s13 }
  0x2d   :  { %7781 = sst [smem:[#allocation89_spill]] %s6641_s5 }
  0x2e   :  { %7782 = sst [smem:[#allocation90_spill]] %s6646_s27 }
  0x2f   :  { %s6651_s25 = sld [smem:[%s7698_s0 + %s6481_s7]]   ;;  %s6485_s7 = smov 26  }
  0x30   :  { %7784 = sst [smem:[#allocation92_spill]] %s6656_s12 }
  0x31   :  { %s6661_s5 = sld [smem:[%s7698_s0 + %s6483_s22]]   ;;  %s6487_s22 = smov 28  }
  0x32   :  { %7786 = sst [smem:[#allocation94_spill]] %s6666_s30 }
  0x33   :  { %s6676_s19 = sld [smem:[%s7698_s0 + %s6486_s15]]   ;;  %s6490_s15 = smov 31  }
  0x34   :  { %s6686_s8 = sld [smem:[%s7698_s0 + %s6488_s28]]  }
  0x35   :  { %7783 = sst [smem:[#allocation91_spill]] %s6651_s25 }
  0x36   :  { %s6671_s25 = sld [smem:[%s7698_s0 + %s6485_s7]]   ;;  %s6489_s7 = smov 30  }
  0x37   :  { %7785 = sst [smem:[#allocation93_spill]] %s6661_s5 }
  0x38   :  { %s6681_s5 = sld [smem:[%s7698_s0 + %s6487_s22]]  }
  0x39   :  { %7788 = sst [smem:[#allocation96_spill]] %s6676_s19 }
  0x3a   :  { %7790 = sst [smem:[#allocation98_spill]] %s6686_s8 }
  0x3b   :  { %s6696_s21 = sld [smem:[%s7698_s0 + %s6490_s15]]  }
  0x3c   :  { %7787 = sst [smem:[#allocation95_spill]] %s6671_s25 }
  0x3d   :  { %s6691_s25 = sld [smem:[%s7698_s0 + %s6489_s7]]  }
  0x3e   :  { %7789 = sst [smem:[#allocation97_spill]] %s6681_s5 }
  0x41   :  { %7792 = sst [smem:[#allocation100_spill]] %s6696_s21 }
  0x43   :  { %7791 = sst [smem:[#allocation99_spill]] %s6691_s25 }
  0x44   :  { %68 = vsyncpa [#allocation3], 0 }
  0x45   :  { %70 = vsyncpa [#allocation3 + $0x1], 0 }
  0x46   :  { %71 = vsyncpa [#allocation6], 0 }
  0x47   :  { %73 = vsyncpa [#allocation6 + $0x1], 0 }
  0x48   :  { %74 = vsyncpa [#allocation9], 0 }
  0x49   :  { %76 = vsyncpa [#allocation9 + $0x1], 0 }
  0x4a   :  { %77 = vsyncpa [#allocation12], 0 }
  0x4b   :  { %79 = vsyncpa [#allocation12 + $0x1], 0 }
  0x4c   :  { %80 = vsyncpa [#allocation15], 0 }
  0x4d   :  { %81 = vsyncpa [#allocation18], 0 }
  0x4e   :  { %82 = vsyncpa [#allocation21], 0 }
  0x4f   :  { %83 = vsyncpa [#allocation24], 0 }
  0x50   :  { %84 = vsyncpa [#allocation27], 0 }
  0x51   :  { %85 = vsyncpa [#allocation30], 0 }
  0x52   :  { %86 = vsyncpa [#allocation33], 0 }
  0x53   :  { %87 = vsyncpa [#allocation36], 0 }
  0x54   :  { %88 = vsyncpa [#allocation39], 0 }
  0x55   :  { %89 = vsyncpa [#allocation42], 0 }
  0x56   :  { %90 = vsyncpa [#allocation45], 0 }
  0x57   :  { %91 = vsyncpa [#allocation48], 0 }
  0x58   :  { %92 = vsyncpa [#allocation4], 0 }
  0x59   :  { %94 = vsyncpa [#allocation4 + $0x1], 0  ;;  %s6698_s0 = smov 0   ;;  %s6700_s22 = smov 0  }
  0x5a   :  { %s6702_s23 = smov 0   ;;  %s6704_s26 = smov 0  }
  0x5b LB: > { %s7793_s5 = sld [smem:[#allocation97_spill]]  ;;  %s7794_s17 = sld [smem:[#allocation72_spill]]  ;;  %s6458_s26 = sphi %s6704_s26, %s7888_s26   ;;  %s6454_s23 = sphi %s6702_s23, %s7890_s23   ;;  %s6450_s22 = sphi %s6700_s22, %s7892_s22   ;;  %s6446_s0 = sphi %s6698_s0, %s7891_s0  }
  0x5c   : > { %s7795_s30 = sld [smem:[#allocation94_spill]]  ;;  %s7796_s29 = sld [smem:[#allocation75_spill]] }
  0x5d   : > { %s7797_s9 = sld [smem:[#allocation70_spill]]  ;;  %s7798_s27 = sld [smem:[#allocation90_spill]] }
  0x5e   : > { %s7799_s24 = sld [smem:[#allocation80_spill]]  ;;  %s7800_s20 = sld [smem:[#allocation84_spill]] }
  0x5f   : > { %s7801_s19 = sld [smem:[#allocation96_spill]]  ;;  %s7802_s14 = sld [smem:[#allocation78_spill]] }
  0x60   : > { %s7803_s13 = sld [smem:[#allocation88_spill]]  ;;  %s7804_s12 = sld [smem:[#allocation92_spill]] }
  0x61   : > { %s7805_s8 = sld [smem:[#allocation98_spill]]  ;;  %s7807_s4 = sld [smem:[#allocation86_spill]] }
  0x62   : > { %s7806_s6 = sld [smem:[#allocation82_spill]]  ;;  %s7808_s3 = sld [smem:[#allocation76_spill]] }
  0x63   : > { %7809 = sst [smem:[#allocation101_spill]] %s6454_s23  ;;  %s6491_s28 = smov [#allocation13]  }
  0x64   : > { %s824_s1 = sshll.u32 %s6491_s28, 4  ;;  %s6719_s2 = sadd.s32 4294967295, %s6458_s26   ;;  %s6724_s1 = int_to_ptr.vmem [resolvable:$true] %s824_s1 }
  0x65   : > { %p4331_p0 = scmp.ge.s32.totalorder %s6458_s26, 1  ;;  %p7714_p1 = scmp.eq.s32.totalorder %s6719_s2, 0 }
  0x66   : > { %p812_p2 = scmp.lt.s32.totalorder %s6458_s26, 3  ;;  %s6492_s10 = smov [#allocation14]  }
  0x67   : > { %s838_s11 = sshll.u32 %s6492_s10, 4  ;;  %s6493_s16 = smov [#allocation17]   ;;  %s6739_s11 = int_to_ptr.vmem [resolvable:$true] %s838_s11 }
  0x68   : > { %p6726_p3 = pnand %p4331_p0, %p812_p2  ;;  %s862_s18 = sshll.u32 %s6493_s16, 4  ;;  %s6741_s18 = int_to_ptr.vmem [resolvable:$true] %s862_s18 }
  0x69   : > { %s5448_s28 = scalar_lea.hbm %s7796_s29, 1024 }
  0x6a   : > { %s7810_s7 = scalar_select %p6726_p3, 1, 0 }
  0x6b   : > { %p5014_p5 = pneg %p6726_p3  ;;  %p5449_p7 = scmp.ne.s32.totalorder %s7796_s29, %s5448_s28 }
  0x6c   : > { %7811 = sst [smem:[#allocation102_spill]] %s7810_s7  ;;  %p5455_p11 = scmp.lt.u32.totalorder %s5448_s28, %s7796_s29 }
  0x6d   : > { %p6735_p6 = pnand %p5014_p5, %p7714_p1 }
  0x6f   : > { %s7812_s15 = scalar_select %p6735_p6, 1, 0 }
  0x70   : > { %p6747_p8 = pneg %p6735_p6 }
  0x72   : > { %s7813_s21 = scalar_select %p6747_p8, 1, 0 }
  0x73   : > { %p5451_p9 = pnand %p6747_p8, %p5449_p7 }
  0x75   : > { %p5452_p10 = pneg %p5451_p9 }
  0x77   : > { %p5457_p12 = pnand %p5455_p11, %p5452_p10 }
  0x79   : > { %5460 = shalt.err (!%p5457_p12)
}
  0x7a   : > { %s5461_s10 = scalar_lea.vmem %s6724_s1, 1024  ;;  %p5469_p5 = scmp.lt.s32.totalorder %s6724_s1, %s6724_s1 }
  0x7b   : > { %p5462_p13 = scmp.ne.s32.totalorder %s6724_s1, %s5461_s10  ;;  %p5470_p4 = scmp.lt.s32.totalorder %s5461_s10, %s5461_s10 }
  0x7d   : > { %p5464_p0 = pnand %p5462_p13, %p6747_p8  ;;  %p5471_p1 = por %p5470_p4, %p5469_p5 }
  0x7f   : > { %p5465_p2 = pneg %p5464_p0 }
  0x81   : > { %p5472_p3 = pnand %p5471_p1, %p5465_p2 }
  0x83   : > { %5475 = shalt.err (!%p5472_p3)
}
  0x84   : > { %s7718_s16 = smov 64   ;;  %s7720_s28 = smov 4  }
  0x85   : > { %5017 = dma.hbm_to_vmem [thread:$0]  (!%p6735_p6), %s7796_s29, 1024, %s6724_s1, [#allocation12], %s7718_s16, %s7718_s16, %s7720_s28  }
  0x86   : > { %s5476_s7 = scalar_lea.hbm %s7808_s3, 16 }
  0x87   : > { %p5477_p7 = scmp.ne.s32.totalorder %s7808_s3, %s5476_s7  ;;  %p5483_p3 = scmp.lt.u32.totalorder %s5476_s7, %s7808_s3 }
  0x89   : > { %p5479_p4 = pnand %p5477_p7, %p6747_p8 }
  0x8b   : > { %p5480_p1 = pneg %p5479_p4 }
  0x8d   : > { %p5485_p9 = pnand %p5483_p3, %p5480_p1 }
  0x8f   : > { %5488 = shalt.err (!%p5485_p9)
}
  0x90   : > { %s5489_s10 = scalar_lea.vmem %s6739_s11, 16  ;;  %s5496_s25 = scalar_lea.vmem %s6739_s11, 32 }
  0x91   : > { %p5490_p10 = scmp.ne.s32.totalorder %s6739_s11, %s5489_s10  ;;  %p5497_p13 = scmp.lt.s32.totalorder %s6739_s11, %s6739_s11 }
  0x92   : > { %p5498_p0 = scmp.lt.s32.totalorder %s5496_s25, %s5489_s10 }
  0x93   : > { %p5492_p11 = pnand %p5490_p10, %p6747_p8 }
  0x94   : > { %p5499_p2 = por %p5498_p0, %p5497_p13 }
  0x95   : > { %p5493_p12 = pneg %p5492_p11 }
  0x97   : > { %p5500_p5 = pnand %p5499_p2, %p5493_p12 }
  0x99   : > { %5503 = shalt.err (!%p5500_p5)
}
  0x9a   : > { %5020 = dma.hbm_to_vmem [thread:$0]  (!%p6735_p6), %s7808_s3, 16, %s6739_s11, [#allocation15]  }
  0x9b   : > { %s5504_s1 = scalar_lea.hbm %s7802_s14, 32 }
  0x9c   : > { %p5505_p7 = scmp.ne.s32.totalorder %s7802_s14, %s5504_s1  ;;  %p5511_p3 = scmp.lt.u32.totalorder %s5504_s1, %s7802_s14 }
  0x9e   : > { %p5507_p4 = pnand %p5505_p7, %p6747_p8 }
  0xa0   : > { %p5508_p1 = pneg %p5507_p4 }
  0xa2   : > { %p5513_p9 = pnand %p5511_p3, %p5508_p1 }
  0xa4   : > { %5516 = shalt.err (!%p5513_p9)
}
  0xa5   : > { %s5517_s25 = scalar_lea.vmem %s6741_s18, 32  ;;  %p5525_p13 = scmp.lt.s32.totalorder %s6741_s18, %s6741_s18 }
  0xa6   : > { %p5518_p10 = scmp.ne.s32.totalorder %s6741_s18, %s5517_s25  ;;  %p5526_p0 = scmp.lt.s32.totalorder %s5517_s25, %s5517_s25 }
  0xa8   : > { %p5520_p11 = pnand %p5518_p10, %p6747_p8  ;;  %p5527_p2 = por %p5526_p0, %p5525_p13 }
  0xaa   : > { %p5521_p12 = pneg %p5520_p11 }
  0xac   : > { %p5528_p5 = pnand %p5527_p2, %p5521_p12 }
  0xae   : > { %5531 = shalt.err (!%p5528_p5)
}
  0xaf   : > { %5026 = dma.hbm_to_vmem [thread:$0]  (!%p6735_p6), %s7802_s14, 32, %s6741_s18, [#allocation18]  }
  0xb0   : > { %s6496_s7 = smov [#allocation20]   ;;  %s6497_s10 = smov [#allocation23]  }
  0xb1   : > { %s886_s11 = sshll.u32 %s6496_s7, 4  ;;  %s908_s1 = sshll.u32 %s6497_s10, 4  ;;  %s887_s11 = int_to_ptr.vmem [resolvable:$true] %s886_s11  ;;  %s909_s1 = int_to_ptr.vmem [resolvable:$true] %s908_s1 }
  0xb2   : > { %s5532_s16 = scalar_lea.hbm %s7799_s24, 16 }
  0xb3   : > { %p5533_p7 = scmp.ne.s32.totalorder %s7799_s24, %s5532_s16  ;;  %p5539_p3 = scmp.lt.u32.totalorder %s5532_s16, %s7799_s24 }
  0xb5   : > { %p5535_p4 = pnand %p5533_p7, %p6747_p8 }
  0xb7   : > { %p5536_p1 = pneg %p5535_p4 }
  0xb9   : > { %p5541_p9 = pnand %p5539_p3, %p5536_p1 }
  0xbb   : > { %5544 = shalt.err (!%p5541_p9)
}
  0xbc   : > { %s5545_s25 = scalar_lea.vmem %s887_s11, 16  ;;  %s5552_s18 = scalar_lea.vmem %s887_s11, 32 }
  0xbd   : > { %p5546_p10 = scmp.ne.s32.totalorder %s887_s11, %s5545_s25  ;;  %p5553_p13 = scmp.lt.s32.totalorder %s887_s11, %s887_s11 }
  0xbe   : > { %p5554_p0 = scmp.lt.s32.totalorder %s5552_s18, %s5545_s25 }
  0xbf   : > { %p5548_p11 = pnand %p5546_p10, %p6747_p8 }
  0xc0   : > { %p5555_p2 = por %p5554_p0, %p5553_p13 }
  0xc1   : > { %p5549_p12 = pneg %p5548_p11 }
  0xc3   : > { %p5556_p5 = pnand %p5555_p2, %p5549_p12 }
  0xc5   : > { %5559 = shalt.err (!%p5556_p5)
}
  0xc6   : > { %5032 = dma.hbm_to_vmem [thread:$0]  (!%p6735_p6), %s7799_s24, 16, %s887_s11, [#allocation21]  }
  0xc7   : > { %s5560_s16 = scalar_lea.hbm %s7806_s6, 16 }
  0xc8   : > { %p5561_p7 = scmp.ne.s32.totalorder %s7806_s6, %s5560_s16  ;;  %p5567_p3 = scmp.lt.u32.totalorder %s5560_s16, %s7806_s6 }
  0xca   : > { %p5563_p4 = pnand %p5561_p7, %p6747_p8 }
  0xcc   : > { %p5564_p1 = pneg %p5563_p4 }
  0xce   : > { %p5569_p9 = pnand %p5567_p3, %p5564_p1 }
  0xd0   : > { %5572 = shalt.err (!%p5569_p9)
}
  0xd1   : > { %s5573_s7 = scalar_lea.vmem %s909_s1, 16  ;;  %s5580_s10 = scalar_lea.vmem %s909_s1, 32 }
  0xd2   : > { %p5574_p10 = scmp.ne.s32.totalorder %s909_s1, %s5573_s7  ;;  %p5581_p13 = scmp.lt.s32.totalorder %s909_s1, %s909_s1 }
  0xd3   : > { %p5582_p0 = scmp.lt.s32.totalorder %s5580_s10, %s5573_s7 }
  0xd4   : > { %p5576_p11 = pnand %p5574_p10, %p6747_p8 }
  0xd5   : > { %p5583_p2 = por %p5582_p0, %p5581_p13 }
  0xd6   : > { %p5577_p12 = pneg %p5576_p11 }
  0xd8   : > { %p5584_p5 = pnand %p5583_p2, %p5577_p12 }
  0xda   : > { %5587 = shalt.err (!%p5584_p5)
}
  0xdb   : > { %5038 = dma.hbm_to_vmem [thread:$0]  (!%p6735_p6), %s7806_s6, 16, %s909_s1, [#allocation24]  }
  0xdc   : > { %s6498_s11 = smov [#allocation26]   ;;  %s6499_s18 = smov [#allocation29]  }
  0xdd   : > { %s932_s25 = sshll.u32 %s6498_s11, 4  ;;  %s956_s16 = sshll.u32 %s6499_s18, 4  ;;  %s933_s25 = int_to_ptr.vmem [resolvable:$true] %s932_s25  ;;  %s957_s16 = int_to_ptr.vmem [resolvable:$true] %s956_s16 }
  0xde   : > { %s5588_s28 = scalar_lea.hbm %s7800_s20, 16 }
  0xdf   : > { %p5589_p7 = scmp.ne.s32.totalorder %s7800_s20, %s5588_s28  ;;  %p5595_p3 = scmp.lt.u32.totalorder %s5588_s28, %s7800_s20 }
  0xe1   : > { %p5591_p4 = pnand %p5589_p7, %p6747_p8 }
  0xe3   : > { %p5592_p1 = pneg %p5591_p4 }
  0xe5   : > { %p5597_p9 = pnand %p5595_p3, %p5592_p1 }
  0xe7   : > { %5600 = shalt.err (!%p5597_p9)
}
  0xe8   : > { %s5601_s7 = scalar_lea.vmem %s933_s25, 16  ;;  %s5608_s1 = scalar_lea.vmem %s933_s25, 32 }
  0xe9   : > { %p5602_p10 = scmp.ne.s32.totalorder %s933_s25, %s5601_s7  ;;  %p5609_p13 = scmp.lt.s32.totalorder %s933_s25, %s933_s25 }
  0xea   : > { %p5610_p0 = scmp.lt.s32.totalorder %s5608_s1, %s5601_s7 }
  0xeb   : > { %p5604_p11 = pnand %p5602_p10, %p6747_p8 }
  0xec   : > { %p5611_p2 = por %p5610_p0, %p5609_p13 }
  0xed   : > { %p5605_p12 = pneg %p5604_p11 }
  0xef   : > { %p5612_p5 = pnand %p5611_p2, %p5605_p12 }
  0xf1   : > { %5615 = shalt.err (!%p5612_p5)
}
  0xf2   : > { %5044 = dma.hbm_to_vmem [thread:$0]  (!%p6735_p6), %s7800_s20, 16, %s933_s25, [#allocation27]  }
  0xf3   : > { %s5616_s28 = scalar_lea.hbm %s7807_s4, 32 }
  0xf4   : > { %p5617_p7 = scmp.ne.s32.totalorder %s7807_s4, %s5616_s28  ;;  %p5623_p3 = scmp.lt.u32.totalorder %s5616_s28, %s7807_s4 }
  0xf6   : > { %p5619_p4 = pnand %p5617_p7, %p6747_p8 }
  0xf8   : > { %p5620_p1 = pneg %p5619_p4 }
  0xfa   : > { %p5625_p9 = pnand %p5623_p3, %p5620_p1 }
  0xfc   : > { %5628 = shalt.err (!%p5625_p9)
}
  0xfd   : > { %s5629_s10 = scalar_lea.vmem %s957_s16, 32  ;;  %p5637_p13 = scmp.lt.s32.totalorder %s957_s16, %s957_s16 }
  0xfe   : > { %p5630_p10 = scmp.ne.s32.totalorder %s957_s16, %s5629_s10  ;;  %p5638_p0 = scmp.lt.s32.totalorder %s5629_s10, %s5629_s10 }
 0x100   : > { %p5632_p11 = pnand %p5630_p10, %p6747_p8  ;;  %p5639_p2 = por %p5638_p0, %p5637_p13 }
 0x102   : > { %p5633_p12 = pneg %p5632_p11 }
 0x104   : > { %p5640_p5 = pnand %p5639_p2, %p5633_p12 }
 0x106   : > { %5643 = shalt.err (!%p5640_p5)
}
 0x107   : > { %5050 = dma.hbm_to_vmem [thread:$0]  (!%p6735_p6), %s7807_s4, 32, %s957_s16, [#allocation30]  }
 0x108   : > { %s6500_s11 = smov [#allocation32]   ;;  %s6501_s18 = smov [#allocation35]  }
 0x109   : > { %s980_s25 = sshll.u32 %s6500_s11, 4  ;;  %s1002_s7 = sshll.u32 %s6501_s18, 4  ;;  %s981_s25 = int_to_ptr.vmem [resolvable:$true] %s980_s25  ;;  %s1003_s7 = int_to_ptr.vmem [resolvable:$true] %s1002_s7 }
 0x10a   : > { %s5644_s1 = scalar_lea.hbm %s7803_s13, 16 }
 0x10b   : > { %p5645_p7 = scmp.ne.s32.totalorder %s7803_s13, %s5644_s1  ;;  %p5651_p3 = scmp.lt.u32.totalorder %s5644_s1, %s7803_s13 }
 0x10d   : > { %p5647_p4 = pnand %p5645_p7, %p6747_p8 }
 0x10f   : > { %p5648_p1 = pneg %p5647_p4 }
 0x111   : > { %p5653_p9 = pnand %p5651_p3, %p5648_p1 }
 0x113   : > { %5656 = shalt.err (!%p5653_p9)
}
 0x114   : > { %s5657_s28 = scalar_lea.vmem %s981_s25, 16  ;;  %s5664_s16 = scalar_lea.vmem %s981_s25, 32 }
 0x115   : > { %p5658_p10 = scmp.ne.s32.totalorder %s981_s25, %s5657_s28  ;;  %p5665_p13 = scmp.lt.s32.totalorder %s981_s25, %s981_s25 }
 0x116   : > { %p5666_p0 = scmp.lt.s32.totalorder %s5664_s16, %s5657_s28 }
 0x117   : > { %p5660_p11 = pnand %p5658_p10, %p6747_p8 }
 0x118   : > { %p5667_p2 = por %p5666_p0, %p5665_p13 }
 0x119   : > { %p5661_p12 = pneg %p5660_p11 }
 0x11b   : > { %p5668_p5 = pnand %p5667_p2, %p5661_p12 }
 0x11d   : > { %5671 = shalt.err (!%p5668_p5)
}
 0x11e   : > { %5056 = dma.hbm_to_vmem [thread:$0]  (!%p6735_p6), %s7803_s13, 16, %s981_s25, [#allocation33]  }
 0x11f   : > { %s5672_s10 = scalar_lea.hbm %s7798_s27, 16 }
 0x120   : > { %p5673_p7 = scmp.ne.s32.totalorder %s7798_s27, %s5672_s10  ;;  %p5679_p3 = scmp.lt.u32.totalorder %s5672_s10, %s7798_s27 }
 0x122   : > { %p5675_p4 = pnand %p5673_p7, %p6747_p8 }
 0x124   : > { %p5676_p1 = pneg %p5675_p4 }
 0x126   : > { %p5681_p9 = pnand %p5679_p3, %p5676_p1 }
 0x128   : > { %5684 = shalt.err (!%p5681_p9)
}
 0x129   : > { %s5685_s11 = scalar_lea.vmem %s1003_s7, 16  ;;  %s5692_s18 = scalar_lea.vmem %s1003_s7, 32 }
 0x12a   : > { %p5686_p10 = scmp.ne.s32.totalorder %s1003_s7, %s5685_s11  ;;  %p5693_p13 = scmp.lt.s32.totalorder %s1003_s7, %s1003_s7 }
 0x12b   : > { %p5694_p0 = scmp.lt.s32.totalorder %s5692_s18, %s5685_s11 }
 0x12c   : > { %p5688_p11 = pnand %p5686_p10, %p6747_p8 }
 0x12d   : > { %p5695_p2 = por %p5694_p0, %p5693_p13 }
 0x12e   : > { %p5689_p12 = pneg %p5688_p11 }
 0x130   : > { %p5696_p5 = pnand %p5695_p2, %p5689_p12 }
 0x132   : > { %5699 = shalt.err (!%p5696_p5)
}
 0x133   : > { %5062 = dma.hbm_to_vmem [thread:$0]  (!%p6735_p6), %s7798_s27, 16, %s1003_s7, [#allocation36]  }
 0x134   : > { %s6502_s25 = smov [#allocation38]   ;;  %s5700_s28 = scalar_lea.hbm %s7804_s12, 1024 }
 0x135   : > { %s1025_s1 = sshll.u32 %s6502_s25, 4  ;;  %p5701_p7 = scmp.ne.s32.totalorder %s7804_s12, %s5700_s28  ;;  %s1026_s1 = int_to_ptr.vmem [resolvable:$true] %s1025_s1 }
 0x136   : > { %p5707_p3 = scmp.lt.u32.totalorder %s5700_s28, %s7804_s12 }
 0x137   : > { %p5703_p4 = pnand %p5701_p7, %p6747_p8 }
 0x139   : > { %p5704_p1 = pneg %p5703_p4 }
 0x13b   : > { %p5709_p9 = pnand %p5707_p3, %p5704_p1 }
 0x13d   : > { %5712 = shalt.err (!%p5709_p9)
}
 0x13e   : > { %s5713_s16 = scalar_lea.vmem %s1026_s1, 1024  ;;  %p5721_p13 = scmp.lt.s32.totalorder %s1026_s1, %s1026_s1 }
 0x13f   : > { %p5714_p10 = scmp.ne.s32.totalorder %s1026_s1, %s5713_s16  ;;  %p5722_p0 = scmp.lt.s32.totalorder %s5713_s16, %s5713_s16 }
 0x141   : > { %p5716_p11 = pnand %p5714_p10, %p6747_p8  ;;  %p5723_p2 = por %p5722_p0, %p5721_p13 }
 0x143   : > { %p5717_p12 = pneg %p5716_p11 }
 0x145   : > { %p5724_p5 = pnand %p5723_p2, %p5717_p12 }
 0x147   : > { %5727 = shalt.err (!%p5724_p5)
}
 0x148   : > { %s7814_s7 = smov 4   ;;  %s7815_s10 = smov 64  }
 0x149   : > { %5068 = dma.hbm_to_vmem [thread:$0]  (!%p6735_p6), %s7804_s12, 1024, %s1026_s1, [#allocation39], %s7815_s10, %s7815_s10, %s7814_s7  }
 0x14a   : > { %s6503_s11 = smov [#allocation41]   ;;  %s6504_s25 = smov [#allocation44]  }
 0x14b   : > { %s1049_s18 = sshll.u32 %s6503_s11, 4  ;;  %s1073_s28 = sshll.u32 %s6504_s25, 4  ;;  %s1050_s18 = int_to_ptr.vmem [resolvable:$true] %s1049_s18  ;;  %s6871_s28 = int_to_ptr.vmem [resolvable:$true] %s1073_s28 }
 0x14c   : > { %s5728_s16 = scalar_lea.hbm %s7795_s30, 2048 }
 0x14d   : > { %p5729_p7 = scmp.ne.s32.totalorder %s7795_s30, %s5728_s16  ;;  %p5735_p3 = scmp.lt.u32.totalorder %s5728_s16, %s7795_s30 }
 0x14f   : > { %p5731_p4 = pnand %p5729_p7, %p6747_p8 }
 0x151   : > { %p5732_p1 = pneg %p5731_p4 }
 0x153   : > { %p5737_p9 = pnand %p5735_p3, %p5732_p1 }
 0x155   : > { %5740 = shalt.err (!%p5737_p9)
}
 0x156   : > { %s5741_s3 = scalar_lea.vmem %s1050_s18, 2048  ;;  %p5749_p13 = scmp.lt.s32.totalorder %s1050_s18, %s1050_s18 }
 0x157   : > { %p5742_p10 = scmp.ne.s32.totalorder %s1050_s18, %s5741_s3  ;;  %p5750_p0 = scmp.lt.s32.totalorder %s5741_s3, %s5741_s3 }
 0x159   : > { %p5744_p11 = pnand %p5742_p10, %p6747_p8  ;;  %p5751_p2 = por %p5750_p0, %p5749_p13 }
 0x15b   : > { %p5745_p12 = pneg %p5744_p11 }
 0x15d   : > { %p5752_p5 = pnand %p5751_p2, %p5745_p12 }
 0x15f   : > { %5755 = shalt.err (!%p5752_p5)
}
 0x160   : > { %s7723_s1 = smov 128   ;;  %s7725_s11 = smov 8  }
 0x161   : > { %5074 = dma.hbm_to_vmem [thread:$0]  (!%p6735_p6), %s7795_s30, 2048, %s1050_s18, [#allocation42], %s7723_s1, %s7723_s1, %s7725_s11  }
 0x162   : > { %s5756_s25 = scalar_lea.hbm %s7801_s19, 2048 }
 0x163   : > { %p5757_p7 = scmp.ne.s32.totalorder %s7801_s19, %s5756_s25  ;;  %p5763_p3 = scmp.lt.u32.totalorder %s5756_s25, %s7801_s19 }
 0x165   : > { %p5759_p4 = pnand %p5757_p7, %p6747_p8 }
 0x167   : > { %p5760_p1 = pneg %p5759_p4 }
 0x169   : > { %p5765_p9 = pnand %p5763_p3, %p5760_p1 }
 0x16b   : > { %5768 = shalt.err (!%p5765_p9)
}
 0x16c   : > { %s5769_s3 = scalar_lea.vmem %s6871_s28, 2048  ;;  %p5777_p13 = scmp.lt.s32.totalorder %s6871_s28, %s6871_s28 }
 0x16d   : > { %p5770_p10 = scmp.ne.s32.totalorder %s6871_s28, %s5769_s3  ;;  %p5778_p0 = scmp.lt.s32.totalorder %s5769_s3, %s5769_s3 }
 0x16f   : > { %p5772_p11 = pnand %p5770_p10, %p6747_p8  ;;  %p5779_p2 = por %p5778_p0, %p5777_p13 }
 0x171   : > { %p5773_p12 = pneg %p5772_p11 }
 0x173   : > { %p5780_p5 = pnand %p5779_p2, %p5773_p12 }
 0x175   : > { %5783 = shalt.err (!%p5780_p5)
}
 0x176   : > { %5080 = dma.hbm_to_vmem [thread:$0]  (!%p6735_p6), %s7801_s19, 2048, %s6871_s28, [#allocation45], %s7815_s10, %s7815_s10, %s7814_s7  }
 0x177   : > { %s6507_s18 = smov [#allocation47]   ;;  %s5784_s25 = scalar_lea.hbm %s7805_s8, 16 }
 0x178   : > { %s1098_s16 = sshll.u32 %s6507_s18, 4  ;;  %p5785_p7 = scmp.ne.s32.totalorder %s7805_s8, %s5784_s25  ;;  %s1099_s16 = int_to_ptr.vmem [resolvable:$true] %s1098_s16 }
 0x179   : > { %p5791_p3 = scmp.lt.u32.totalorder %s5784_s25, %s7805_s8 }
 0x17a   : > { %p5787_p4 = pnand %p5785_p7, %p6747_p8 }
 0x17c   : > { %p5788_p1 = pneg %p5787_p4 }
 0x17e   : > { %p5793_p9 = pnand %p5791_p3, %p5788_p1 }
 0x180   : > { %5796 = shalt.err (!%p5793_p9)
}
 0x181   : > { %s5797_s3 = scalar_lea.vmem %s1099_s16, 16  ;;  %s5804_s1 = scalar_lea.vmem %s1099_s16, 32 }
 0x182   : > { %p5798_p10 = scmp.ne.s32.totalorder %s1099_s16, %s5797_s3  ;;  %p5805_p13 = scmp.lt.s32.totalorder %s1099_s16, %s1099_s16 }
 0x183   : > { %p5806_p0 = scmp.lt.s32.totalorder %s5804_s1, %s5797_s3 }
 0x184   : > { %p5800_p11 = pnand %p5798_p10, %p6747_p8 }
 0x185   : > { %p5807_p2 = por %p5806_p0, %p5805_p13 }
 0x186   : > { %p5801_p12 = pneg %p5800_p11 }
 0x188   : > { %p5808_p5 = pnand %p5807_p2, %p5801_p12 }
 0x18a   : > { %5811 = shalt.err (!%p5808_p5)
}
 0x18b   : > { %5086 = dma.hbm_to_vmem [thread:$0]  (!%p6735_p6), %s7805_s8, 16, %s1099_s16, [#allocation48]  }
 0x18c   : > { %s4330_s28 = sadd.s32 4294967294, %s6458_s26   ;;  %s6916_s1 = sadd.s32 1, %s6458_s26  }
 0x18d   : > { %7816 = sst [smem:[#allocation103_spill]] %s6916_s1  ;;  %s107_s18 = sadd.s32 1, %s6454_s23 }
 0x18e   : > { %s104_s25 = ssub.s32 %s6458_s26, %s6916_s1  ;;  %p114_p7 = scmp.ne.s32.totalorder %s6454_s23, %s6450_s22 }
 0x18f   : > { %p105_p4 = scmp.eq.s32.totalorder %s104_s25, 0  ;;  %p115_p1 = scmp.eq.s32.totalorder %s6458_s26, 0 }
 0x190   : > { %p120_p3 = scmp.ne.s32.totalorder %s6450_s22, %s6446_s0  ;;  %p799_p9 = scmp.eq.s32.totalorder %s6719_s2, 1 }
 0x191   : > { %s6928_s3 = scalar_select %p105_p4, %s6454_s23, %s107_s18  }
 0x192   : > { %p116_p10 = por %p115_p1, %p114_p7  ;;  %p7818_p11 = scmp.eq.s32.totalorder %s6719_s2, 0 }
 0x193   : > { %7817 = sst [smem:[#allocation104_spill]] %s6928_s3  ;;  %p6936_p13 = por %p799_p9, %p114_p7 }
 0x194   : > { %p6932_p12 = por %p7818_p11, %p120_p3  ;;  %p805_p0 = scmp.eq.s32.totalorder %s4330_s28, 1 }
 0x195   : > { %s7820_s11 = scalar_select %p6936_p13, 1, 0 }
 0x196   : > { %s7819_s16 = scalar_select %p6932_p12, 1, 0 }
 0x197   : > { %p5138_p2 = scmp.lt.s32.totalorder %s6458_s26, 2  ;;  %s6942_s4 = sand.u32 1, %s6454_s23  }
 0x198   : > { %p6944_p5 = por %p805_p0, %p120_p3  ;;  %s6949_s18 = sand.u32 1, %s6458_s26  }
 0x199   : > { %p6951_p4 = pnand %p5138_p2, %p116_p10  ;;  %s4360_s8 = sshll.u32 %s6942_s4, 4 }
 0x19a   : > { %s7821_s25 = scalar_select %p6944_p5, 1, 0 }
 0x19b   : > { %s7823_s6 = scalar_select %p6951_p4, 1, 0 }
 0x19c   : > { %7822 = sst [smem:[#allocation105_spill]] %s7821_s25  ;;  %s4546_s28 = sshll.u32 %s6458_s26, 8 }
 0x19d   : > { %s6958_s12 = scalar_lea.hbm %s7797_s9, %s4546_s28  ;;  %s1142_s13 = scalar_lea.vmem [#allocation5], %s4360_s8 }
 0x19e   : > { %s1149_s14 = sshll.u32 %s1142_s13, 4  ;;  %s5812_s20 = scalar_lea.hbm %s6958_s12, 256  ;;  %s6960_s14 = int_to_ptr.vmem [resolvable:$true] %s1149_s14 }
 0x19f   : > { %p5813_p7 = scmp.ne.s32.totalorder %s6958_s12, %s5812_s20  ;;  %p6967_p1 = pneg %p6951_p4 }
 0x1a0   : > { %s5817_s28 = scalar_lea.hbm %s7797_s9, 512  ;;  %p5818_p10 = scmp.lt.u32.totalorder %s6958_s12, %s7797_s9 }
 0x1a1   : > { %s7824_s24 = scalar_select %p6967_p1, 1, 0 }
 0x1a2   : > { %p5815_p3 = pnand %p6967_p1, %p5813_p7  ;;  %p5819_p11 = scmp.lt.u32.totalorder %s5817_s28, %s5812_s20 }
 0x1a3   : > { %p5821_p2 = scmp.lt.u32.totalorder %s5812_s20, %s6958_s12 }
 0x1a4   : > { %p5816_p9 = pneg %p5815_p3  ;;  %p5820_p0 = por %p5819_p11, %p5818_p10 }
 0x1a6   : > { %p5822_p5 = por %p5821_p2, %p5820_p0 }
 0x1a8   : > { %p5823_p13 = pnand %p5822_p5, %p5816_p9 }
 0x1aa   : > { %5826 = shalt.err (!%p5823_p13)
}
 0x1ab   : > { %s5827_s13 = scalar_lea.vmem %s6960_s14, 256  ;;  %s6508_s8 = smov [#allocation5]  }
 0x1ac   : > { %p5828_p12 = scmp.ne.s32.totalorder %s6960_s14, %s5827_s13  ;;  %s5832_s19 = sshll.u32 %s6508_s8, 4  ;;  %s5833_s19 = int_to_ptr.vmem [resolvable:$false] %s5832_s19 }
 0x1ad   : > { %s5834_s27 = scalar_lea.vmem %s5833_s19, 512  ;;  %p5835_p7 = scmp.lt.s32.totalorder %s6960_s14, %s5833_s19 }
 0x1ae   : > { %p5830_p6 = pnand %p5828_p12, %p6967_p1  ;;  %p5836_p3 = scmp.lt.s32.totalorder %s5834_s27, %s5827_s13 }
 0x1b0   : > { %p5831_p8 = pneg %p5830_p6  ;;  %p5837_p10 = por %p5836_p3, %p5835_p7 }
 0x1b2   : > { %p5838_p11 = pnand %p5837_p10, %p5831_p8 }
 0x1b4   : > { %5841 = shalt.err (!%p5838_p11)
}
 0x1b5   : > { %s7825_s20 = smov 8   ;;  %s7826_s28 = smov 128  }
 0x1b6   : > { %s7827_s9 = scalar_lea.sflag [#allocation6], %s6949_s18  ;;  %s7828_s8 = sld [smem:[#allocation73_spill]] }
 0x1b7   : > { %5096 = dma.hbm_to_vmem [thread:$0]  (!%p6951_p4), %s6958_s12, 256, %s6960_s14, %s7827_s9, %s7826_s28, %s7826_s28, %s7825_s20  }
 0x1b8   : > { %s4365_s19 = sshll.u32 %s6458_s26, 4  ;;  %s1180_s13 = scalar_lea.vmem [#allocation8], %s6942_s4 }
 0x1b9   : > { %s6993_s27 = scalar_lea.hbm %s7794_s17, %s4365_s19  ;;  %s1187_s29 = sshll.u32 %s1180_s13, 4  ;;  %s6996_s29 = int_to_ptr.vmem [resolvable:$true] %s1187_s29 }
 0x1ba   : > { %s7755_s3 = scalar_lea.sflag [#allocation9], %s6949_s18  ;;  %s5842_s23 = scalar_lea.hbm %s6993_s27, 16 }
 0x1bb   : > { %p5843_p6 = scmp.ne.s32.totalorder %s6993_s27, %s5842_s23  ;;  %s5847_s9 = scalar_lea.hbm %s7794_s17, 32 }
 0x1bc   : > { %s6999_s30 = scalar_lea.hbm %s7828_s8, %s4365_s19  ;;  %p5848_p13 = scmp.lt.u32.totalorder %s6993_s27, %s7794_s17 }
 0x1bd   : > { %p5845_p8 = pnand %p5843_p6, %p6967_p1  ;;  %p5849_p5 = scmp.lt.u32.totalorder %s5847_s9, %s5842_s23 }
 0x1be   : > { %p5851_p0 = scmp.lt.u32.totalorder %s5842_s23, %s6993_s27 }
 0x1bf   : > { %p5846_p12 = pneg %p5845_p8  ;;  %p5850_p9 = por %p5849_p5, %p5848_p13 }
 0x1c1   : > { %p5852_p2 = por %p5851_p0, %p5850_p9 }
 0x1c3   : > { %p5853_p7 = pnand %p5852_p2, %p5846_p12 }
 0x1c5   : > { %5856 = shalt.err (!%p5853_p7)
}
 0x1c6   : > { %s5857_s14 = scalar_lea.vmem %s6996_s29, 16  ;;  %s6509_s12 = smov [#allocation8]  }
 0x1c7   : > { %p5858_p3 = scmp.ne.s32.totalorder %s6996_s29, %s5857_s14  ;;  %s5862_s19 = sshll.u32 %s6509_s12, 4  ;;  %s5863_s19 = int_to_ptr.vmem [resolvable:$false] %s5862_s19 }
 0x1c8   : > { %s5864_s13 = scalar_lea.vmem %s5863_s19, 32  ;;  %p5865_p6 = scmp.lt.s32.totalorder %s6996_s29, %s5863_s19 }
 0x1c9   : > { %p5860_p10 = pnand %p5858_p3, %p6967_p1  ;;  %p5866_p8 = scmp.lt.s32.totalorder %s5864_s13, %s5857_s14 }
 0x1cb   : > { %p5861_p11 = pneg %p5860_p10  ;;  %p5867_p13 = por %p5866_p8, %p5865_p6 }
 0x1cd   : > { %p5868_p5 = pnand %p5867_p13, %p5861_p11 }
 0x1cf   : > { %5871 = shalt.err (!%p5868_p5)
}
 0x1d0   : > { %s7829_s23 = sld [smem:[#allocation77_spill]]  ;;  %s6510_s17 = smov [#allocation16]  }
 0x1d1   : > { %5102 = dma.hbm_to_vmem [thread:$0]  (!%p6951_p4), %s6993_s27, 16, %s6996_s29, %s7755_s3  }
 0x1d2   : > { %s848_s12 = sshll.u32 %s6510_s17, 4  ;;  %s6511_s1 = smov [#allocation19]   ;;  %s849_s12 = int_to_ptr.vmem [resolvable:$true] %s848_s12 }
 0x1d3   : > { %s872_s25 = sshll.u32 %s6511_s1, 4  ;;  %p7831_p9 = scmp.ne.s32.totalorder %s7813_s21, 0  ;;  %s7021_s25 = int_to_ptr.vmem [resolvable:$true] %s872_s25 }
 0x1d6   : > { %s7830_s9 = smov %s7829_s23  ;;  %s5872_s14 = scalar_lea.hbm %s7829_s23, 2048 }
 0x1d7   : > { %p5873_p12 = scmp.ne.s32.totalorder %s7830_s9, %s5872_s14  ;;  %p5879_p7 = scmp.lt.u32.totalorder %s5872_s14, %s7830_s9 }
 0x1d9   : > { %p5875_p0 = pnand %p5873_p12, %p7831_p9 }
 0x1db   : > { %p5876_p2 = pneg %p5875_p0 }
 0x1dd   : > { %p5881_p3 = pnand %p5879_p7, %p5876_p2 }
 0x1df   : > { %5884 = shalt.err (!%p5881_p3)
}
 0x1e0   : > { %s5885_s19 = scalar_lea.vmem %s849_s12, 2048  ;;  %p5893_p8 = scmp.lt.s32.totalorder %s849_s12, %s849_s12 }
 0x1e1   : > { %p5886_p10 = scmp.ne.s32.totalorder %s849_s12, %s5885_s19  ;;  %p5894_p13 = scmp.lt.s32.totalorder %s5885_s19, %s5885_s19 }
 0x1e3   : > { %p5888_p11 = pnand %p5886_p10, %p7831_p9  ;;  %p5895_p5 = por %p5894_p13, %p5893_p8 }
 0x1e5   : > { %p5889_p6 = pneg %p5888_p11 }
 0x1e7   : > { %p5896_p4 = pnand %p5895_p5, %p5889_p6 }
 0x1e9   : > { %5899 = shalt.err (!%p5896_p4)
}
 0x1ea   : > { %p7832_p1 = scmp.ne.s32.totalorder %s7812_s15, 0  ;;  %s7833_s17 = sld [smem:[#allocation79_spill]] }
 0x1ec   : > { %5023 = dma.hbm_to_vmem [thread:$0]  (!%p7832_p1), %s7830_s9, 2048, %s849_s12, [#allocation15], %s7826_s28, %s7826_s28, %s7825_s20  }
 0x1f0   : > { %s5900_s29 = scalar_lea.hbm %s7833_s17, 1024 }
 0x1f1   : > { %p5901_p12 = scmp.ne.s32.totalorder %s7833_s17, %s5900_s29  ;;  %p5907_p7 = scmp.lt.u32.totalorder %s5900_s29, %s7833_s17 }
 0x1f3   : > { %p5903_p0 = pnand %p5901_p12, %p7831_p9 }
 0x1f5   : > { %p5904_p2 = pneg %p5903_p0 }
 0x1f7   : > { %p5909_p3 = pnand %p5907_p7, %p5904_p2 }
 0x1f9   : > { %5912 = shalt.err (!%p5909_p3)
}
 0x1fa   : > { %s5913_s1 = scalar_lea.vmem %s7021_s25, 1024  ;;  %p5921_p6 = scmp.lt.s32.totalorder %s7021_s25, %s7021_s25 }
 0x1fb   : > { %p5914_p4 = scmp.ne.s32.totalorder %s7021_s25, %s5913_s1  ;;  %p5922_p8 = scmp.lt.s32.totalorder %s5913_s1, %s5913_s1 }
 0x1fd   : > { %p5916_p10 = pnand %p5914_p4, %p7831_p9  ;;  %p5923_p13 = por %p5922_p8, %p5921_p6 }
 0x1ff   : > { %p5917_p11 = pneg %p5916_p10 }
 0x201   : > { %p5924_p5 = pnand %p5923_p13, %p5917_p11 }
 0x203   : > { %5927 = shalt.err (!%p5924_p5)
}
 0x204   : > { %s7834_s27 = sld [smem:[#allocation81_spill]]  ;;  %s6512_s13 = smov [#allocation22]  }
 0x205   : > { %5029 = dma.hbm_to_vmem [thread:$0]  (!%p7832_p1), %s7833_s17, 1024, %s7021_s25, [#allocation18], %s7815_s10, %s7815_s10, %s7814_s7  }
 0x206   : > { %s897_s23 = sshll.u32 %s6512_s13, 4  ;;  %s6513_s12 = smov [#allocation25]   ;;  %s898_s23 = int_to_ptr.vmem [resolvable:$true] %s897_s23 }
 0x207   : > { %s918_s14 = sshll.u32 %s6513_s12, 4  ;;  %s7054_s14 = int_to_ptr.vmem [resolvable:$true] %s918_s14 }
 0x20a   : > { %s5928_s19 = scalar_lea.hbm %s7834_s27, 16 }
 0x20b   : > { %p5929_p12 = scmp.ne.s32.totalorder %s7834_s27, %s5928_s19  ;;  %p5935_p7 = scmp.lt.u32.totalorder %s5928_s19, %s7834_s27 }
 0x20d   : > { %p5931_p0 = pnand %p5929_p12, %p7831_p9 }
 0x20f   : > { %p5932_p2 = pneg %p5931_p0 }
 0x211   : > { %p5937_p3 = pnand %p5935_p7, %p5932_p2 }
 0x213   : > { %5940 = shalt.err (!%p5937_p3)
}
 0x214   : > { %s5941_s29 = scalar_lea.vmem %s898_s23, 16  ;;  %s5948_s25 = scalar_lea.vmem %s898_s23, 32 }
 0x215   : > { %p5942_p4 = scmp.ne.s32.totalorder %s898_s23, %s5941_s29  ;;  %p5949_p6 = scmp.lt.s32.totalorder %s898_s23, %s898_s23 }
 0x216   : > { %p5950_p8 = scmp.lt.s32.totalorder %s5948_s25, %s5941_s29 }
 0x217   : > { %p5944_p10 = pnand %p5942_p4, %p7831_p9 }
 0x218   : > { %p5951_p13 = por %p5950_p8, %p5949_p6 }
 0x219   : > { %p5945_p11 = pneg %p5944_p10 }
 0x21b   : > { %p5952_p5 = pnand %p5951_p13, %p5945_p11 }
 0x21d   : > { %5955 = shalt.err (!%p5952_p5)
}
 0x21e   : > { %s7835_s1 = sld [smem:[#allocation83_spill]] }
 0x21f   : > { %5035 = dma.hbm_to_vmem [thread:$0]  (!%p7832_p1), %s7834_s27, 16, %s898_s23, [#allocation21]  }
 0x224   : > { %s5956_s13 = scalar_lea.hbm %s7835_s1, 1024 }
 0x225   : > { %p5957_p12 = scmp.ne.s32.totalorder %s7835_s1, %s5956_s13  ;;  %p5963_p7 = scmp.lt.u32.totalorder %s5956_s13, %s7835_s1 }
 0x227   : > { %p5959_p0 = pnand %p5957_p12, %p7831_p9 }
 0x229   : > { %p5960_p2 = pneg %p5959_p0 }
 0x22b   : > { %p5965_p3 = pnand %p5963_p7, %p5960_p2 }
 0x22d   : > { %5968 = shalt.err (!%p5965_p3)
}
 0x22e   : > { %s5969_s12 = scalar_lea.vmem %s7054_s14, 1024  ;;  %p5977_p6 = scmp.lt.s32.totalorder %s7054_s14, %s7054_s14 }
 0x22f   : > { %p5970_p4 = scmp.ne.s32.totalorder %s7054_s14, %s5969_s12  ;;  %p5978_p8 = scmp.lt.s32.totalorder %s5969_s12, %s5969_s12 }
 0x231   : > { %p5972_p10 = pnand %p5970_p4, %p7831_p9  ;;  %p5979_p13 = por %p5978_p8, %p5977_p6 }
 0x233   : > { %p5973_p11 = pneg %p5972_p10 }
 0x235   : > { %p5980_p5 = pnand %p5979_p13, %p5973_p11 }
 0x237   : > { %5983 = shalt.err (!%p5980_p5)
}
 0x238   : > { %s7836_s23 = sld [smem:[#allocation85_spill]]  ;;  %s6514_s29 = smov [#allocation28]  }
 0x239   : > { %5041 = dma.hbm_to_vmem [thread:$0]  (!%p7832_p1), %s7835_s1, 1024, %s7054_s14, [#allocation24], %s7815_s10, %s7815_s10, %s7814_s7  }
 0x23a   : > { %s942_s25 = sshll.u32 %s6514_s29, 4  ;;  %s6515_s13 = smov [#allocation31]   ;;  %s943_s25 = int_to_ptr.vmem [resolvable:$true] %s942_s25 }
 0x23b   : > { %s966_s3 = sshll.u32 %s6515_s13, 4  ;;  %s7084_s3 = int_to_ptr.vmem [resolvable:$true] %s966_s3 }
 0x23e   : > { %s7837_s19 = smov %s7836_s23  ;;  %s5984_s12 = scalar_lea.hbm %s7836_s23, 2048 }
 0x23f   : > { %p5985_p12 = scmp.ne.s32.totalorder %s7837_s19, %s5984_s12  ;;  %p5991_p7 = scmp.lt.u32.totalorder %s5984_s12, %s7837_s19 }
 0x241   : > { %p5987_p0 = pnand %p5985_p12, %p7831_p9 }
 0x243   : > { %p5988_p2 = pneg %p5987_p0 }
 0x245   : > { %p5993_p3 = pnand %p5991_p7, %p5988_p2 }
 0x247   : > { %5996 = shalt.err (!%p5993_p3)
}
 0x248   : > { %s5997_s9 = scalar_lea.vmem %s943_s25, 2048  ;;  %p6005_p6 = scmp.lt.s32.totalorder %s943_s25, %s943_s25 }
 0x249   : > { %p5998_p4 = scmp.ne.s32.totalorder %s943_s25, %s5997_s9  ;;  %p6006_p8 = scmp.lt.s32.totalorder %s5997_s9, %s5997_s9 }
 0x24b   : > { %p6000_p10 = pnand %p5998_p4, %p7831_p9  ;;  %p6007_p13 = por %p6006_p8, %p6005_p6 }
 0x24d   : > { %p6001_p11 = pneg %p6000_p10 }
 0x24f   : > { %p6008_p5 = pnand %p6007_p13, %p6001_p11 }
 0x251   : > { %6011 = shalt.err (!%p6008_p5)
}
 0x252   : > { %s7838_s14 = sld [smem:[#allocation87_spill]] }
 0x253   : > { %5047 = dma.hbm_to_vmem [thread:$0]  (!%p7832_p1), %s7837_s19, 2048, %s943_s25, [#allocation27], %s7826_s28, %s7826_s28, %s7825_s20  }
 0x258   : > { %s6012_s23 = scalar_lea.hbm %s7838_s14, 1024 }
 0x259   : > { %p6013_p12 = scmp.ne.s32.totalorder %s7838_s14, %s6012_s23  ;;  %p6019_p7 = scmp.lt.u32.totalorder %s6012_s23, %s7838_s14 }
 0x25b   : > { %p6015_p0 = pnand %p6013_p12, %p7831_p9 }
 0x25d   : > { %p6016_p2 = pneg %p6015_p0 }
 0x25f   : > { %p6021_p3 = pnand %p6019_p7, %p6016_p2 }
 0x261   : > { %6024 = shalt.err (!%p6021_p3)
}
 0x262   : > { %s6025_s9 = scalar_lea.vmem %s7084_s3, 1024  ;;  %p6033_p6 = scmp.lt.s32.totalorder %s7084_s3, %s7084_s3 }
 0x263   : > { %p6026_p4 = scmp.ne.s32.totalorder %s7084_s3, %s6025_s9  ;;  %p6034_p8 = scmp.lt.s32.totalorder %s6025_s9, %s6025_s9 }
 0x265   : > { %p6028_p10 = pnand %p6026_p4, %p7831_p9  ;;  %p6035_p13 = por %p6034_p8, %p6033_p6 }
 0x267   : > { %p6029_p11 = pneg %p6028_p10 }
 0x269   : > { %p6036_p5 = pnand %p6035_p13, %p6029_p11 }
 0x26b   : > { %6039 = shalt.err (!%p6036_p5)
}
 0x26c   : > { %s7839_s20 = sld [smem:[#allocation89_spill]]  ;;  %s6516_s28 = smov [#allocation34]  }
 0x26d   : > { %5053 = dma.hbm_to_vmem [thread:$0]  (!%p7832_p1), %s7838_s14, 1024, %s7084_s3, [#allocation30], %s7815_s10, %s7815_s10, %s7814_s7  }
 0x26e   : > { %s991_s29 = sshll.u32 %s6516_s28, 4  ;;  %s6517_s25 = smov [#allocation37]   ;;  %s992_s29 = int_to_ptr.vmem [resolvable:$true] %s991_s29 }
 0x26f   : > { %s1012_s13 = sshll.u32 %s6517_s25, 4  ;;  %s7117_s13 = int_to_ptr.vmem [resolvable:$true] %s1012_s13 }
 0x272   : > { %s6040_s12 = scalar_lea.hbm %s7839_s20, 16 }
 0x273   : > { %p6041_p12 = scmp.ne.s32.totalorder %s7839_s20, %s6040_s12  ;;  %p6047_p7 = scmp.lt.u32.totalorder %s6040_s12, %s7839_s20 }
 0x275   : > { %p6043_p0 = pnand %p6041_p12, %p7831_p9 }
 0x277   : > { %p6044_p2 = pneg %p6043_p0 }
 0x279   : > { %p6049_p3 = pnand %p6047_p7, %p6044_p2 }
 0x27b   : > { %6052 = shalt.err (!%p6049_p3)
}
 0x27c   : > { %s6053_s23 = scalar_lea.vmem %s992_s29, 16  ;;  %s6060_s3 = scalar_lea.vmem %s992_s29, 32 }
 0x27d   : > { %p6054_p4 = scmp.ne.s32.totalorder %s992_s29, %s6053_s23  ;;  %p6061_p6 = scmp.lt.s32.totalorder %s992_s29, %s992_s29 }
 0x27e   : > { %p6062_p8 = scmp.lt.s32.totalorder %s6060_s3, %s6053_s23 }
 0x27f   : > { %p6056_p10 = pnand %p6054_p4, %p7831_p9 }
 0x280   : > { %p6063_p13 = por %p6062_p8, %p6061_p6 }
 0x281   : > { %p6057_p11 = pneg %p6056_p10 }
 0x283   : > { %p6064_p5 = pnand %p6063_p13, %p6057_p11 }
 0x285   : > { %6067 = shalt.err (!%p6064_p5)
}
 0x286   : > { %s7840_s9 = sld [smem:[#allocation91_spill]] }
 0x287   : > { %5059 = dma.hbm_to_vmem [thread:$0]  (!%p7832_p1), %s7839_s20, 16, %s992_s29, [#allocation33]  }
 0x28c   : > { %s6068_s28 = scalar_lea.hbm %s7840_s9, 1024 }
 0x28d   : > { %p6069_p12 = scmp.ne.s32.totalorder %s7840_s9, %s6068_s28  ;;  %p6075_p7 = scmp.lt.u32.totalorder %s6068_s28, %s7840_s9 }
 0x28f   : > { %p6071_p0 = pnand %p6069_p12, %p7831_p9 }
 0x291   : > { %p6072_p2 = pneg %p6071_p0 }
 0x293   : > { %p6077_p3 = pnand %p6075_p7, %p6072_p2 }
 0x295   : > { %6080 = shalt.err (!%p6077_p3)
}
 0x296   : > { %s6081_s25 = scalar_lea.vmem %s7117_s13, 1024  ;;  %p6089_p6 = scmp.lt.s32.totalorder %s7117_s13, %s7117_s13 }
 0x297   : > { %p6082_p4 = scmp.ne.s32.totalorder %s7117_s13, %s6081_s25  ;;  %p6090_p8 = scmp.lt.s32.totalorder %s6081_s25, %s6081_s25 }
 0x299   : > { %p6084_p10 = pnand %p6082_p4, %p7831_p9  ;;  %p6091_p13 = por %p6090_p8, %p6089_p6 }
 0x29b   : > { %p6085_p11 = pneg %p6084_p10 }
 0x29d   : > { %p6092_p5 = pnand %p6091_p13, %p6085_p11 }
 0x29f   : > { %6095 = shalt.err (!%p6092_p5)
}
 0x2a0   : > { %s7841_s29 = sld [smem:[#allocation93_spill]]  ;;  %s6518_s12 = smov [#allocation40]  }
 0x2a1   : > { %5065 = dma.hbm_to_vmem [thread:$0]  (!%p7832_p1), %s7840_s9, 1024, %s7117_s13, [#allocation36], %s7815_s10, %s7815_s10, %s7814_s7  }
 0x2a2   : > { %s1039_s23 = sshll.u32 %s6518_s12, 4  ;;  %s6519_s3 = smov [#allocation43]   ;;  %s1040_s23 = int_to_ptr.vmem [resolvable:$true] %s1039_s23 }
 0x2a3   : > { %s1063_s28 = sshll.u32 %s6519_s3, 4  ;;  %s7147_s28 = int_to_ptr.vmem [resolvable:$true] %s1063_s28 }
 0x2a6   : > { %s6096_s25 = scalar_lea.hbm %s7841_s29, 16 }
 0x2a7   : > { %p6097_p12 = scmp.ne.s32.totalorder %s7841_s29, %s6096_s25  ;;  %p6103_p7 = scmp.lt.u32.totalorder %s6096_s25, %s7841_s29 }
 0x2a9   : > { %p6099_p0 = pnand %p6097_p12, %p7831_p9 }
 0x2ab   : > { %p6100_p2 = pneg %p6099_p0 }
 0x2ad   : > { %p6105_p3 = pnand %p6103_p7, %p6100_p2 }
 0x2af   : > { %6108 = shalt.err (!%p6105_p3)
}
 0x2b0   : > { %s6109_s1 = scalar_lea.vmem %s1040_s23, 16  ;;  %s6116_s7 = scalar_lea.vmem %s1040_s23, 32 }
 0x2b1   : > { %p6110_p4 = scmp.ne.s32.totalorder %s1040_s23, %s6109_s1  ;;  %p6117_p6 = scmp.lt.s32.totalorder %s1040_s23, %s1040_s23 }
 0x2b2   : > { %p6118_p8 = scmp.lt.s32.totalorder %s6116_s7, %s6109_s1 }
 0x2b3   : > { %p6112_p10 = pnand %p6110_p4, %p7831_p9 }
 0x2b4   : > { %p6119_p13 = por %p6118_p8, %p6117_p6 }
 0x2b5   : > { %p6113_p11 = pneg %p6112_p10 }
 0x2b7   : > { %p6120_p5 = pnand %p6119_p13, %p6113_p11 }
 0x2b9   : > { %6123 = shalt.err (!%p6120_p5)
}
 0x2ba   : > { %s7842_s10 = sld [smem:[#allocation95_spill]] }
 0x2bb   : > { %5071 = dma.hbm_to_vmem [thread:$0]  (!%p7832_p1), %s7841_s29, 16, %s1040_s23, [#allocation39]  }
 0x2c0   : > { %s6124_s13 = scalar_lea.hbm %s7842_s10, 32 }
 0x2c1   : > { %p6125_p12 = scmp.ne.s32.totalorder %s7842_s10, %s6124_s13  ;;  %p6131_p7 = scmp.lt.u32.totalorder %s6124_s13, %s7842_s10 }
 0x2c3   : > { %p6127_p0 = pnand %p6125_p12, %p7831_p9 }
 0x2c5   : > { %p6128_p2 = pneg %p6127_p0 }
 0x2c7   : > { %p6133_p3 = pnand %p6131_p7, %p6128_p2 }
 0x2c9   : > { %6136 = shalt.err (!%p6133_p3)
}
 0x2ca   : > { %s6137_s1 = scalar_lea.vmem %s7147_s28, 32  ;;  %p6145_p6 = scmp.lt.s32.totalorder %s7147_s28, %s7147_s28 }
 0x2cb   : > { %p6138_p4 = scmp.ne.s32.totalorder %s7147_s28, %s6137_s1  ;;  %p6146_p8 = scmp.lt.s32.totalorder %s6137_s1, %s6137_s1 }
 0x2cd   : > { %p6140_p10 = pnand %p6138_p4, %p7831_p9  ;;  %p6147_p13 = por %p6146_p8, %p6145_p6 }
 0x2cf   : > { %p6141_p11 = pneg %p6140_p10 }
 0x2d1   : > { %p6148_p5 = pnand %p6147_p13, %p6141_p11 }
 0x2d3   : > { %6151 = shalt.err (!%p6148_p5)
}
 0x2d4   : > { %5077 = dma.hbm_to_vmem [thread:$0]  (!%p7832_p1), %s7842_s10, 32, %s7147_s28, [#allocation42]  }
 0x2d5   : > { %s6520_s12 = smov [#allocation46]   ;;  %s6521_s3 = smov [#allocation49]  }
 0x2d6   : > { %s1087_s23 = sshll.u32 %s6520_s12, 4  ;;  %s1109_s25 = sshll.u32 %s6521_s3, 4  ;;  %s1088_s23 = int_to_ptr.vmem [resolvable:$true] %s1087_s23  ;;  %s7174_s25 = int_to_ptr.vmem [resolvable:$true] %s1109_s25 }
 0x2d7   : > { %s6152_s7 = scalar_lea.hbm %s7793_s5, 16 }
 0x2d8   : > { %p6153_p12 = scmp.ne.s32.totalorder %s7793_s5, %s6152_s7  ;;  %p6159_p7 = scmp.lt.u32.totalorder %s6152_s7, %s7793_s5 }
 0x2da   : > { %p6155_p0 = pnand %p6153_p12, %p7831_p9 }
 0x2dc   : > { %p6156_p2 = pneg %p6155_p0 }
 0x2de   : > { %p6161_p3 = pnand %p6159_p7, %p6156_p2 }
 0x2e0   : > { %6164 = shalt.err (!%p6161_p3)
}
 0x2e1   : > { %s6165_s13 = scalar_lea.vmem %s1088_s23, 16  ;;  %s6172_s28 = scalar_lea.vmem %s1088_s23, 32 }
 0x2e2   : > { %p6166_p4 = scmp.ne.s32.totalorder %s1088_s23, %s6165_s13  ;;  %p6173_p6 = scmp.lt.s32.totalorder %s1088_s23, %s1088_s23 }
 0x2e3   : > { %p6174_p8 = scmp.lt.s32.totalorder %s6172_s28, %s6165_s13 }
 0x2e4   : > { %p6168_p10 = pnand %p6166_p4, %p7831_p9 }
 0x2e5   : > { %p6175_p13 = por %p6174_p8, %p6173_p6 }
 0x2e6   : > { %p6169_p11 = pneg %p6168_p10 }
 0x2e8   : > { %p6176_p5 = pnand %p6175_p13, %p6169_p11 }
 0x2ea   : > { %6179 = shalt.err (!%p6176_p5)
}
 0x2eb   : > { %s7843_s1 = sld [smem:[#allocation99_spill]] }
 0x2ec   : > { %5083 = dma.hbm_to_vmem [thread:$0]  (!%p7832_p1), %s7793_s5, 16, %s1088_s23, [#allocation45]  }
 0x2f1   : > { %s6180_s12 = scalar_lea.hbm %s7843_s1, 16 }
 0x2f2   : > { %p6181_p12 = scmp.ne.s32.totalorder %s7843_s1, %s6180_s12  ;;  %p6187_p7 = scmp.lt.u32.totalorder %s6180_s12, %s7843_s1 }
 0x2f4   : > { %p6183_p0 = pnand %p6181_p12, %p7831_p9 }
 0x2f6   : > { %p6184_p2 = pneg %p6183_p0 }
 0x2f8   : > { %p6189_p3 = pnand %p6187_p7, %p6184_p2 }
 0x2fa   : > { %6192 = shalt.err (!%p6189_p3)
}
 0x2fb   : > { %s6193_s3 = scalar_lea.vmem %s7174_s25, 16  ;;  %s6200_s7 = scalar_lea.vmem %s7174_s25, 32 }
 0x2fc   : > { %p6194_p4 = scmp.ne.s32.totalorder %s7174_s25, %s6193_s3  ;;  %p6201_p6 = scmp.lt.s32.totalorder %s7174_s25, %s7174_s25 }
 0x2fd   : > { %p6202_p8 = scmp.lt.s32.totalorder %s6200_s7, %s6193_s3 }
 0x2fe   : > { %p6196_p10 = pnand %p6194_p4, %p7831_p9 }
 0x2ff   : > { %p6203_p13 = por %p6202_p8, %p6201_p6 }
 0x300   : > { %p6197_p11 = pneg %p6196_p10 }
 0x302   : > { %p6204_p5 = pnand %p6203_p13, %p6197_p11 }
 0x304   : > { %6207 = shalt.err (!%p6204_p5)
}
 0x305   : > { %s7844_s23 = sld [smem:[#allocation69_spill]]  ;;  %s7203_s21 = sshll.u32 %s6942_s4, 3 }
 0x306   : > { %5089 = dma.hbm_to_vmem [thread:$0]  (!%p7832_p1), %s7843_s1, 16, %s7174_s25, [#allocation48]  }
 0x307   : > { %s7206_s28 = sshll.u32 %s6458_s26, 7  ;;  %s1124_s15 = scalar_lea.vmem [#allocation2], %s7203_s21 }
 0x308   : > { %s1131_s3 = sshll.u32 %s1124_s15, 4  ;;  %s1121_s7 = scalar_lea.sflag [#allocation3], %s6942_s4  ;;  %s1132_s3 = int_to_ptr.vmem [resolvable:$true] %s1131_s3 }
 0x309   : > { %p7846_p12 = scmp.ne.s32.totalorder %s7824_s24, 0 }
 0x30b   : > { %s7845_s13 = smov %s7844_s23  ;;  %s7210_s12 = scalar_lea.hbm %s7844_s23, %s7206_s28 }
 0x30c   : > { %s6208_s5 = scalar_lea.hbm %s7210_s12, 128  ;;  %s6213_s25 = scalar_lea.hbm %s7845_s13, 256 }
 0x30d   : > { %p6209_p9 = scmp.ne.s32.totalorder %s7210_s12, %s6208_s5  ;;  %p6214_p2 = scmp.lt.u32.totalorder %s7210_s12, %s7845_s13 }
 0x30e   : > { %p6215_p7 = scmp.lt.u32.totalorder %s6213_s25, %s6208_s5  ;;  %p6217_p4 = scmp.lt.u32.totalorder %s6208_s5, %s7210_s12 }
 0x30f   : > { %p6211_p1 = pnand %p6209_p9, %p7846_p12 }
 0x310   : > { %p6216_p3 = por %p6215_p7, %p6214_p2 }
 0x311   : > { %p6212_p0 = pneg %p6211_p1 }
 0x312   : > { %p6218_p10 = por %p6217_p4, %p6216_p3 }
 0x314   : > { %p6219_p11 = pnand %p6218_p10, %p6212_p0 }
 0x316   : > { %6222 = shalt.err (!%p6219_p11)
}
 0x317   : > { %s6223_s23 = scalar_lea.vmem %s1132_s3, 128  ;;  %s6522_s15 = smov [#allocation2]  }
 0x318   : > { %p6224_p6 = scmp.ne.s32.totalorder %s1132_s3, %s6223_s23  ;;  %s6228_s1 = sshll.u32 %s6522_s15, 4  ;;  %s6229_s1 = int_to_ptr.vmem [resolvable:$false] %s6228_s1 }
 0x319   : > { %s6230_s9 = scalar_lea.vmem %s6229_s1, 256  ;;  %p6231_p5 = scmp.lt.s32.totalorder %s1132_s3, %s6229_s1 }
 0x31a   : > { %p6226_p8 = pnand %p6224_p6, %p7846_p12  ;;  %p6232_p9 = scmp.lt.s32.totalorder %s6230_s9, %s6223_s23 }
 0x31c   : > { %p6227_p13 = pneg %p6226_p8  ;;  %p6233_p1 = por %p6232_p9, %p6231_p5 }
 0x31e   : > { %p6234_p2 = pnand %p6233_p1, %p6227_p13 }
 0x320   : > { %6237 = shalt.err (!%p6234_p2)
}
 0x321   : > { %p7847_p7 = scmp.ne.s32.totalorder %s7823_s6, 0  ;;  %s7848_s5 = sld [smem:[#allocation71_spill]] }
 0x322   : > { %s1163_s9 = scalar_lea.vmem [#allocation7], %s7203_s21 }
 0x323   : > { %5093 = dma.hbm_to_vmem [thread:$0]  (!%p7847_p7), %s7210_s12, 128, %s1132_s3, %s1121_s7  }
 0x324   : > { %s1170_s1 = sshll.u32 %s1163_s9, 4  ;;  %s1171_s1 = int_to_ptr.vmem [resolvable:$true] %s1170_s1 }
 0x327   : > { %s7229_s25 = scalar_lea.hbm %s7848_s5, %s7206_s28  ;;  %s6243_s15 = scalar_lea.hbm %s7848_s5, 256 }
 0x328   : > { %s6238_s23 = scalar_lea.hbm %s7229_s25, 128  ;;  %p6244_p10 = scmp.lt.u32.totalorder %s7229_s25, %s7848_s5 }
 0x329   : > { %p6239_p0 = scmp.ne.s32.totalorder %s7229_s25, %s6238_s23  ;;  %p6245_p11 = scmp.lt.u32.totalorder %s6243_s15, %s6238_s23 }
 0x32a   : > { %p6247_p8 = scmp.lt.u32.totalorder %s6238_s23, %s7229_s25 }
 0x32b   : > { %p6241_p3 = pnand %p6239_p0, %p7846_p12  ;;  %p6246_p6 = por %p6245_p11, %p6244_p10 }
 0x32d   : > { %p6242_p4 = pneg %p6241_p3  ;;  %p6248_p13 = por %p6247_p8, %p6246_p6 }
 0x32f   : > { %p6249_p5 = pnand %p6248_p13, %p6242_p4 }
 0x331   : > { %6252 = shalt.err (!%p6249_p5)
}
 0x332   : > { %s6253_s12 = scalar_lea.vmem %s1171_s1, 128  ;;  %s6523_s3 = smov [#allocation7]  }
 0x333   : > { %p6254_p9 = scmp.ne.s32.totalorder %s1171_s1, %s6253_s12  ;;  %s6258_s7 = sshll.u32 %s6523_s3, 4  ;;  %s6259_s7 = int_to_ptr.vmem [resolvable:$false] %s6258_s7 }
 0x334   : > { %s6260_s9 = scalar_lea.vmem %s6259_s7, 256  ;;  %p6261_p0 = scmp.lt.s32.totalorder %s1171_s1, %s6259_s7 }
 0x335   : > { %p6256_p1 = pnand %p6254_p9, %p7846_p12  ;;  %p6262_p3 = scmp.lt.s32.totalorder %s6260_s9, %s6253_s12 }
 0x337   : > { %p6257_p2 = pneg %p6256_p1  ;;  %p6263_p7 = por %p6262_p3, %p6261_p0 }
 0x339   : > { %p6264_p10 = pnand %p6263_p7, %p6257_p2 }
 0x33b   : > { %6267 = shalt.err (!%p6264_p10)
}
 0x33c   : > { %p7849_p11 = scmp.ne.s32.totalorder %s7823_s6, 0  ;;  %s7850_s23 = scalar_lea.sflag [#allocation6], %s6949_s18 }
 0x33d   : > { %s1197_s15 = scalar_lea.vmem [#allocation10], %s6942_s4  ;;  %s6268_s12 = scalar_lea.hbm %s6999_s30, 16 }
 0x33e   : > { %5099 = dma.hbm_to_vmem [thread:$0]  (!%p7849_p11), %s7229_s25, 128, %s1171_s1, %s7850_s23  }
 0x33f   : > { %s1204_s3 = sshll.u32 %s1197_s15, 4  ;;  %p6269_p7 = scmp.ne.s32.totalorder %s6999_s30, %s6268_s12  ;;  %s1205_s3 = int_to_ptr.vmem [resolvable:$true] %s1204_s3 }
 0x340   : > { %s6273_s7 = scalar_lea.hbm %s7828_s8, 32  ;;  %p6274_p8 = scmp.lt.u32.totalorder %s6999_s30, %s7828_s8 }
 0x341   : > { %p6271_p4 = pnand %p6269_p7, %p7846_p12  ;;  %p6275_p13 = scmp.lt.u32.totalorder %s6273_s7, %s6268_s12 }
 0x342   : > { %p6277_p9 = scmp.lt.u32.totalorder %s6268_s12, %s6999_s30 }
 0x343   : > { %p6272_p6 = pneg %p6271_p4  ;;  %p6276_p5 = por %p6275_p13, %p6274_p8 }
 0x345   : > { %p6278_p1 = por %p6277_p9, %p6276_p5 }
 0x347   : > { %p6279_p2 = pnand %p6278_p1, %p6272_p6 }
 0x349   : > { %6282 = shalt.err (!%p6279_p2)
}
 0x34a   : > { %s6283_s9 = scalar_lea.vmem %s1205_s3, 16  ;;  %s6524_s4 = smov [#allocation10]  }
 0x34b   : > { %p6284_p0 = scmp.ne.s32.totalorder %s1205_s3, %s6283_s9  ;;  %s6288_s25 = sshll.u32 %s6524_s4, 4  ;;  %s6289_s25 = int_to_ptr.vmem [resolvable:$false] %s6288_s25 }
 0x34c   : > { %s6290_s1 = scalar_lea.vmem %s6289_s25, 32  ;;  %p6291_p7 = scmp.lt.s32.totalorder %s1205_s3, %s6289_s25 }
 0x34d   : > { %p6286_p3 = pnand %p6284_p0, %p7846_p12  ;;  %p6292_p4 = scmp.lt.s32.totalorder %s6290_s1, %s6283_s9 }
 0x34f   : > { %p6287_p10 = pneg %p6286_p3  ;;  %p6293_p11 = por %p6292_p4, %p6291_p7 }
 0x351   : > { %p6294_p8 = pnand %p6293_p11, %p6287_p10 }
 0x353   : > { %6297 = shalt.err (!%p6294_p8)
}
 0x354   : > { %p7851_p13 = scmp.ne.s32.totalorder %s7823_s6, 0  ;;  %s7852_s23 = scalar_lea.sflag [#allocation9], %s6949_s18 }
 0x355   : > { %s7853_s15 = sld [smem:[#allocation74_spill]]  ;;  %s1215_s7 = scalar_lea.vmem [#allocation11], %s7203_s21 }
 0x356   : > { %5105 = dma.hbm_to_vmem [thread:$0]  (!%p7851_p13), %s6999_s30, 16, %s1205_s3, %s7852_s23  }
 0x357   : > { %s1222_s9 = sshll.u32 %s1215_s7, 4  ;;  %s1212_s4 = scalar_lea.sflag [#allocation12], %s6949_s18  ;;  %s1223_s9 = int_to_ptr.vmem [resolvable:$true] %s1222_s9 }
 0x35b   : > { %s7265_s12 = scalar_lea.hbm %s7853_s15, %s7206_s28  ;;  %s6303_s1 = scalar_lea.hbm %s7853_s15, 256 }
 0x35c   : > { %s6298_s25 = scalar_lea.hbm %s7265_s12, 128  ;;  %p6304_p9 = scmp.lt.u32.totalorder %s7265_s12, %s7853_s15 }
 0x35d   : > { %p6299_p11 = scmp.ne.s32.totalorder %s7265_s12, %s6298_s25  ;;  %p6305_p1 = scmp.lt.u32.totalorder %s6303_s1, %s6298_s25 }
 0x35e   : > { %p6307_p0 = scmp.lt.u32.totalorder %s6298_s25, %s7265_s12 }
 0x35f   : > { %p6301_p6 = pnand %p6299_p11, %p7846_p12  ;;  %p6306_p2 = por %p6305_p1, %p6304_p9 }
 0x361   : > { %p6302_p5 = pneg %p6301_p6  ;;  %p6308_p3 = por %p6307_p0, %p6306_p2 }
 0x363   : > { %p6309_p10 = pnand %p6308_p3, %p6302_p5 }
 0x365   : > { %6312 = shalt.err (!%p6309_p10)
}
 0x366   : > { %s6313_s30 = scalar_lea.vmem %s1223_s9, 128  ;;  %s6525_s18 = smov [#allocation11]  }
 0x367   : > { %p6314_p7 = scmp.ne.s32.totalorder %s1223_s9, %s6313_s30  ;;  %s6318_s21 = sshll.u32 %s6525_s18, 4  ;;  %s6319_s21 = int_to_ptr.vmem [resolvable:$false] %s6318_s21 }
 0x368   : > { %s6320_s28 = scalar_lea.vmem %s6319_s21, 256  ;;  %p6321_p11 = scmp.lt.s32.totalorder %s1223_s9, %s6319_s21 }
 0x369   : > { %p6316_p4 = pnand %p6314_p7, %p7846_p12  ;;  %p6322_p6 = scmp.lt.s32.totalorder %s6320_s28, %s6313_s30 }
 0x36b   : > { %p6317_p8 = pneg %p6316_p4  ;;  %p6323_p13 = por %p6322_p6, %p6321_p11 }
 0x36d   : > { %p6324_p1 = pnand %p6323_p13, %p6317_p8 }
 0x36f   : > { %6327 = shalt.err (!%p6324_p1)
}
 0x370   : > { %p7854_p9 = scmp.ne.s32.totalorder %s7823_s6, 0  ;;  %s7855_s3 = sld [smem:[#allocation102_spill]] }
 0x372   : > { %5108 = dma.hbm_to_vmem [thread:$0]  (!%p7854_p9), %s7265_s12, 128, %s1223_s9, %s1212_s4  }
 0x376   : > { %p7856_p5 = scmp.ne.s32.totalorder %s7855_s3, 0 }
 0x377   : > { %s7285_s24 = sand.u32 (!%p7856_p5), 1, %s6450_s22   ;;  %p7857_p12 = scmp.ne.s32.totalorder (!%p7856_p5), %s7819_s16, 0 }
 0x378   : > { %1231 = sbr.rel (%p7856_p5) target bundleno = 5419 (0x152b), region = 144  ;;  %s7288_s23 = sshll.u32 (!%p7856_p5), %s7285_s24, 3 }
 0x379   : > { %s1234_s7 = scalar_lea.sflag (!%p7856_p5), [#allocation3], %s7285_s24  ;;  %s1237_s25 = scalar_lea.vmem (!%p7856_p5), [#allocation2], %s7288_s23 }
 0x37f   : > { %6373 = dma.done.wait (%p7857_p12), %s1234_s7, 128  }
 0x380   : > { %6375 = vsyncadd (%p7857_p12), %s1234_s7, 4294967168  ;;  %s1242_s6 = sand.u32 1, %s6719_s2   ;;  %s4371_s12 = sshll.u32 %s7285_s24, 4 }
 0x381   : > { %s1243_s9 = scalar_lea.sflag [#allocation6], %s1242_s6  ;;  %s7298_s4 = scalar_lea.vmem [#allocation5], %s4371_s12 }
 0x382   : > { %6377 = dma.done.wait (%p7857_p12), %s1243_s9, 384  }
 0x383   : > { %6379 = vsyncadd (%p7857_p12), %s1243_s9, 4294966912  ;;  %s1255_s1 = scalar_lea.vmem [#allocation7], %s7288_s23  ;;  %s1261_s30 = scalar_lea.sflag [#allocation9], %s1242_s6 }
 0x384   : > { %s1263_s18 = scalar_lea.vmem [#allocation8], %s7285_s24 }
 0x385   : > { %6381 = dma.done.wait (%p7857_p12), %s1261_s30, 32  }
 0x386   : > { %6383 = vsyncadd (%p7857_p12), %s1261_s30, 4294967264  ;;  %s1271_s21 = scalar_lea.vmem [#allocation10], %s7285_s24  ;;  %s1277_s28 = scalar_lea.sflag [#allocation12], %s1242_s6 }
 0x387   : > { %s1280_s3 = scalar_lea.vmem [#allocation11], %s7288_s23 }
 0x388   : > { %6385 = dma.done.wait (%p7857_p12), %s1277_s28, 128  }
 0x389   : > { %6387 = vsyncadd (%p7857_p12), %s1277_s28, 4294967168  ;;  %p7858_p13 = scmp.eq.s32.totalorder %s6719_s2, 0 }
 0x38b   : > { %6389 = dma.done.wait (%p7858_p13), [#allocation12], 1024   ;;  %p7859_p2 = pmov %p7858_p13 }
 0x38d   : > { %6391 = vsyncadd (%p7859_p2), [#allocation12], 4294966272  ;;  %p7860_p0 = pmov %p7859_p2 }
 0x38f   : > { %6393 = dma.done.wait (%p7860_p0), [#allocation15], 2064   ;;  %p7861_p3 = pmov %p7860_p0 }
 0x390   : > { %p7862_p10 = pmov %p7860_p0 }
 0x391   : > { %6395 = vsyncadd (%p7861_p3), [#allocation15], 4294965232 }
 0x392   : > { %6397 = dma.done.wait (%p7862_p10), [#allocation18], 1056   ;;  %p7863_p7 = pmov %p7860_p0 }
 0x393   : > { %p7864_p4 = pmov %p7860_p0 }
 0x394   : > { %6399 = vsyncadd (%p7863_p7), [#allocation18], 4294966240 }
 0x395   : > { %6401 = dma.done.wait (%p7864_p4), [#allocation21], 32   ;;  %p7865_p8 = pmov %p7860_p0 }
 0x396   : > { %p7866_p11 = pmov %p7860_p0 }
 0x397   : > { %6403 = vsyncadd (%p7865_p8), [#allocation21], 4294967264 }
 0x398   : > { %6405 = dma.done.wait (%p7866_p11), [#allocation24], 1040   ;;  %p7867_p6 = pmov %p7860_p0 }
 0x399   : > { %p7868_p1 = pmov %p7860_p0 }
 0x39a   : > { %6407 = vsyncadd (%p7867_p6), [#allocation24], 4294966256 }
 0x39b   : > { %6409 = dma.done.wait (%p7868_p1), [#allocation27], 2064   ;;  %p7869_p9 = pmov %p7860_p0 }
 0x39c   : > { %p7870_p5 = pmov %p7860_p0 }
 0x39d   : > { %6411 = vsyncadd (%p7869_p9), [#allocation27], 4294965232 }
 0x39e   : > { %6413 = dma.done.wait (%p7870_p5), [#allocation30], 1056   ;;  %p7871_p12 = pmov %p7860_p0 }
 0x39f   : > { %p7872_p13 = pmov %p7860_p0 }
 0x3a0   : > { %6415 = vsyncadd (%p7871_p12), [#allocation30], 4294966240 }
 0x3a1   : > { %6417 = dma.done.wait (%p7872_p13), [#allocation33], 32   ;;  %p7873_p2 = pmov %p7860_p0 }
 0x3a3   : > { %6419 = vsyncadd (%p7873_p2), [#allocation33], 4294967264 }
 0x3a4   : > { %6421 = dma.done.wait (%p7860_p0), [#allocation36], 1040   ;;  %p7874_p3 = pmov %p7860_p0 }
 0x3a5   : > { %p7875_p10 = pmov %p7860_p0 }
 0x3a6   : > { %6423 = vsyncadd (%p7874_p3), [#allocation36], 4294966256 }
 0x3a7   : > { %6425 = dma.done.wait (%p7875_p10), [#allocation39], 1040   ;;  %p7876_p7 = pmov %p7860_p0 }
 0x3a8   : > { %p7877_p4 = pmov %p7860_p0 }
 0x3a9   : > { %6427 = vsyncadd (%p7876_p7), [#allocation39], 4294966256 }
 0x3aa   : > { %6429 = dma.done.wait (%p7877_p4), [#allocation42], 2080   ;;  %p7878_p8 = pmov %p7860_p0 }
 0x3ab   : > { %p7879_p11 = pmov %p7860_p0 }
 0x3ac   : > { %6431 = vsyncadd (%p7878_p8), [#allocation42], 4294965216 }
 0x3ad   : > { %6433 = dma.done.wait (%p7879_p11), [#allocation45], 2064   ;;  %p7880_p6 = pmov %p7860_p0 }
 0x3ae   : > { %p7881_p1 = pmov %p7860_p0 }
 0x3af   : > { %6435 = vsyncadd (%p7880_p6), [#allocation45], 4294965232 }
 0x3b0   : > { %6437 = dma.done.wait (%p7881_p1), [#allocation48], 32   ;;  %p7882_p9 = pmov %p7860_p0 }
 0x3b1   : > { %v6526_v0 = vmov 0.0   ;;  %v6527_v1 = vmov 0   ;;  %vm6528_vm0 = vmmov 0   ;;  %v5265_v2 = vld [vmem:[#allocation16 + $0x4] ss:$8 sps:$4 sm:$0xff]   ;;  %v5283_v14 = vld [vmem:[#allocation13 + $0x18] sm:$0xff]   ;;  %v1638_v31 = vlaneseq }
 0x3b2   : > { %6439 = vsyncadd (%p7882_p9), [#allocation48], 4294967264  ;;  %4664 = vmatprep.subr.bf16.mxu0 %v6526_v0  ;;  %1760 = vmatprep.mubr.bf16.mxu1 %v6527_v1  ;;  %v5267_v3 = vld [vmem:[#allocation16] ss:$8 sps:$4 sm:$0xff]   ;;  %v5268_v4 = vld [vmem:[#allocation16 + $0x14] ss:$8 sps:$4 sm:$0xff]  }
 0x3b3   : > { %4680 = vmatprep.mubr.msk.bf16.mxu0 %vm6528_vm0, %v6526_v0  ;;  %5263 = vset.pattern.permute.xlu1 %v6527_v1  ;;  %v5270_v5 = vld [vmem:[#allocation16 + $0x10] ss:$8 sps:$4 sm:$0xff]   ;;  %v5271_v6 = vld [vmem:[#allocation13] sm:$0xff]   ;;  %v5275_v8 = vld [vmem:[#allocation13 + $0x8] sm:$0xff]   ;;  %v1639_v32 = vshrl.u32 %v1638_v31, 7  ;;  %vm1780_vm1 = vcmask 261120  }
 0x3b4   : > { %5264 = vset.pattern.permute.xlu0 %v6527_v1  ;;  %1728 = vmatprep.subr.bf16.mxu1 %v5265_v2  ;;  %v5272_v7 = vld [vmem:[#allocation16 + $0x24] ss:$8 sps:$4 sm:$0xff]   ;;  %v5274_v9 = vld [vmem:[#allocation16 + $0x20] ss:$8 sps:$4 sm:$0xff]   ;;  %v5276_v10 = vld [vmem:[#allocation16 + $0x34] ss:$8 sps:$4 sm:$0xff]  }
 0x3b5   : > { %1729 = vmatpush1.bf16.msra.mxu1 %v5267_v3  ;;  %4665 = vmatpush3.bf16.msra.mxu0 %v5271_v6  ;;  %v5279_v11 = vld [vmem:[#allocation13 + $0x10] sm:$0xff]   ;;  %v5282_v15 = vld [vmem:[#allocation16 + $0x40] ss:$8 sps:$4 sm:$0xff]   ;;  %v5296_v27 = vld [vmem:[#allocation13 + $0x38] sm:$0xff]   ;;  %v7394_v33 = vsub.s32 0, %v1639_v32  ;;  %v7396_v35 = vsub.s32 1, %v1639_v32 }
 0x3b6   : > { %1730 = vmatprep.subr.bf16.mxu1 %v5268_v4  ;;  %4666 = vmatprep.subr.bf16.mxu0 %v6526_v0  ;;  %v5278_v12 = vld [vmem:[#allocation16 + $0x30] ss:$8 sps:$4 sm:$0xff]   ;;  %v5280_v13 = vld [vmem:[#allocation16 + $0x44] ss:$8 sps:$4 sm:$0xff]   ;;  %v5284_v16 = vld [vmem:[#allocation16 + $0x54] ss:$8 sps:$4 sm:$0xff]  }
 0x3b7   : > { %v5287_v17 = vld [vmem:[#allocation13 + $0x20] sm:$0xff]   ;;  %v5286_v18 = vld [vmem:[#allocation16 + $0x50] ss:$8 sps:$4 sm:$0xff]   ;;  %v5291_v20 = vld [vmem:[#allocation13 + $0x28] sm:$0xff]   ;;  %s6529_s16 = smov 64   ;;  %s6530_s7 = smov 96  }
 0x3b8   : > { %v5288_v19 = vld [vmem:[#allocation16 + $0x64] ss:$8 sps:$4 sm:$0xff]   ;;  %v5290_v21 = vld [vmem:[#allocation16 + $0x60] ss:$8 sps:$4 sm:$0xff]   ;;  %v5292_v22 = vld [vmem:[#allocation16 + $0x74] ss:$8 sps:$4 sm:$0xff]  }
 0x3b9   : > { %1731 = vmatpush1.bf16.msra.mxu1 %v5270_v5  ;;  %4667 = vmatpush3.bf16.msra.mxu0 %v5275_v8  ;;  %v5295_v23 = vld [vmem:[#allocation13 + $0x30] sm:$0xff]   ;;  %v1522_v34 = vld [vmem:[#allocation17] sm:$0x3]  ;;  %v4400_v39 = vld [vmem:[#allocation14] ss:$0 sm:$0xff]  ;;  %s6531_s6 = smov 32  }
 0x3ba   : > { %1732 = vmatprep.subr.bf16.mxu1 %v5272_v7  ;;  %4668 = vmatprep.subr.bf16.mxu0 %v6526_v0  ;;  %v5294_v24 = vld [vmem:[#allocation16 + $0x70] ss:$8 sps:$4 sm:$0xff]   ;;  %v1641_v36 = vrot.slane %v1522_v34, %v7394_v33  ;;  %v1645_v38 = vrot.slane %v1522_v34, %v7396_v35  ;;  %v4425_v3 = vld [vmem:[%s1263_s18] ss:$0 sm:$0xff]  ;;  %vm1830_vm3 = vcmask 130048   ;;  %vm2232_vm4 = vcmask 523264  }
 0x3bb   : > { %v1486_v25 = vld [vmem:[%s7298_s4] sm:$0xff]  ;;  %v1487_v26 = vld [vmem:[%s7298_s4 + $0x8] sm:$0xff]  ;;  %vm1828_vm2 = vcmp.gt.f32.partialorder %v4425_v3, 0.5  ;;  %vm2234_vm5 = vcmask 785408   ;;  %vm2720_vm6 = vcmask 1043456   ;;  %vm2704_vm8 = vcmask 64512  }
 0x3bc   : > { %v1483_v28 = vld [vmem:[%s1237_s25] sm:$0xff]  ;;  %v1636_v29 = vpack.c.bf16 %v1487_v26, %v1486_v25  ;;  %s4543_s12 = sshll.u32 %s6719_s2, 7  ;;  %s1481_s9 = scalar_lea.vmem [#allocation50], %s7288_s23 }
 0x3bd   : > { %1733 = vmatpush1.bf16.msra.mxu1 %v5274_v9  ;;  %4669 = vmatpush3.bf16.msra.mxu0 %v5279_v11  ;;  %v7385_v30 = vpack.c.bf16 %v1483_v28, %v1483_v28  ;;  %s3889_s4 = sshll.u32 %s1481_s9, 4  ;;  %s3876_s30 = scalar_lea.sflag [#allocation4], %s7285_s24  ;;  %s7660_s4 = int_to_ptr.vmem [resolvable:$true] %s3889_s4 }
 0x3be   : > { %1734 = vmatprep.subr.bf16.mxu1 %v5276_v10  ;;  %4670 = vmatprep.subr.bf16.mxu0 %v6526_v0  ;;  %s6328_s18 = scalar_lea.vmem %s7660_s4, 128  ;;  %p7884_p12 = scmp.ne.s32.totalorder %s7820_s11, 0 }
 0x3bf   : > { %p6329_p5 = scmp.ne.s32.totalorder %s7660_s4, %s6328_s18  ;;  %s6532_s2 = smov [#allocation50]  }
 0x3c0   : > { %s6332_s23 = sshll.u32 %s6532_s2, 4  ;;  %s6333_s23 = int_to_ptr.vmem [resolvable:$false] %s6332_s23 }
 0x3c1   : > { %1735 = vmatpush1.bf16.msra.mxu1 %v5278_v12  ;;  %4671 = vmatpush3.bf16.msra.mxu0 %v5283_v14  ;;  %p6330_p13 = pnand %p6329_p5, %p7884_p12  ;;  %p6335_p0 = scmp.lt.s32.totalorder %s7660_s4, %s6333_s23 }
 0x3c2   : > { %1736 = vmatprep.subr.bf16.mxu1 %v5280_v13  ;;  %4672 = vmatprep.subr.bf16.mxu0 %v6526_v0 }
 0x3c3   : > { %p6331_p2 = pneg %p6330_p13 }
 0x3c5   : > { %1737 = vmatpush1.bf16.msra.mxu1 %v5282_v15  ;;  %4673 = vmatpush3.bf16.msra.mxu0 %v5287_v17 }
 0x3c6   : > { %1738 = vmatprep.subr.bf16.mxu1 %v5284_v16  ;;  %4674 = vmatprep.subr.bf16.mxu0 %v6526_v0 }
 0x3c9   : > { %1739 = vmatpush1.bf16.msra.mxu1 %v5286_v18  ;;  %4675 = vmatpush3.bf16.msra.mxu0 %v5291_v20 }
 0x3ca   : > { %1740 = vmatprep.subr.bf16.mxu1 %v5288_v19  ;;  %4676 = vmatprep.subr.bf16.mxu0 %v6526_v0 }
 0x3cd   : > { %1741 = vmatpush1.bf16.msra.mxu1 %v5290_v21  ;;  %4677 = vmatpush3.bf16.msra.mxu0 %v5295_v23 }
 0x3ce   : > { %1742 = vmatprep.subr.bf16.mxu1 %v5292_v22  ;;  %4678 = vmatprep.subr.bf16.mxu0 %v6526_v0 }
 0x3d1   : > { %1743 = vmatpush1.bf16.msra.mxu1 %v5294_v24  ;;  %4679 = vmatpush3.bf16.msra.mxu0 %v5296_v27 }
 0x3d2   : > { %4690 = vmatprep.subr.bf16.mxu1 %v6526_v0  ;;  %4684 = vmatprep.subr.bf16.mxu0 %v6526_v0 }
 0x3d4   : > { %1761 = vmatmul.mubr.bf16.vlgmr.msra.gmra.mrb[0].mxu1 %v1636_v29  ;;  %4681 = vmatmul.mubr.bf16.vlgmr.msra.gmra.mrb[0].mxu0 %v7385_v30 }
 0x3d5   : > { %4692 = vmatprep.mubr.msk.bf16.mxu1 %vm6528_vm0, %v6526_v0  ;;  %4686 = vmatprep.mubr.msk.bf16.mxu0 %vm6528_vm0, %v6526_v0 }
 0x4a7   : > { %v1762_v37 = vpop.f32.mrb[0].mxu1  ;;  %v1630_v42 = vpop.f32.mrb[0].mxu0 }
 0x4a8   : > { %v1764_v40 = vpop.f32.mrb[1].mxu1  ;;  %v1763_v43 = vadd.f32 %v1762_v37, %v1641_v36  ;;  %v1631_v46 = vadd.f32 %v4400_v39, %v1630_v42  ;;  %v4682_v47 = vpop.f32.mrb[1].mxu0 }
 0x4a9   : > { %v1766_v41 = vpop.f32.mrb[2].mxu1  ;;  %v1765_v48 = vadd.f32 %v1764_v40, %v1645_v38  ;;  %v1633_v50 = vpop.f32.mrb[2].mxu0 }
 0x4aa   : > { %v1767_v44 = vadd.f32 %v1766_v41, %v1641_v36  ;;  %v1768_v45 = vpop.f32.mrb[3].mxu1  ;;  %v4683_v52 = vpop.f32.mrb[3].mxu0  ;;  %v1777_v54 = vpack.c.bf16 %v1631_v46, %v1631_v46 }
 0x4ab   : > { %v1769_v49 = vadd.f32 %v1768_v45, %v1645_v38 }
 0x4ac   : > { %v1778_v51 = vpack.c.bf16 %v1767_v44, %v1763_v43 }
 0x4ad   : > { %v7400_v53 = vpack.c.bf16 %v1769_v49, %v1765_v48 }
 0x4ae   : > { %2001 = vrot.lane.b32.xlu1 %v1778_v51, %s6529_s16  ;;  %1890 = vrot.lane.b32.xlu0 %v1778_v51, %s6530_s7  ;;  %v1785_v55 = vsel %vm1780_vm1, %v1778_v51, 0 }
 0x4af   : > { %4685 = vmatpush3.bf16.xpose.msra.mxu0 %v1785_v55  ;;  %4691 = vmatpush3.bf16.msra.mxu1 %v7400_v53 }
 0x4b0   : > { %4696 = vmatprep.subr.bf16.mxu0 %v6526_v0  ;;  %4702 = vmatprep.subr.bf16.mxu1 %v6526_v0 }
 0x4b2   : > { %1999 = vrot.lane.b32.xlu1 %v1777_v54, %s6529_s16  ;;  %1887 = vrot.lane.b32.xlu0 %v1777_v54, %s6530_s7 }
 0x4b6   : > { %2109 = vrot.lane.b32.xlu1 %v1777_v54, %s6531_s6  ;;  %2111 = vrot.lane.b32.xlu0 %v1778_v51, %s6531_s6 }
 0x4b7   : > { %4687 = vmatmul.mubr.msk.bf16.vlgmr.msra.gmra.mrb[4].mxu0 %vm1780_vm1, %v1777_v54 }
 0x4b8   : > { %4698 = vmatprep.mubr.msk.bf16.mxu0 %vm6528_vm0, %v6526_v0 }
 0x520   : > { %v1891_v56 = vpop.permute.xlu0 %1890  ;;  %v2002_v58 = vpop.permute.xlu1 %2001 }
 0x521   : > { %v1896_v57 = vsel %vm1780_vm1, %v1891_v56, 0  ;;  %v2007_v60 = vsel %vm1780_vm1, %v2002_v58, 0 }
 0x522   : > { %4697 = vmatpush3.bf16.xpose.msra.mxu0 %v1896_v57 }
 0x523   : > { %4708 = vmatprep.subr.bf16.mxu0 %v6526_v0 }
 0x524   : > { %v1888_v59 = vpop.permute.xlu0 %1887  ;;  %v2000_v62 = vpop.permute.xlu1 %1999 }
 0x528   : > { %v2112_v61 = vpop.permute.xlu0 %2111  ;;  %v2110_v2 = vpop.permute.xlu1 %2109 }
 0x529   : > { %4699 = vmatmul.mubr.msk.bf16.vlgmr.msra.gmra.mrb[8].mxu0 %vm1780_vm1, %v1888_v59  ;;  %v2117_v63 = vsel %vm1780_vm1, %v2112_v61, 0 }
 0x52a   : > { %4709 = vmatpush3.bf16.xpose.msra.mxu0 %v2007_v60  ;;  %4710 = vmatprep.mubr.msk.bf16.mxu0 %vm6528_vm0, %v6526_v0 }
 0x52b   : > { %4720 = vmatprep.subr.bf16.mxu0 %v6526_v0 }
 0x531   : > { %4711 = vmatmul.mubr.msk.bf16.vlgmr.msra.gmra.mrb[12].mxu0 %vm1780_vm1, %v2000_v62 }
 0x532   : > { %4721 = vmatpush3.bf16.xpose.msra.mxu0 %v2117_v63  ;;  %4722 = vmatprep.mubr.msk.bf16.mxu0 %vm6528_vm0, %v6526_v0 }
 0x533   : > { %4732 = vmatprep.subr.bf16.mxu0 %v6526_v0 }
 0x539   : > { %4723 = vmatmul.mubr.msk.bf16.vlgmr.msra.gmra.mrb[16].mxu0 %vm1780_vm1, %v2110_v2 }
 0x53a   : > { %4748 = vmatprep.mubr.msk.bf16.mxu0 %vm6528_vm0, %v6526_v0 }
 0x58a   : > { %v1821_v4 = vpop.f32.mrb[4].mxu0 }
 0x58b   : > { %v1827_v5 = vmul.f32 0.17677669, %v1821_v4  ;;  %v4688_v6 = vpop.f32.mrb[5].mxu0 }
 0x58c   : > { %v1824_v7 = vpop.f32.mrb[6].mxu0 }
 0x58d   : > { %v4689_v8 = vpop.f32.mrb[7].mxu0  ;;  %v1829_v9 = vsel %vm1828_vm2, -1e+30, %v1827_v5 }
 0x58e   : > { %v1831_v10 = vsel %vm1830_vm3, %v1829_v9, -inf }
 0x58f   : > { %1832 = vmax.xlane.f32.xlu0 %v1831_v10 }
 0x5fc   : > { %v1932_v11 = vpop.f32.mrb[8].mxu0 }
 0x5fd   : > { %v1938_v12 = vmul.f32 0.17677669, %v1932_v11  ;;  %v4700_v13 = vpop.f32.mrb[9].mxu0 }
 0x5fe   : > { %v1935_v14 = vpop.f32.mrb[10].mxu0 }
 0x5ff   : > { %v4701_v15 = vpop.f32.mrb[11].mxu0  ;;  %v1939_v16 = vsel %vm1828_vm2, -1e+30, %v1938_v12 }
 0x600   : > { %v1940_v17 = vsel %vm1830_vm3, %v1939_v16, -inf }
 0x601   : > { %1941 = vmax.xlane.f32.xlu1 %v1940_v17  ;;  %v5298_v17 = vld [vmem:[#allocation19 + $0x8] sm:$0xff]  }
 0x604   : > { %v2043_v18 = vpop.f32.mrb[12].mxu0 }
 0x605   : > { %v2049_v19 = vmul.f32 0.17677669, %v2043_v18  ;;  %v4712_v20 = vpop.f32.mrb[13].mxu0  ;;  %v5299_v18 = vld [vmem:[#allocation19 + $0x10] sm:$0xff]  }
 0x606   : > { %v2046_v21 = vpop.f32.mrb[14].mxu0  ;;  %v5301_v20 = vld [vmem:[#allocation19 + $0x20] sm:$0xff]  }
 0x607   : > { %v4713_v22 = vpop.f32.mrb[15].mxu0  ;;  %v2050_v23 = vsel %vm1828_vm2, -1e+30, %v2049_v19  ;;  %v5300_v19 = vld [vmem:[#allocation19 + $0x18] sm:$0xff]   ;;  %v5302_v21 = vld [vmem:[#allocation19 + $0x28] sm:$0xff]  }
 0x608   : > { %v2051_v24 = vsel %vm1830_vm3, %v2050_v23, -inf  ;;  %v5303_v22 = vld [vmem:[#allocation19 + $0x30] sm:$0xff]  }
 0x609   : > { %2052 = vmax.xlane.f32.xlu0 %v2051_v24 }
 0x60c   : > { %v2153_v25 = vpop.f32.mrb[16].mxu0 }
 0x60d   : > { %v2159_v26 = vmul.f32 0.17677669, %v2153_v25  ;;  %v4724_v27 = vpop.f32.mrb[17].mxu0 }
 0x60e   : > { %v2156_v28 = vpop.f32.mrb[18].mxu0 }
 0x60f   : > { %v4725_v29 = vpop.f32.mrb[19].mxu0  ;;  %v2160_v31 = vsel %vm1828_vm2, -1e+30, %v2159_v26  ;;  %v5307_v28 = vld [vmem:[#allocation28 + $0x4] ss:$8 sps:$4 sm:$0xff]  }
 0x610   : > { %v2161_v32 = vsel %vm1830_vm3, %v2160_v31, -inf }
 0x611   : > { %2162 = vmax.xlane.f32.xlu0 %v2161_v32 }
 0x61c   : > { %v1833_v34 = vpop.xlane.xlu0 %1832 }
 0x61d   : > { %v1834_v36 = vsub.f32 %v1829_v9, %v1833_v34 }
 0x61f   : > { %v1835_v37 = vmul.f32 1.442695, %v1834_v36  ;;  %v5314_v36 = vld [vmem:[#allocation25] sm:$0xff]  }
 0x621   : > { %5401 = vpow2.f32 %v1835_v37 }
 0x62b   : > { %v5402_v38 = vpop.eup %5401 }
 0x62c   : > { %v1837_v39 = vsel %vm1830_vm3, %v5402_v38, 0.0 }
 0x62d   : > { %1838 = vadd.xlane.f32.xlu1 %v1837_v39 }
 0x63e   : > { %1953 = vrot.lane.b32.xlu1 %v7400_v53, %s6530_s7 }
 0x68e   : > { %v1942_v40 = vpop.xlane.xlu1 %1941 }
 0x68f   : > { %v1943_v41 = vsub.f32 %v1939_v16, %v1942_v40  ;;  %v5297_v16 = vld [vmem:[#allocation19] sm:$0xff]  }
 0x690   : > { %4733 = vmatpush3.bf16.msra.mxu0 %v5297_v16 }
 0x691   : > { %v1944_v42 = vmul.f32 1.442695, %v1943_v41  ;;  %4734 = vmatprep.subr.bf16.mxu0 %v6526_v0 }
 0x693   : > { %5403 = vpow2.f32 %v1944_v42  ;;  %v5322_v42 = vld [vmem:[#allocation25 + $0x10] sm:$0xff]  }
 0x694   : > { %4735 = vmatpush3.bf16.msra.mxu0 %v5298_v17 }
 0x695   : > { %4736 = vmatprep.subr.bf16.mxu0 %v6526_v0 }
 0x696   : > { %v2053_v43 = vpop.xlane.xlu0 %2052 }
 0x697   : > { %v2054_v44 = vsub.f32 %v2050_v23, %v2053_v43  ;;  %v5304_v23 = vld [vmem:[#allocation19 + $0x38] sm:$0xff]  }
 0x698   : > { %4737 = vmatpush3.bf16.msra.mxu0 %v5299_v18  ;;  %v5326_v43 = vld [vmem:[#allocation25 + $0x18] sm:$0xff]   ;;  %v2399_v18 = vld [vmem:[#allocation29] sm:$0x3] }
 0x699   : > { %v2055_v45 = vmul.f32 1.442695, %v2054_v44  ;;  %4738 = vmatprep.subr.bf16.mxu0 %v6526_v0  ;;  %v5330_v44 = vld [vmem:[#allocation25 + $0x20] sm:$0xff]  }
 0x69b   : > { %5405 = vpow2.f32 %v2055_v45  ;;  %v5334_v45 = vld [vmem:[#allocation25 + $0x28] sm:$0xff]  }
 0x69c   : > { %4739 = vmatpush3.bf16.msra.mxu0 %v5300_v19  ;;  %v2518_v19 = vrot.slane %v2399_v18, %v7394_v33 }
 0x69d   : > { %v5404_v46 = vpop.eup %5403  ;;  %4740 = vmatprep.subr.bf16.mxu0 %v6526_v0 }
 0x69e   : > { %v2163_v47 = vpop.xlane.xlu0 %2162  ;;  %v1946_v48 = vsel %vm1830_vm3, %v5404_v46, 0.0 }
 0x69f   : > { %v2164_v49 = vsub.f32 %v2160_v31, %v2163_v47  ;;  %1947 = vadd.xlane.f32.xlu0 %v1946_v48  ;;  %v5336_v47 = vld [vmem:[#allocation25 + $0x38] sm:$0xff]  }
 0x6a0   : > { %4741 = vmatpush3.bf16.msra.mxu0 %v5301_v20 }
 0x6a1   : > { %v2165_v50 = vmul.f32 1.442695, %v2164_v49  ;;  %4742 = vmatprep.subr.bf16.mxu0 %v6526_v0 }
 0x6a3   : > { %5407 = vpow2.f32 %v2165_v50 }
 0x6a4   : > { %4743 = vmatpush3.bf16.msra.mxu0 %v5302_v21 }
 0x6a5   : > { %v5406_v51 = vpop.eup %5405  ;;  %4744 = vmatprep.subr.bf16.mxu0 %v6526_v0 }
 0x6a6   : > { %v2057_v52 = vsel %vm1830_vm3, %v5406_v51, 0.0 }
 0x6a7   : > { %2058 = vadd.xlane.f32.xlu1 %v2057_v52 }
 0x6a8   : > { %4745 = vmatpush3.bf16.msra.mxu0 %v5303_v22  ;;  %v2522_v22 = vrot.slane %v2399_v18, %v7396_v35 }
 0x6a9   : > { %4746 = vmatprep.subr.bf16.mxu0 %v6526_v0 }
 0x6ac   : > { %4747 = vmatpush3.bf16.msra.mxu0 %v5304_v23 }
 0x6ad   : > { %v5408_v54 = vpop.eup %5407  ;;  %2605 = vmatprep.subr.bf16.mxu0 %v5307_v28 }
 0x6ae   : > { %v2167_v55 = vsel %vm1830_vm3, %v5408_v54, 0.0 }
 0x6af   : > { %2168 = vadd.xlane.f32.xlu0 %v2167_v55  ;;  %v5305_v55 = vld [vmem:[#allocation28] ss:$8 sps:$4 sm:$0xff]  }
 0x6b8   : > { %2173 = vrot.lane.b32.xlu1 %v7400_v53, %s6531_s6 }
 0x6ba   : > { %v1839_v56 = vpop.xlane.xlu1 %1838 }
 0x6bb   : > { %5409 = vrcp.f32 %v1839_v56 }
 0x6be   : > { %v1954_v60 = vpop.permute.xlu1 %1953 }
 0x6c5   : > { %v5410_v57 = vpop.eup %5409  ;;  %2063 = vrot.lane.b32.xlu0 %v7400_v53, %s6529_s16 }
 0x6c6   : > { %v1841_v58 = vmul.f32 %v5410_v57, %v5402_v38  ;;  %v5318_v38 = vld [vmem:[#allocation25 + $0x8] sm:$0xff]   ;;  %v5310_v57 = vld [vmem:[#allocation28 + $0x14] ss:$8 sps:$4 sm:$0xff]  }
 0x6c8   : > { %v1842_v59 = vpack.c.bf16 %v1841_v58, %v1841_v58  ;;  %v5308_v58 = vld [vmem:[#allocation28 + $0x10] ss:$8 sps:$4 sm:$0xff]  }
 0x6ca   : > { %4693 = vmatmul.mubr.msk.bf16.vlgmr.msra.gmra.mrb[4].mxu1 %vm1830_vm3, %v1842_v59  ;;  %v5313_v59 = vld [vmem:[#allocation28 + $0x24] ss:$8 sps:$4 sm:$0xff]  }
 0x6cb   : > { %4703 = vmatpush3.bf16.msra.mxu1 %v1954_v60  ;;  %4704 = vmatprep.mubr.msk.bf16.mxu1 %vm6528_vm0, %v6526_v0  ;;  %v5311_v60 = vld [vmem:[#allocation28 + $0x20] ss:$8 sps:$4 sm:$0xff]  }
 0x6cc   : > { %4714 = vmatprep.subr.bf16.mxu1 %v6526_v0 }
 0x72c   : > { %v1948_v61 = vpop.xlane.xlu0 %1947 }
 0x72d   : > { %5411 = vrcp.f32 %v1948_v61  ;;  %v5317_v61 = vld [vmem:[#allocation28 + $0x34] ss:$8 sps:$4 sm:$0xff]  }
 0x734   : > { %v2059_v62 = vpop.xlane.xlu1 %2058 }
 0x735   : > { %5413 = vrcp.f32 %v2059_v62  ;;  %v5315_v62 = vld [vmem:[#allocation28 + $0x30] ss:$8 sps:$4 sm:$0xff]  }
 0x737   : > { %v5412_v63 = vpop.eup %5411 }
 0x738   : > { %v1950_v2 = vmul.f32 %v5412_v63, %v5404_v46  ;;  %v2174_v8 = vpop.permute.xlu1 %2173  ;;  %v5335_v46 = vld [vmem:[#allocation25 + $0x30] sm:$0xff]  }
 0x739   : > { %v5321_v63 = vld [vmem:[#allocation28 + $0x44] ss:$8 sps:$4 sm:$0xff]  }
 0x73a   : > { %v1951_v3 = vpack.c.bf16 %v1950_v2, %v1950_v2  ;;  %v5319_v2 = vld [vmem:[#allocation28 + $0x40] ss:$8 sps:$4 sm:$0xff]  }
 0x73c   : > { %4705 = vmatmul.mubr.msk.bf16.vlgmr.msra.gmra.mrb[8].mxu1 %vm1830_vm3, %v1951_v3  ;;  %v2169_v53 = vpop.xlane.xlu0 %2168  ;;  %v5325_v3 = vld [vmem:[#allocation28 + $0x54] ss:$8 sps:$4 sm:$0xff]  }
 0x73d   : > { %5415 = vrcp.f32 %v2169_v53  ;;  %4716 = vmatprep.mubr.msk.bf16.mxu1 %vm6528_vm0, %v6526_v0  ;;  %v5323_v53 = vld [vmem:[#allocation28 + $0x50] ss:$8 sps:$4 sm:$0xff]  }
 0x73f   : > { %v5414_v4 = vpop.eup %5413 }
 0x740   : > { %v2061_v5 = vmul.f32 %v5414_v4, %v5406_v51  ;;  %v2064_v6 = vpop.permute.xlu0 %2063  ;;  %v5329_v4 = vld [vmem:[#allocation28 + $0x64] ss:$8 sps:$4 sm:$0xff]  }
 0x741   : > { %4715 = vmatpush3.bf16.msra.mxu1 %v2064_v6  ;;  %v5333_v6 = vld [vmem:[#allocation28 + $0x74] ss:$8 sps:$4 sm:$0xff]  }
 0x742   : > { %v2062_v7 = vpack.c.bf16 %v2061_v5, %v2061_v5  ;;  %4726 = vmatprep.subr.bf16.mxu1 %v6526_v0  ;;  %v5327_v5 = vld [vmem:[#allocation28 + $0x60] ss:$8 sps:$4 sm:$0xff]  }
 0x744   : > { %4717 = vmatmul.mubr.msk.bf16.vlgmr.msra.gmra.mrb[12].mxu1 %vm1830_vm3, %v2062_v7  ;;  %v5331_v7 = vld [vmem:[#allocation28 + $0x70] ss:$8 sps:$4 sm:$0xff]  }
 0x745   : > { %4727 = vmatpush3.bf16.msra.mxu1 %v2174_v8  ;;  %4728 = vmatprep.mubr.msk.bf16.mxu1 %vm6528_vm0, %v6526_v0  ;;  %v2364_v8 = vld [vmem:[%s1255_s1] sm:$0xff] }
 0x746   : > { %4752 = vmatprep.subr.bf16.mxu1 %v6526_v0 }
 0x747   : > { %v5416_v9 = vpop.eup %5415 }
 0x748   : > { %v2171_v10 = vmul.f32 %v5416_v9, %v5408_v54  ;;  %v2513_v9 = vpack.c.bf16 %v2364_v8, %v2364_v8 }
 0x74a   : > { %v2172_v11 = vpack.c.bf16 %v2171_v10, %v2171_v10 }
 0x74c   : > { %4729 = vmatmul.mubr.msk.bf16.vlgmr.msra.gmra.mrb[16].mxu1 %vm1830_vm3, %v2172_v11 }
 0x74d   : > { %4768 = vmatprep.mubr.msk.bf16.mxu1 %vm6528_vm0, %v6526_v0  ;;  %4753 = vmatpush3.bf16.msra.mxu1 %v5314_v36 }
 0x74e   : > { %4754 = vmatprep.subr.bf16.mxu1 %v6526_v0 }
 0x751   : > { %4755 = vmatpush3.bf16.msra.mxu1 %v5318_v38 }
 0x752   : > { %4756 = vmatprep.subr.bf16.mxu1 %v6526_v0 }
 0x755   : > { %4757 = vmatpush3.bf16.msra.mxu1 %v5322_v42 }
 0x756   : > { %4758 = vmatprep.subr.bf16.mxu1 %v6526_v0 }
 0x759   : > { %4759 = vmatpush3.bf16.msra.mxu1 %v5326_v43 }
 0x75a   : > { %4760 = vmatprep.subr.bf16.mxu1 %v6526_v0 }
 0x75d   : > { %4761 = vmatpush3.bf16.msra.mxu1 %v5330_v44 }
 0x75e   : > { %4762 = vmatprep.subr.bf16.mxu1 %v6526_v0 }
 0x761   : > { %4763 = vmatpush3.bf16.msra.mxu1 %v5334_v45 }
 0x762   : > { %4764 = vmatprep.subr.bf16.mxu1 %v6526_v0 }
 0x765   : > { %4765 = vmatpush3.bf16.msra.mxu1 %v5335_v46 }
 0x766   : > { %4766 = vmatprep.subr.bf16.mxu1 %v6526_v0 }
 0x769   : > { %4767 = vmatpush3.bf16.msra.mxu1 %v5336_v47 }
 0x76a   : > { %4772 = vmatprep.subr.bf16.mxu1 %v6526_v0 }
 0x76c   : > { %4769 = vmatmul.mubr.bf16.vlgmr.msra.gmra.mrb[20].mxu1 %v7385_v30 }
 0x76d   : > { %4774 = vmatprep.mubr.msk.bf16.mxu1 %vm6528_vm0, %v6526_v0 }
 0x79d   : > { %v7465_v12 = vpop.f32.mrb[4].mxu1 }
 0x79e   : > { %v4694_v13 = vpop.f32.mrb[5].mxu1 }
 0x79f   : > { %v1883_v14 = vpop.f32.mrb[6].mxu1 }
 0x7a0   : > { %v4695_v15 = vpop.f32.mrb[7].mxu1 }
 0x80f   : > { %v1993_v24 = vpop.f32.mrb[8].mxu1 }
 0x810   : > { %2220 = vrot.lane.b32.xlu1 %v1993_v24, %s6531_s6  ;;  %v4706_v25 = vpop.f32.mrb[9].mxu1 }
 0x811   : > { %v1996_v26 = vpop.f32.mrb[10].mxu1  ;;  %v4445_v25 = vld [vmem:[#allocation26] ss:$0 sm:$0xff] }
 0x812   : > { %v4707_v27 = vpop.f32.mrb[11].mxu1 }
 0x817   : > { %v2103_v29 = vpop.f32.mrb[12].mxu1 }
 0x818   : > { %2224 = vrot.lane.b32.xlu0 %v2103_v29, %s6529_s16  ;;  %v4718_v31 = vpop.f32.mrb[13].mxu1 }
 0x819   : > { %v2106_v32 = vpop.f32.mrb[14].mxu1 }
 0x81a   : > { %v4719_v34 = vpop.f32.mrb[15].mxu1 }
 0x81f   : > { %v2213_v37 = vpop.f32.mrb[16].mxu1 }
 0x820   : > { %2228 = vrot.lane.b32.xlu1 %v2213_v37, %s6530_s7  ;;  %v4730_v39 = vpop.f32.mrb[17].mxu1  ;;  %v7514_v37 = vld [vmem:[%s1271_s21] ss:$0 sm:$0xff]  ;;  %s6334_s21 = scalar_lea.vmem %s6333_s23, 256 }
 0x821   : > { %v2216_v40 = vpop.f32.mrb[18].mxu1  ;;  %vm2702_vm7 = vcmp.gt.f32.partialorder %v7514_v37, 0.5  ;;  %p6336_p3 = scmp.lt.s32.totalorder %s6334_s21, %s6328_s18 }
 0x822   : > { %v4731_v41 = vpop.f32.mrb[19].mxu1 }
 0x823   : > { %p6337_p10 = por %p6336_p3, %p6335_p0 }
 0x825   : > { %p6338_p7 = pnand %p6337_p10, %p6331_p2 }
 0x83f   : > { %v2507_v10 = vpop.f32.mrb[20].mxu1 }
 0x840   : > { %v4770_v11 = vpop.f32.mrb[21].mxu1  ;;  %v2508_v31 = vadd.f32 %v4445_v25, %v2507_v10 }
 0x842   : > { %v2652_v34 = vpack.c.bf16 %v2508_v31, %v2508_v31 }
 0x882   : > { %v2221_v48 = vpop.permute.xlu1 %2220 }
 0x883   : > { %v2231_v50 = vsel %vm1780_vm1, %v7465_v12, %v2221_v48  ;;  %v2510_v12 = vpop.f32.mrb[22].mxu1 }
 0x884   : > { %v4771_v13 = vpop.f32.mrb[23].mxu1 }
 0x88a   : > { %v2225_v49 = vpop.permute.xlu0 %2224 }
 0x88b   : > { %v2233_v51 = vsel %vm2232_vm4, %v2231_v50, %v2225_v49 }
 0x892   : > { %v2229_v52 = vpop.permute.xlu1 %2228 }
 0x893   : > { %v2235_v54 = vsel %vm2234_vm5, %v2233_v51, %v2229_v52 }
 0x894   : > { %v2236_v56 = vpack.c.bf16 %v2235_v54, %v2235_v54 }
 0x896   : > { %4749 = vmatmul.mubr.bf16.vlgmr.msra.gmra.mrb[20].mxu0 %v2236_v56 }
 0x897   : > { %2606 = vmatpush1.bf16.msra.mxu0 %v5305_v55  ;;  %2637 = vmatprep.mubr.bf16.mxu0 %v6527_v1 }
 0x898   : > { %2607 = vmatprep.subr.bf16.mxu0 %v5310_v57 }
 0x89b   : > { %2608 = vmatpush1.bf16.msra.mxu0 %v5308_v58 }
 0x89c   : > { %2609 = vmatprep.subr.bf16.mxu0 %v5313_v59 }
 0x89f   : > { %2610 = vmatpush1.bf16.msra.mxu0 %v5311_v60 }
 0x8a0   : > { %2611 = vmatprep.subr.bf16.mxu0 %v5317_v61 }
 0x8a3   : > { %2612 = vmatpush1.bf16.msra.mxu0 %v5315_v62 }
 0x8a4   : > { %2613 = vmatprep.subr.bf16.mxu0 %v5321_v63 }
 0x8a7   : > { %2614 = vmatpush1.bf16.msra.mxu0 %v5319_v2 }
 0x8a8   : > { %2615 = vmatprep.subr.bf16.mxu0 %v5325_v3 }
 0x8ab   : > { %2616 = vmatpush1.bf16.msra.mxu0 %v5323_v53 }
 0x8ac   : > { %2617 = vmatprep.subr.bf16.mxu0 %v5329_v4 }
 0x8af   : > { %2618 = vmatpush1.bf16.msra.mxu0 %v5327_v5 }
 0x8b0   : > { %2619 = vmatprep.subr.bf16.mxu0 %v5333_v6 }
 0x8b3   : > { %2620 = vmatpush1.bf16.msra.mxu0 %v5331_v7 }
 0x8b4   : > { %4796 = vmatprep.subr.bf16.mxu0 %v6526_v0 }
 0x8b6   : > { %2638 = vmatmul.mubr.bf16.vlgmr.msra.gmra.mrb[24].mxu0 %v2513_v9 }
 0x8b7   : > { %4798 = vmatprep.mubr.msk.bf16.mxu0 %vm6528_vm0, %v6526_v0 }
 0x969   : > { %v7498_v14 = vpop.f32.mrb[20].mxu0 }
 0x96a   : > { %v4750_v15 = vpop.f32.mrb[21].mxu0 }
 0x96b   : > { %v2328_v16 = vpop.f32.mrb[22].mxu0 }
 0x96c   : > { %v4751_v17 = vpop.f32.mrb[23].mxu0 }
 0x989   : > { %v2639_v20 = vpop.f32.mrb[24].mxu0 }
 0x98a   : > { %v2640_v21 = vadd.f32 %v2639_v20, %v2518_v19  ;;  %v2641_v23 = vpop.f32.mrb[25].mxu0 }
 0x98b   : > { %v2643_v24 = vpop.f32.mrb[26].mxu0  ;;  %v2642_v28 = vadd.f32 %v2641_v23, %v2522_v22 }
 0x98c   : > { %v2653_v26 = vpack.c.bf16 %v2640_v21, %v2640_v21  ;;  %v2644_v27 = vpop.f32.mrb[27].mxu0 }
 0x98d   : > { %v7504_v32 = vpack.c.bf16 %v2642_v28, %v2642_v28 }
 0x98e   : > { %v2659_v29 = vsel %vm1780_vm1, %v2653_v26, 0 }
 0x98f   : > { %4773 = vmatpush3.bf16.xpose.msra.mxu1 %v2659_v29  ;;  %v2722_v36 = vsel %vm2720_vm6, %v7504_v32, 0 }
 0x990   : > { %4778 = vmatprep.subr.bf16.mxu1 %v6526_v0 }
 0x996   : > { %4775 = vmatmul.mubr.msk.bf16.vlgmr.msra.gmra.mrb[24].mxu1 %vm1780_vm1, %v2652_v34 }
 0x997   : > { %4779 = vmatpush3.bf16.msra.mxu1 %v2722_v36  ;;  %4780 = vmatprep.mubr.msk.bf16.mxu1 %vm6528_vm0, %v6526_v0 }
 0x998   : > { %4784 = vmatprep.subr.bf16.mxu1 %v6526_v0 }
 0xa69   : > { %v2695_v38 = vpop.f32.mrb[24].mxu1 }
 0xa6a   : > { %v2701_v39 = vmul.f32 0.17677669, %v2695_v38  ;;  %v4776_v40 = vpop.f32.mrb[25].mxu1 }
 0xa6b   : > { %v2698_v41 = vpop.f32.mrb[26].mxu1 }
 0xa6c   : > { %v2703_v42 = vsel %vm2702_vm7, -1e+30, %v2701_v39  ;;  %v4777_v43 = vpop.f32.mrb[27].mxu1 }
 0xa6d   : > { %v2705_v44 = vsel %vm2704_vm8, %v2703_v42, -inf }
 0xa6e   : > { %2706 = vmax.xlane.f32.xlu0 %v2705_v44 }
 0xa84   : > { %2768 = vrot.lane.b32.xlu0 %v2653_v26, %s6530_s7 }
 0xa88   : > { %2881 = vrot.lane.b32.xlu0 %v2653_v26, %s6529_s16 }
 0xa8c   : > { %2993 = vrot.lane.b32.xlu0 %v2653_v26, %s6531_s6 }
 0xafb   : > { %v2707_v45 = vpop.xlane.xlu0 %2706 }
 0xafc   : > { %v2708_v46 = vsub.f32 %v2703_v42, %v2707_v45 }
 0xafe   : > { %v2709_v47 = vmul.f32 1.442695, %v2708_v46 }
 0xaff   : > { %v2769_v48 = vpop.permute.xlu0 %2768 }
 0xb00   : > { %5417 = vpow2.f32 %v2709_v47  ;;  %v2774_v62 = vsel %vm1780_vm1, %v2769_v48, 0 }
 0xb03   : > { %v2882_v49 = vpop.permute.xlu0 %2881 }
 0xb04   : > { %v2887_v50 = vsel %vm1780_vm1, %v2882_v49, 0 }
 0xb05   : > { %4797 = vmatpush3.bf16.xpose.msra.mxu0 %v2887_v50 }
 0xb06   : > { %4808 = vmatprep.subr.bf16.mxu0 %v6526_v0 }
 0xb07   : > { %v2994_v56 = vpop.permute.xlu0 %2993 }
 0xb08   : > { %v2999_v58 = vsel %vm1780_vm1, %v2994_v56, 0 }
 0xb0a   : > { %v5418_v51 = vpop.eup %5417 }
 0xb0b   : > { %v2711_v52 = vsel %vm2704_vm8, %v5418_v51, 0.0 }
 0xb0c   : > { %2712 = vadd.xlane.f32.xlu1 %v2711_v52 }
 0xb1d   : > { %2765 = vrot.lane.b32.xlu1 %v2652_v34, %s6530_s7 }
 0xb21   : > { %2879 = vrot.lane.b32.xlu1 %v2652_v34, %s6529_s16 }
 0xb25   : > { %2991 = vrot.lane.b32.xlu1 %v2652_v34, %s6531_s6 }
 0xb99   : > { %v2713_v54 = vpop.xlane.xlu1 %2712 }
 0xb9a   : > { %5419 = vrcp.f32 %v2713_v54 }
 0xb9d   : > { %v2766_v55 = vpop.permute.xlu1 %2765 }
 0xba1   : > { %v2880_v57 = vpop.permute.xlu1 %2879 }
 0xba2   : > { %4799 = vmatmul.mubr.msk.bf16.vlgmr.msra.gmra.mrb[28].mxu0 %vm1780_vm1, %v2880_v57 }
 0xba3   : > { %4809 = vmatpush3.bf16.xpose.msra.mxu0 %v2999_v58  ;;  %4810 = vmatprep.mubr.msk.bf16.mxu0 %vm6528_vm0, %v6526_v0 }
 0xba4   : > { %v5420_v59 = vpop.eup %5419  ;;  %4820 = vmatprep.subr.bf16.mxu0 %v6526_v0 }
 0xba5   : > { %v2715_v60 = vmul.f32 %v5420_v59, %v5418_v51  ;;  %v2992_v63 = vpop.permute.xlu1 %2991 }
 0xba7   : > { %v2716_v61 = vpack.c.bf16 %v2715_v60, %v2715_v60 }
 0xba9   : > { %4781 = vmatmul.mubr.msk.bf16.vlgmr.msra.gmra.mrb[28].mxu1 %vm2704_vm8, %v2716_v61 }
 0xbaa   : > { %4785 = vmatpush3.bf16.xpose.msra.mxu1 %v2774_v62  ;;  %4811 = vmatmul.mubr.msk.bf16.vlgmr.msra.gmra.mrb[32].mxu0 %vm1780_vm1, %v2992_v63 }
 0xbab   : > { %4786 = vmatprep.mubr.msk.bf16.mxu1 %vm6528_vm0, %v6526_v0  ;;  %4790 = vmatprep.subr.bf16.mxu1 %v6526_v0 }
 0xbac   : > { %4836 = vmatprep.mubr.msk.bf16.mxu0 %vm6528_vm0, %v6526_v0 }
 0xbb1   : > { %4787 = vmatmul.mubr.msk.bf16.vlgmr.msra.gmra.mrb[32].mxu1 %vm1780_vm1, %v2766_v55 }
 0xbb2   : > { %4792 = vmatprep.mubr.msk.bf16.mxu1 %vm6528_vm0, %v6526_v0 }
 0xc75   : > { %v2923_v2 = vpop.f32.mrb[28].mxu0 }
 0xc76   : > { %v2929_v3 = vmul.f32 0.17677669, %v2923_v2  ;;  %v4800_v53 = vpop.f32.mrb[29].mxu0  ;;  %v5337_v2 = vld [vmem:[#allocation31] sm:$0xff]  }
 0xc77   : > { %v2926_v4 = vpop.f32.mrb[30].mxu0  ;;  %4821 = vmatpush3.bf16.msra.mxu0 %v5337_v2  ;;  %v5339_v53 = vld [vmem:[#allocation31 + $0x10] sm:$0xff]  }
 0xc78   : > { %v4801_v5 = vpop.f32.mrb[31].mxu0  ;;  %v2930_v6 = vsel %vm2702_vm7, -1e+30, %v2929_v3  ;;  %v5338_v3 = vld [vmem:[#allocation31 + $0x8] sm:$0xff]   ;;  %4822 = vmatprep.subr.bf16.mxu0 %v6526_v0  ;;  %v5340_v4 = vld [vmem:[#allocation31 + $0x18] sm:$0xff]  }
 0xc79   : > { %v2931_v7 = vsel %vm2704_vm8, %v2930_v6, -inf  ;;  %v5341_v5 = vld [vmem:[#allocation31 + $0x20] sm:$0xff]  }
 0xc7a   : > { %2932 = vmax.xlane.f32.xlu1 %v2931_v7  ;;  %v5343_v7 = vld [vmem:[#allocation31 + $0x30] sm:$0xff]  }
 0xc7b   : > { %4823 = vmatpush3.bf16.msra.mxu0 %v5338_v3 }
 0xc7c   : > { %v7548_v8 = vpop.f32.mrb[28].mxu1  ;;  %4824 = vmatprep.subr.bf16.mxu0 %v6526_v0 }
 0xc7d   : > { %v4782_v9 = vpop.f32.mrb[29].mxu1  ;;  %v3035_v10 = vpop.f32.mrb[32].mxu0 }
 0xc7e   : > { %v2761_v11 = vpop.f32.mrb[30].mxu1  ;;  %v4812_v12 = vpop.f32.mrb[33].mxu0  ;;  %v3041_v18 = vmul.f32 0.17677669, %v3035_v10 }
 0xc7f   : > { %v4783_v13 = vpop.f32.mrb[31].mxu1  ;;  %v3038_v15 = vpop.f32.mrb[34].mxu0  ;;  %4825 = vmatpush3.bf16.msra.mxu0 %v5339_v53 }
 0xc80   : > { %v4813_v16 = vpop.f32.mrb[35].mxu0  ;;  %v3042_v25 = vsel %vm2702_vm7, -1e+30, %v3041_v18  ;;  %4826 = vmatprep.subr.bf16.mxu0 %v6526_v0  ;;  %v5344_v13 = vld [vmem:[#allocation31 + $0x38] sm:$0xff]  }
 0xc81   : > { %v3043_v26 = vsel %vm2704_vm8, %v3042_v25, -inf }
 0xc83   : > { %4827 = vmatpush3.bf16.msra.mxu0 %v5340_v4 }
 0xc84   : > { %v2810_v17 = vpop.f32.mrb[32].mxu1  ;;  %4828 = vmatprep.subr.bf16.mxu0 %v6526_v0 }
 0xc85   : > { %v2816_v19 = vmul.f32 0.17677669, %v2810_v17  ;;  %v4788_v20 = vpop.f32.mrb[33].mxu1 }
 0xc86   : > { %v2813_v21 = vpop.f32.mrb[34].mxu1 }
 0xc87   : > { %v4789_v22 = vpop.f32.mrb[35].mxu1  ;;  %v2817_v23 = vsel %vm2702_vm7, -1e+30, %v2816_v19  ;;  %4829 = vmatpush3.bf16.msra.mxu0 %v5341_v5  ;;  %v4443_v5 = vld [vmem:[#allocation22] ss:$0 sm:$0xff] }
 0xc88   : > { %v2818_v24 = vsel %vm2704_vm8, %v2817_v23, -inf  ;;  %4830 = vmatprep.subr.bf16.mxu0 %v6526_v0 }
 0xc89   : > { %2819 = vmax.xlane.f32.xlu0 %v2818_v24 }
 0xc8d   : > { %3044 = vmax.xlane.f32.xlu0 %v3043_v26 }
 0xd07   : > { %v2933_v27 = vpop.xlane.xlu1 %2932 }
 0xd08   : > { %v2934_v28 = vsub.f32 %v2930_v6, %v2933_v27  ;;  %v5342_v6 = vld [vmem:[#allocation31 + $0x28] sm:$0xff]  }
 0xd09   : > { %4831 = vmatpush3.bf16.msra.mxu0 %v5342_v6 }
 0xd0a   : > { %v2935_v29 = vmul.f32 1.442695, %v2934_v28  ;;  %4832 = vmatprep.subr.bf16.mxu0 %v6526_v0 }
 0xd0c   : > { %5421 = vpow2.f32 %v2935_v29 }
 0xd0d   : > { %4833 = vmatpush3.bf16.msra.mxu0 %v5343_v7 }
 0xd0e   : > { %4834 = vmatprep.subr.bf16.mxu0 %v6526_v0 }
 0xd11   : > { %4835 = vmatpush3.bf16.msra.mxu0 %v5344_v13 }
 0xd12   : > { %4860 = vmatprep.subr.bf16.mxu0 %v6526_v0 }
 0xd16   : > { %v5422_v31 = vpop.eup %5421  ;;  %v2820_v34 = vpop.xlane.xlu0 %2819 }
 0xd17   : > { %v2821_v36 = vsub.f32 %v2817_v23, %v2820_v34  ;;  %v2937_v38 = vsel %vm2704_vm8, %v5422_v31, 0.0  ;;  %v4434_v23 = vld [vmem:[#allocation20] ss:$0 sm:$0xff] }
 0xd18   : > { %2938 = vadd.xlane.f32.xlu1 %v2937_v38  ;;  %v2326_v24 = vadd.f32 %v4434_v23, %v7498_v14 }
 0xd19   : > { %v2822_v39 = vmul.f32 1.442695, %v2821_v36 }
 0xd1a   : > { %v3045_v40 = vpop.xlane.xlu0 %3044 }
 0xd1b   : > { %5423 = vpow2.f32 %v2822_v39  ;;  %v3046_v41 = vsub.f32 %v3042_v25, %v3045_v40  ;;  %v5447_v25 = vld [vmem:[%s1237_s25] sm:$0xff]  ;;  %s7883_s25 = sld [smem:[#allocation100_spill]] }
 0xd1c   : > { %v2331_v26 = vadd.f32 %v5447_v25, %v2326_v24 }
 0xd1d   : > { %v3047_v42 = vmul.f32 1.442695, %v3046_v41 }
 0xd1f   : > { %5425 = vpow2.f32 %v3047_v42  ;;  %v5345_v42 = vld [vmem:[#allocation37] sm:$0xff]  }
 0xd21   : > { %s7658_s1 = scalar_lea.hbm %s7883_s25, %s4543_s12 }
 0xd25   : > { %v5424_v37 = vpop.eup %5423 }
 0xd26   : > { %v2824_v43 = vsel %vm2704_vm8, %v5424_v37, 0.0 }
 0xd27   : > { %2825 = vadd.xlane.f32.xlu0 %v2824_v43  ;;  %v5348_v43 = vld [vmem:[#allocation38 + $0x8] sm:$0xff]  }
 0xd29   : > { %v5426_v44 = vpop.eup %5425  ;;  %2831 = vrot.lane.b32.xlu1 %v7504_v32, %s6530_s7 }
 0xd2a   : > { %v3049_v45 = vsel %vm2704_vm8, %v5426_v44, 0.0 }
 0xd2b   : > { %3050 = vadd.xlane.f32.xlu0 %v3049_v45  ;;  %v5350_v45 = vld [vmem:[#allocation38 + $0x10] sm:$0xff]  }
 0xd2d   : > { %3055 = vrot.lane.b32.xlu1 %v7504_v32, %s6531_s6 }
 0xd41   : > { %2943 = vrot.lane.b32.xlu0 %v7504_v32, %s6529_s16 }
 0xda5   : > { %v2939_v46 = vpop.xlane.xlu1 %2938 }
 0xda9   : > { %v2832_v47 = vpop.permute.xlu1 %2831 }
 0xdaa   : > { %v2837_v48 = vsel %vm2720_vm6, %v2832_v47, 0  ;;  %v5352_v47 = vld [vmem:[#allocation38 + $0x18] sm:$0xff]  }
 0xdab   : > { %4791 = vmatpush3.bf16.msra.mxu1 %v2837_v48  ;;  %v5353_v48 = vld [vmem:[#allocation37 + $0x20] sm:$0xff]  }
 0xdac   : > { %4802 = vmatprep.subr.bf16.mxu1 %v6526_v0 }
 0xdad   : > { %v3056_v58 = vpop.permute.xlu1 %3055 }
 0xdae   : > { %v3061_v61 = vsel %vm2720_vm6, %v3056_v58, 0 }
 0xdb4   : > { %v2826_v49 = vpop.xlane.xlu0 %2825 }
 0xdb5   : > { %5427 = vrcp.f32 %v2826_v49  ;;  %v5354_v49 = vld [vmem:[#allocation38 + $0x20] sm:$0xff]  }
 0xdb6   : > { %5429 = vrcp.f32 %v2939_v46  ;;  %v5351_v46 = vld [vmem:[#allocation37 + $0x18] sm:$0xff]  }
 0xdb8   : > { %v3051_v50 = vpop.xlane.xlu0 %3050 }
 0xdb9   : > { %5431 = vrcp.f32 %v3051_v50  ;;  %v5355_v50 = vld [vmem:[#allocation37 + $0x28] sm:$0xff]  }
 0xdbc   : > { %v2944_v54 = vpop.permute.xlu0 %2943 }
 0xdbd   : > { %v2949_v57 = vsel %vm2720_vm6, %v2944_v54, 0  ;;  %v4479_v54 = vld [vmem:[#allocation32] ss:$0 sm:$0xff] }
 0xdbf   : > { %v5428_v51 = vpop.eup %5427 }
 0xdc0   : > { %v2828_v52 = vmul.f32 %v5428_v51, %v5424_v37  ;;  %v5430_v56 = vpop.eup %5429  ;;  %v5347_v37 = vld [vmem:[#allocation37 + $0x8] sm:$0xff]  }
 0xdc1   : > { %v2941_v32 = vmul.f32 %v5430_v56, %v5422_v31  ;;  %v5356_v51 = vld [vmem:[#allocation38 + $0x28] sm:$0xff]  }
 0xdc2   : > { %v2829_v55 = vpack.c.bf16 %v2828_v52, %v2828_v52  ;;  %v5357_v52 = vld [vmem:[#allocation37 + $0x30] sm:$0xff]  }
 0xdc3   : > { %v2942_v59 = vpack.c.bf16 %v2941_v32, %v2941_v32  ;;  %v5432_v60 = vpop.eup %5431 }
 0xdc4   : > { %4793 = vmatmul.mubr.msk.bf16.vlgmr.msra.gmra.mrb[36].mxu1 %vm2704_vm8, %v2829_v55  ;;  %v3053_v62 = vmul.f32 %v5432_v60, %v5426_v44  ;;  %v5349_v44 = vld [vmem:[#allocation37 + $0x10] sm:$0xff]   ;;  %v1484_v60 = vld [vmem:[%s1280_s3] sm:$0xff] }
 0xdc5   : > { %4803 = vmatpush3.bf16.msra.mxu1 %v2949_v57  ;;  %4804 = vmatprep.mubr.msk.bf16.mxu1 %vm6528_vm0, %v6526_v0 }
 0xdc6   : > { %4814 = vmatprep.subr.bf16.mxu1 %v6526_v0  ;;  %v3054_v63 = vpack.c.bf16 %v3053_v62, %v3053_v62  ;;  %v5359_v62 = vld [vmem:[#allocation37 + $0x38] sm:$0xff]  }
 0xdcc   : > { %4805 = vmatmul.mubr.msk.bf16.vlgmr.msra.gmra.mrb[40].mxu1 %vm2704_vm8, %v2942_v59 }
 0xdcd   : > { %4815 = vmatpush3.bf16.msra.mxu1 %v3061_v61  ;;  %4816 = vmatprep.mubr.msk.bf16.mxu1 %vm6528_vm0, %v6526_v0  ;;  %v5358_v61 = vld [vmem:[#allocation38 + $0x30] sm:$0xff]  }
 0xdce   : > { %4840 = vmatprep.subr.bf16.mxu1 %v6526_v0 }
 0xdd4   : > { %4817 = vmatmul.mubr.msk.bf16.vlgmr.msra.gmra.mrb[44].mxu1 %vm2704_vm8, %v3054_v63  ;;  %v5360_v63 = vld [vmem:[#allocation38 + $0x38] sm:$0xff]  }
 0xdd5   : > { %4856 = vmatprep.mubr.msk.bf16.mxu1 %vm6528_vm0, %v6526_v0  ;;  %4841 = vmatpush3.bf16.msra.mxu1 %v5345_v42  ;;  %v5363_v42 = vld [vmem:[#allocation41 + $0x4] ss:$8 sps:$4 sm:$0xff]  }
 0xdd6   : > { %4842 = vmatprep.subr.bf16.mxu1 %v6526_v0 }
 0xdd9   : > { %4843 = vmatpush3.bf16.msra.mxu1 %v5347_v37  ;;  %v5366_v37 = vld [vmem:[#allocation41 + $0x14] ss:$8 sps:$4 sm:$0xff]  }
 0xdda   : > { %4844 = vmatprep.subr.bf16.mxu1 %v6526_v0 }
 0xddd   : > { %4845 = vmatpush3.bf16.msra.mxu1 %v5349_v44  ;;  %v5369_v44 = vld [vmem:[#allocation41 + $0x24] ss:$8 sps:$4 sm:$0xff]  }
 0xdde   : > { %4846 = vmatprep.subr.bf16.mxu1 %v6526_v0 }
 0xde1   : > { %4847 = vmatpush3.bf16.msra.mxu1 %v5351_v46  ;;  %v5370_v46 = vld [vmem:[#allocation41 + $0x30] ss:$8 sps:$4 sm:$0xff]  }
 0xde2   : > { %4848 = vmatprep.subr.bf16.mxu1 %v6526_v0 }
 0xde5   : > { %4849 = vmatpush3.bf16.msra.mxu1 %v5353_v48  ;;  %v5375_v48 = vld [vmem:[#allocation41 + $0x44] ss:$8 sps:$4 sm:$0xff]  }
 0xde6   : > { %4850 = vmatprep.subr.bf16.mxu1 %v6526_v0 }
 0xde9   : > { %4851 = vmatpush3.bf16.msra.mxu1 %v5355_v50  ;;  %v5378_v50 = vld [vmem:[#allocation41 + $0x54] ss:$8 sps:$4 sm:$0xff]  }
 0xdea   : > { %4852 = vmatprep.subr.bf16.mxu1 %v6526_v0 }
 0xded   : > { %4853 = vmatpush3.bf16.msra.mxu1 %v5357_v52  ;;  %v5381_v52 = vld [vmem:[#allocation41 + $0x64] ss:$8 sps:$4 sm:$0xff]  }
 0xdee   : > { %4854 = vmatprep.subr.bf16.mxu1 %v6526_v0 }
 0xdf1   : > { %4855 = vmatpush3.bf16.msra.mxu1 %v5359_v62  ;;  %v5391_v62 = vld [vmem:[#allocation44 + $0x58] sm:$0xff]  }
 0xdf2   : > { %4880 = vmatprep.subr.bf16.mxu1 %v6526_v0 }
 0xdf4   : > { %4857 = vmatmul.mubr.bf16.vlgmr.msra.gmra.mrb[48].mxu1 %v7385_v30 }
 0xdf5   : > { %4896 = vmatprep.mubr.msk.bf16.mxu1 %vm6528_vm0, %v6526_v0 }
 0xe97   : > { %v2873_v9 = vpop.f32.mrb[36].mxu1 }
 0xe98   : > { %3104 = vrot.lane.b32.xlu1 %v2873_v9, %s6531_s6  ;;  %v4794_v10 = vpop.f32.mrb[37].mxu1  ;;  %v4444_v9 = vld [vmem:[#allocation23] ss:$0 sm:$0xff] }
 0xe99   : > { %v2876_v11 = vpop.f32.mrb[38].mxu1 }
 0xe9a   : > { %v4795_v12 = vpop.f32.mrb[39].mxu1 }
 0xe9f   : > { %v2985_v15 = vpop.f32.mrb[40].mxu1 }
 0xea0   : > { %3108 = vrot.lane.b32.xlu0 %v2985_v15, %s6529_s16  ;;  %v4806_v16 = vpop.f32.mrb[41].mxu1 }
 0xea1   : > { %v2988_v17 = vpop.f32.mrb[42].mxu1 }
 0xea2   : > { %v4807_v18 = vpop.f32.mrb[43].mxu1 }
 0xea7   : > { %v3097_v19 = vpop.f32.mrb[44].mxu1 }
 0xea8   : > { %3112 = vrot.lane.b32.xlu1 %v3097_v19, %s6530_s7  ;;  %v4818_v20 = vpop.f32.mrb[45].mxu1 }
 0xea9   : > { %v3100_v21 = vpop.f32.mrb[46].mxu1 }
 0xeaa   : > { %v4819_v22 = vpop.f32.mrb[47].mxu1 }
 0xebf   : > { %2332 = vadd.xlane.f32.xlu0 %v2331_v26 }
 0xec7   : > { %v3345_v17 = vpop.f32.mrb[48].mxu1 }
 0xec8   : > { %v4858_v18 = vpop.f32.mrb[49].mxu1 }
 0xec9   : > { %v3348_v19 = vpop.f32.mrb[50].mxu1 }
 0xeca   : > { %v4859_v20 = vpop.f32.mrb[51].mxu1 }
 0xf0a   : > { %v3105_v27 = vpop.permute.xlu1 %3104 }
 0xf0b   : > { %v3115_v29 = vsel %vm1780_vm1, %v7548_v8, %v3105_v27  ;;  %v5346_v8 = vld [vmem:[#allocation38] sm:$0xff]   ;;  %v4489_v27 = vld [vmem:[#allocation35] ss:$0 sm:$0xff] }
 0xf0c   : > { %4881 = vmatpush3.bf16.msra.mxu1 %v5346_v8 }
 0xf0d   : > { %4882 = vmatprep.subr.bf16.mxu1 %v6526_v0 }
 0xf10   : > { %4883 = vmatpush3.bf16.msra.mxu1 %v5348_v43 }
 0xf11   : > { %4884 = vmatprep.subr.bf16.mxu1 %v6526_v0 }
 0xf12   : > { %v3109_v28 = vpop.permute.xlu0 %3108 }
 0xf13   : > { %v3116_v31 = vsel %vm2232_vm4, %v3115_v29, %v3109_v28 }
 0xf14   : > { %4885 = vmatpush3.bf16.msra.mxu1 %v5350_v45 }
 0xf15   : > { %4886 = vmatprep.subr.bf16.mxu1 %v6526_v0 }
 0xf18   : > { %4887 = vmatpush3.bf16.msra.mxu1 %v5352_v47 }
 0xf19   : > { %4888 = vmatprep.subr.bf16.mxu1 %v6526_v0 }
 0xf1a   : > { %v3113_v34 = vpop.permute.xlu1 %3112 }
 0xf1b   : > { %v3117_v36 = vsel %vm2234_vm5, %v3116_v31, %v3113_v34  ;;  %v4490_v34 = vld [vmem:[#allocation40] ss:$0 sm:$0xff] }
 0xf1c   : > { %v3118_v38 = vpack.c.bf16 %v3117_v36, %v3117_v36  ;;  %4889 = vmatpush3.bf16.msra.mxu1 %v5354_v49  ;;  %v7645_v36 = vadd.f32 %v4490_v34, %v3345_v17  ;;  %v5400_v34 = vld [vmem:[#allocation44 + $0x38] sm:$0xff]  }
 0xf1d   : > { %4890 = vmatprep.subr.bf16.mxu1 %v6526_v0 }
 0xf1e   : > { %4837 = vmatmul.mubr.bf16.vlgmr.msra.gmra.mrb[36].mxu0 %v3118_v38 }
 0xf1f   : > { %4876 = vmatprep.mubr.msk.bf16.mxu0 %vm6528_vm0, %v6526_v0  ;;  %4861 = vmatpush3.bf16.msra.mxu0 %v5346_v8  ;;  %v5361_v8 = vld [vmem:[#allocation41] ss:$8 sps:$4 sm:$0xff]  }
 0xf20   : > { %4862 = vmatprep.subr.bf16.mxu0 %v6526_v0  ;;  %4891 = vmatpush3.bf16.msra.mxu1 %v5356_v51 }
 0xf21   : > { %4892 = vmatprep.subr.bf16.mxu1 %v6526_v0 }
 0xf23   : > { %4863 = vmatpush3.bf16.msra.mxu0 %v5348_v43  ;;  %v5364_v43 = vld [vmem:[#allocation41 + $0x10] ss:$8 sps:$4 sm:$0xff]  }
 0xf24   : > { %4864 = vmatprep.subr.bf16.mxu0 %v6526_v0  ;;  %4893 = vmatpush3.bf16.msra.mxu1 %v5358_v61 }
 0xf25   : > { %4894 = vmatprep.subr.bf16.mxu1 %v6526_v0 }
 0xf27   : > { %4865 = vmatpush3.bf16.msra.mxu0 %v5350_v45  ;;  %v5367_v45 = vld [vmem:[#allocation41 + $0x20] ss:$8 sps:$4 sm:$0xff]  }
 0xf28   : > { %4866 = vmatprep.subr.bf16.mxu0 %v6526_v0  ;;  %4895 = vmatpush3.bf16.msra.mxu1 %v5360_v63 }
 0xf2b   : > { %4867 = vmatpush3.bf16.msra.mxu0 %v5352_v47  ;;  %v5372_v47 = vld [vmem:[#allocation41 + $0x34] ss:$8 sps:$4 sm:$0xff]  }
 0xf2c   : > { %4868 = vmatprep.subr.bf16.mxu0 %v6526_v0 }
 0xf2f   : > { %4869 = vmatpush3.bf16.msra.mxu0 %v5354_v49  ;;  %v5373_v49 = vld [vmem:[#allocation41 + $0x40] ss:$8 sps:$4 sm:$0xff]  }
 0xf30   : > { %4870 = vmatprep.subr.bf16.mxu0 %v6526_v0 }
 0xf33   : > { %4871 = vmatpush3.bf16.msra.mxu0 %v5356_v51  ;;  %v5376_v51 = vld [vmem:[#allocation41 + $0x50] ss:$8 sps:$4 sm:$0xff]  }
 0xf34   : > { %4872 = vmatprep.subr.bf16.mxu0 %v6526_v0 }
 0xf37   : > { %4873 = vmatpush3.bf16.msra.mxu0 %v5358_v61  ;;  %v5390_v61 = vld [vmem:[#allocation44 + $0x10] sm:$0xff]  }
 0xf38   : > { %4874 = vmatprep.subr.bf16.mxu0 %v6526_v0 }
 0xf3b   : > { %4875 = vmatpush3.bf16.msra.mxu0 %v5360_v63  ;;  %v5392_v63 = vld [vmem:[#allocation44 + $0x18] sm:$0xff]  }
 0xf3c   : > { %3625 = vmatprep.subr.bf16.mxu0 %v5363_v42 }
 0xf4c   : > { %v2333_v14 = vpop.xlane.xlu0 %2332 }
 0xf4d   : > { %v2335_v39 = vmul.f32 0.0078125, %v2333_v14 }
 0xf4f   : > { %v7600_v40 = vsub.f32 %v2331_v26, %v2335_v39 }
 0xf51   : > { %v2337_v41 = vmul.f32 %v7600_v40, %v7600_v40 }
 0xf53   : > { %2338 = vadd.xlane.f32.xlu0 %v2337_v41 }
 0xfe0   : > { %v2339_v30 = vpop.xlane.xlu0 %2338 }
 0xfe1   : > { %v2340_v2 = vmul.f32 0.0078125, %v2339_v30  ;;  %v5393_v30 = vld [vmem:[#allocation44 + $0x60] sm:$0xff]  }
 0xfe3   : > { %v2341_v3 = vadd.f32 1e-05, %v2340_v2  ;;  %v5394_v2 = vld [vmem:[#allocation44 + $0x20] sm:$0xff]  }
 0xfe5   : > { %5433 = vrsqrt.f32 %v2341_v3  ;;  %v5395_v3 = vld [vmem:[#allocation44 + $0x68] sm:$0xff]  }
 0xfef   : > { %v5434_v53 = vpop.eup %5433 }
 0xff0   : > { %v2343_v4 = vmul.f32 %v5434_v53, %v7600_v40  ;;  %v5396_v53 = vld [vmem:[#allocation44 + $0x28] sm:$0xff]  }
 0xff1   : > { %v3207_v55 = vpop.f32.mrb[36].mxu0 }
 0xff2   : > { %v3208_v56 = vadd.f32 %v4479_v54, %v3207_v55  ;;  %v4838_v57 = vpop.f32.mrb[37].mxu0  ;;  %v2350_v6 = vmul.f32 %v4443_v5, %v2343_v4  ;;  %v5379_v54 = vld [vmem:[#allocation41 + $0x60] ss:$8 sps:$4 sm:$0xff]   ;;  %v5384_v55 = vld [vmem:[#allocation41 + $0x74] ss:$8 sps:$4 sm:$0xff]  }
 0xff3   : > { %v3210_v32 = vpop.f32.mrb[38].mxu0  ;;  %v5385_v57 = vld [vmem:[#allocation44 + $0x40] sm:$0xff]  }
 0xff4   : > { %v4839_v58 = vpop.f32.mrb[39].mxu0  ;;  %v3213_v59 = vadd.f32 %v5447_v25, %v3208_v56  ;;  %v2357_v12 = vadd.f32 %v4444_v9, %v2350_v6  ;;  %v4488_v25 = vld [vmem:[#allocation34] ss:$0 sm:$0xff]  ;;  %v5386_v32 = vld [vmem:[#allocation44] sm:$0xff]   ;;  %4642 = vmatprep.subr.bf16.mxu1 %v5385_v57 }
 0xff5   : > { %v5382_v56 = vld [vmem:[#allocation41 + $0x70] ss:$8 sps:$4 sm:$0xff]  }
 0xff6   : > { %3214 = vadd.xlane.f32.xlu1 %v3213_v59  ;;  %v5387_v58 = vld [vmem:[#allocation44 + $0x48] sm:$0xff]  }
0x1007   : > { %2360 = vperm.xlu1 %5263, %v1484_v60   ;;  %v5389_v60 = vld [vmem:[#allocation44 + $0x50] sm:$0xff]  }
0x1083   : > { %v3215_v7 = vpop.xlane.xlu1 %3214 }
0x1084   : > { %v3216_v10 = vmul.f32 0.0078125, %v3215_v7 }
0x1086   : > { %v3217_v11 = vsub.f32 %v3213_v59, %v3216_v10  ;;  %v5388_v59 = vld [vmem:[#allocation44 + $0x8] sm:$0xff]  }
0x1087   : > { %v7632_v13 = vpop.permute.xlu1 %2360 }
0x1088   : > { %v7635_v15 = vmul.f32 %v7632_v13, %v2357_v12  ;;  %v3218_v0 = vmul.f32 %v3217_v11, %v3217_v11 }
0x108a   : > { %v3351_v16 = vpack.c.bf16 %v7635_v15, %v7635_v15  ;;  %3219 = vadd.xlane.f32.xlu0 %v3218_v0 }
0x108c   : > { %4877 = vmatmul.mubr.bf16.vlgmr.msra.gmra.mrb[40].mxu0 %v3351_v16 }
0x108d   : > { %3657 = vmatprep.mubr.bf16.mxu0 %v6527_v1  ;;  %3626 = vmatpush1.bf16.msra.mxu0 %v5361_v8 }
0x108e   : > { %3627 = vmatprep.subr.bf16.mxu0 %v5366_v37 }
0x1091   : > { %3628 = vmatpush1.bf16.msra.mxu0 %v5364_v43 }
0x1092   : > { %3629 = vmatprep.subr.bf16.mxu0 %v5369_v44 }
0x1095   : > { %3630 = vmatpush1.bf16.msra.mxu0 %v5367_v45 }
0x1096   : > { %3631 = vmatprep.subr.bf16.mxu0 %v5372_v47 }
0x1099   : > { %3632 = vmatpush1.bf16.msra.mxu0 %v5370_v46  ;;  %v4523_v46 = vld [vmem:[#allocation46] ss:$0 sm:$0xff] }
0x109a   : > { %3633 = vmatprep.subr.bf16.mxu0 %v5375_v48 }
0x109d   : > { %3634 = vmatpush1.bf16.msra.mxu0 %v5373_v49 }
0x109e   : > { %3635 = vmatprep.subr.bf16.mxu0 %v5378_v50 }
0x10a1   : > { %3636 = vmatpush1.bf16.msra.mxu0 %v5376_v51 }
0x10a2   : > { %3637 = vmatprep.subr.bf16.mxu0 %v5381_v52 }
0x10a5   : > { %3638 = vmatpush1.bf16.msra.mxu0 %v5379_v54 }
0x10a6   : > { %3639 = vmatprep.subr.bf16.mxu0 %v5384_v55 }
0x10a9   : > { %3640 = vmatpush1.bf16.msra.mxu0 %v5382_v56 }
0x1117   : > { %v3220_v21 = vpop.xlane.xlu0 %3219 }
0x1118   : > { %v3221_v22 = vmul.f32 0.0078125, %v3220_v21 }
0x111a   : > { %v3222_v23 = vadd.f32 1e-05, %v3221_v22 }
0x111c   : > { %5435 = vrsqrt.f32 %v3222_v23 }
0x1126   : > { %v5436_v24 = vpop.eup %5435 }
0x1127   : > { %v3224_v26 = vmul.f32 %v5436_v24, %v3217_v11 }
0x1129   : > { %v3231_v28 = vmul.f32 %v4488_v25, %v3224_v26 }
0x112b   : > { %v3238_v29 = vadd.f32 %v4489_v27, %v3231_v28  ;;  %v5397_v28 = vld [vmem:[#allocation44 + $0x70] sm:$0xff]  }
0x112d   : > { %v7641_v31 = vmul.f32 %v3238_v29, %v7632_v13  ;;  %v5398_v29 = vld [vmem:[#allocation44 + $0x30] sm:$0xff]  }
0x112f   : > { %v3463_v1 = vpack.c.bf16 %v7641_v31, %v7641_v31 }
0x1131   : > { %4897 = vmatmul.mubr.bf16.vlgmr.msra.gmra.mrb[52].mxu1 %v3463_v1  ;;  %v5399_v1 = vld [vmem:[#allocation44 + $0x78] sm:$0xff]  }
0x1132   : > { %4643 = vmatpush3.bf16.msra.mxu1 %v5386_v32 }
0x1133   : > { %4644 = vmatprep.subr.bf16.mxu1 %v5387_v58 }
0x1136   : > { %4645 = vmatpush3.bf16.msra.mxu1 %v5388_v59  ;;  %v4540_v59 = vld [vmem:[#allocation47] ss:$0 sm:$0xff] }
0x1137   : > { %4646 = vmatprep.subr.bf16.mxu1 %v5389_v60 }
0x113a   : > { %4647 = vmatpush3.bf16.msra.mxu1 %v5390_v61  ;;  %v4541_v61 = vld [vmem:[#allocation49] ss:$0 sm:$0xff] }
0x113b   : > { %4648 = vmatprep.subr.bf16.mxu1 %v5391_v62 }
0x113e   : > { %4649 = vmatpush3.bf16.msra.mxu1 %v5392_v63 }
0x113f   : > { %4650 = vmatprep.subr.bf16.mxu1 %v5393_v30 }
0x1142   : > { %4651 = vmatpush3.bf16.msra.mxu1 %v5394_v2 }
0x1143   : > { %4652 = vmatprep.subr.bf16.mxu1 %v5395_v3 }
0x1146   : > { %4653 = vmatpush3.bf16.msra.mxu1 %v5396_v53 }
0x1147   : > { %4654 = vmatprep.subr.bf16.mxu1 %v5397_v28 }
0x114a   : > { %4655 = vmatpush3.bf16.msra.mxu1 %v5398_v29 }
0x114b   : > { %4656 = vmatprep.subr.bf16.mxu1 %v5399_v1 }
0x114e   : > { %4657 = vmatpush3.bf16.msra.mxu1 %v5400_v34 }
0x115f   : > { %v3450_v38 = vpop.f32.mrb[40].mxu0 }
0x1160   : > { %v3456_v14 = vadd.f32 %v3450_v38, %v7645_v36  ;;  %v4878_v39 = vpop.f32.mrb[41].mxu0 }
0x1161   : > { %v3453_v40 = vpop.f32.mrb[42].mxu0 }
0x1162   : > { %v4879_v41 = vpop.f32.mrb[43].mxu0  ;;  %v3457_v4 = vsub.f32 0.0, %v3456_v14 }
0x1164   : > { %v3458_v5 = vmul.f32 1.442695, %v3457_v4 }
0x1166   : > { %5437 = vpow2.f32 %v3458_v5 }
0x1170   : > { %v5438_v16 = vpop.eup %5437 }
0x1171   : > { %v3460_v17 = vadd.f32 1.0, %v5438_v16 }
0x1204   : > { %v3498_v6 = vpop.f32.mrb[52].mxu1 }
0x1205   : > { %v3504_v7 = vadd.f32 %v3498_v6, %v7645_v36  ;;  %v4898_v9 = vpop.f32.mrb[53].mxu1  ;;  %v3533_v36 = vld [vmem:[#allocation43] sm:$0x3] }
0x1206   : > { %v3501_v10 = vpop.f32.mrb[54].mxu1  ;;  %v3538_v38 = vrot.slane %v3533_v36, %v7394_v33 }
0x1207   : > { %v3505_v11 = vsub.f32 0.0, %v3504_v7  ;;  %v4899_v12 = vpop.f32.mrb[55].mxu1 }
0x1209   : > { %v3506_v0 = vmul.f32 1.442695, %v3505_v11 }
0x120b   : > { %5439 = vpow2.f32 %v3506_v0 }
0x120c   : > { %5441 = vrcp.f32 %v3460_v17 }
0x1215   : > { %v5440_v18 = vpop.eup %5439 }
0x1216   : > { %v3508_v19 = vadd.f32 1.0, %v5440_v18  ;;  %v5442_v20 = vpop.eup %5441 }
0x1217   : > { %v3511_v22 = vmul.f32 %v5442_v20, %v7635_v15  ;;  %v3542_v15 = vrot.slane %v3533_v36, %v7396_v35 }
0x1218   : > { %5443 = vrcp.f32 %v3508_v19 }
0x1222   : > { %v5444_v21 = vpop.eup %5443 }
0x1223   : > { %v3512_v23 = vmul.f32 %v5444_v21, %v7641_v31 }
0x1225   : > { %v3513_v24 = vadd.f32 %v3512_v23, %v3511_v22 }
0x1227   : > { %v3514_v25 = vmul.f32 0.70710677, %v3513_v24 }
0x1229   : > { %v3515_v26 = vmul.f32 %v3514_v25, %v7632_v13 }
0x122b   : > { %v3516_v27 = vpack.c.bf16 %v3515_v26, %v3515_v26 }
0x122d   : > { %3658 = vmatmul.mubr.bf16.vlgmr.msra.gmra.mrb[44].mxu0 %v3516_v27 }
0x1300   : > { %v3659_v31 = vpop.f32.mrb[44].mxu0 }
0x1301   : > { %v3660_v14 = vadd.f32 %v3659_v31, %v3538_v38  ;;  %v3661_v39 = vpop.f32.mrb[45].mxu0 }
0x1302   : > { %v3662_v40 = vadd.f32 %v3661_v39, %v3542_v15  ;;  %v3663_v41 = vpop.f32.mrb[46].mxu0 }
0x1303   : > { %v3666_v42 = vmax.f32 %v3660_v14, 0.0  ;;  %v3664_v8 = vpop.f32.mrb[47].mxu0 }
0x1304   : > { %v3667_v37 = vmax.f32 %v3662_v40, 0.0 }
0x1305   : > { %v3668_v44 = vpack.c.bf16 %v3666_v42, %v3666_v42 }
0x1306   : > { %v3669_v43 = vpack.c.bf16 %v3667_v37, %v3667_v37 }
0x1308   : > { %3837 = vmatprep.mubr.bf16.mxu1 %v3669_v43 }
0x1309   : > { %3838 = vmatmul.mubr.bf16.vlgmr.msra.gmra.mrb[56].mxu1 %v3668_v44 }
0x13dc   : > { %v4658_v45 = vpop.f32.mrb[56].mxu1 }
0x13dd   : > { %v4659_v47 = vpop.f32.mrb[57].mxu1 }
0x13de   : > { %v4660_v48 = vadd.f32 %v4659_v47, %v4658_v45  ;;  %v4661_v49 = vpop.f32.mrb[58].mxu1 }
0x13df   : > { %v4662_v33 = vpop.f32.mrb[59].mxu1 }
0x13e0   : > { %v3840_v50 = vadd.f32 %v4660_v48, %v4523_v46 }
0x13e2   : > { %v3845_v35 = vadd.f32 %v3840_v50, %v3515_v26 }
0x13e4   : > { %3848 = vadd.xlane.f32.xlu0 %v3845_v35 }
0x1471   : > { %v3849_v51 = vpop.xlane.xlu0 %3848 }
0x1472   : > { %v3850_v52 = vmul.f32 0.0078125, %v3849_v51 }
0x1474   : > { %v3851_v54 = vsub.f32 %v3845_v35, %v3850_v52 }
0x1476   : > { %v3852_v55 = vmul.f32 %v3851_v54, %v3851_v54 }
0x1478   : > { %3853 = vadd.xlane.f32.xlu0 %v3852_v55 }
0x1505   : > { %v3854_v56 = vpop.xlane.xlu0 %3853 }
0x1506   : > { %v3855_v57 = vmul.f32 0.0078125, %v3854_v56 }
0x1508   : > { %v3856_v32 = vadd.f32 1e-05, %v3855_v57 }
0x150a   : > { %5445 = vrsqrt.f32 %v3856_v32 }
0x1514   : > { %v5446_v58 = vpop.eup %5445 }
0x1515   : > { %v3858_v60 = vmul.f32 %v5446_v58, %v3851_v54 }
0x1517   : > { %v3865_v62 = vmul.f32 %v4540_v59, %v3858_v60 }
0x1519   : > { %v3872_v63 = vadd.f32 %v4541_v61, %v3865_v62 }
0x151b   : > { %v3873_v30 = vmul.f32 %v3872_v63, %v7632_v13 }
0x151d   : > { %3874 = vst [vmem:[%s1481_s9] sm:$0xff] %v3873_v30 }
0x151e   : > { %6341 = shalt.err (!%p6338_p7)
}
0x151f   : > { %s6342_s24 = scalar_lea.hbm %s7658_s1, 128  ;;  %s6346_s28 = scalar_lea.hbm %s7883_s25, 256 }
0x1520   : > { %p6343_p4 = scmp.ne.s32.totalorder %s7658_s1, %s6342_s24  ;;  %p6347_p6 = scmp.lt.u32.totalorder %s7658_s1, %s7883_s25 }
0x1521   : > { %p6348_p1 = scmp.lt.u32.totalorder %s6346_s28, %s6342_s24  ;;  %p6350_p5 = scmp.lt.u32.totalorder %s6342_s24, %s7658_s1 }
0x1522   : > { %p6344_p8 = pnand %p6343_p4, %p7884_p12 }
0x1523   : > { %p6349_p9 = por %p6348_p1, %p6347_p6 }
0x1524   : > { %p6345_p11 = pneg %p6344_p8 }
0x1525   : > { %p6351_p13 = por %p6350_p5, %p6349_p9 }
0x1527   : > { %p6352_p2 = pnand %p6351_p13, %p6345_p11 }
0x1529   : > { %6355 = shalt.err (!%p6352_p2)
}
0x152a   : > { %5012 = dma.vmem_to_hbm [thread:$0]  (%p7884_p12), %s7660_s4, 128, %s7658_s1, %s3876_s30  }
0x152b PF: > { %s7885_s3 = sld [smem:[#allocation105_spill]]  ;;  %s3901_s16 = sand.u32 1, %s6446_s0  }
0x152c   : > { %p7887_p3 = scmp.ge.s32.totalorder %s6458_s26, 2  ;;  %s3902_s7 = scalar_lea.sflag [#allocation4], %s3901_s16 }
0x1531   : > { %p7886_p0 = scmp.ne.s32.totalorder %s7885_s3, 0 }
0x1533   : > { %p5110_p10 = pnand %p7887_p3, %p7886_p0 }
0x1535   : > { %6441 = dma.done.wait (!%p5110_p10), %s3902_s7, 128  }
0x1536   : > { %6443 = vsyncadd (!%p5110_p10), %s3902_s7, 4294967168  ;;  %s7888_s26 = sld [smem:[#allocation103_spill]]  ;;  %s7889_s6 = sld [smem:[#allocation101_spill]] }
0x1537   : > { %s7890_s23 = sld [smem:[#allocation104_spill]]  ;;  %s7891_s0 = smov %s6450_s22 }
0x153c   : > { %p97_p7 = scmp.ge.s32.totalorder %s7888_s26, 4   ;;  %s7892_s22 = smov %s7889_s6 }
0x153e   :  { %99 = sbr.rel (!%p97_p7) target bundleno = 91 (0x5b), region = 381 }
0x1545   :  { %3907 = vsyncpa [#allocation3], 1 }
0x1546   :  { %3909 = vsyncpa [#allocation3 + $0x1], 1 }
0x1547   :  { %3910 = vsyncpa [#allocation6], 1 }
0x1548   :  { %3912 = vsyncpa [#allocation6 + $0x1], 1 }
0x1549   :  { %3913 = vsyncpa [#allocation9], 1 }
0x154a   :  { %3915 = vsyncpa [#allocation9 + $0x1], 1 }
0x154b   :  { %3916 = vsyncpa [#allocation12], 1 }
0x154c   :  { %3918 = vsyncpa [#allocation12 + $0x1], 1 }
0x154d   :  { %3919 = vsyncpa [#allocation15], 1 }
0x154e   :  { %3920 = vsyncpa [#allocation18], 1 }
0x154f   :  { %3921 = vsyncpa [#allocation21], 1 }
0x1550   :  { %3922 = vsyncpa [#allocation24], 1 }
0x1551   :  { %3923 = vsyncpa [#allocation27], 1 }
0x1552   :  { %3924 = vsyncpa [#allocation30], 1 }
0x1553   :  { %3925 = vsyncpa [#allocation33], 1 }
0x1554   :  { %3926 = vsyncpa [#allocation36], 1 }
0x1555   :  { %3927 = vsyncpa [#allocation39], 1 }
0x1556   :  { %3928 = vsyncpa [#allocation42], 1 }
0x1557   :  { %3929 = vsyncpa [#allocation45], 1 }
0x1558   :  { %3930 = vsyncpa [#allocation48], 1 }
0x1559   :  { %3931 = vsyncpa [#allocation4], 1 }
0x155a   :  { %3933 = vsyncpa [#allocation4 + $0x1], 1 }

</bundles_post_ra>
